<compile_context>
chip_gen: v7x
topology: tpu7x:2x2x1
jax: 0.10.0
libtpu: 0.0.40
codegen_flags: <defaults>
</compile_context>

<pallas_src>
import jax
import jax.numpy as jnp
from jax import lax
from jax.experimental import pallas as pl
from jax.experimental.pallas import tpu as pltpu

EMBED_DIM = 50
K1, K2, K3 = 13, 13, 11          # conv1 / conv2 / conv3 kernel widths
OUT_PAD = 128                    # lane-dense padded width of the fused-linear output


# ----------------------------- kernel -------------------------------------- #
def cnn_fused_kernel(ae_ref, ao_ref, w1_ref, b1_ref, sc1_ref, sh1_ref,
                     w2_ref, b2_ref, sc2_ref, sh2_ref,
                     w3_ref, b3_ref, se_ref, so_ref, wk_ref, blr_ref, out_ref):
    B = out_ref.shape[0]
    K2_ = w2_ref.shape[0]
    K3_ = w3_ref.shape[0]
    L3 = wk_ref.shape[0]
    BP1 = ae_ref.shape[0]              # B * P1 pooled stage-1 rows (batch-contiguous)
    blk = (BP1 // B) // 2              # per-batch row stride in pooled-stage-2 space
    N2 = se_ref.shape[1]               # conv2 rows over the concatenated batch
    M2 = se_ref.shape[0]               # pooled stage-2 rows (incl. boundary garbage)
    N3 = M2 - (K3_ - 1)                # conv3 rows
    N4 = N3 - (L3 - 1)                 # fused-linear rows (row b*blk is batch b's output)

    # ---- stage 1: conv1 (im2col, K=650) + bias + ReLU + BN affine, pool = max(even, odd)
    he = jnp.maximum(jnp.dot(ae_ref[...], w1_ref[...],
                             preferred_element_type=jnp.float32) + b1_ref[...], 0.0)
    he = he * sc1_ref[...] + sh1_ref[...]
    ho = jnp.maximum(jnp.dot(ao_ref[...], w1_ref[...],
                             preferred_element_type=jnp.float32) + b1_ref[...], 0.0)
    ho = ho * sc1_ref[...] + sh1_ref[...]
    p1 = jnp.maximum(he, ho).astype(jnp.bfloat16)          # (B*P1, C), batch-contiguous

    # ---- stage 2: conv2 per tap over the concatenated batch; boundary rows are
    # garbage and get discarded by the valid-row bookkeeping below.
    acc2 = jnp.dot(p1[0:N2, :], w2_ref[0], preferred_element_type=jnp.float32)
    for k in range(1, K2_):            # static unroll over the taps
        acc2 = acc2 + jnp.dot(p1[k:k + N2, :], w2_ref[k],
                              preferred_element_type=jnp.float32)
    h2 = jnp.maximum(acc2 + b2_ref[...], 0.0) * sc2_ref[...] + sh2_ref[...]
    h2 = h2.astype(jnp.bfloat16)
    # MaxPool1d(2) via two 0/1 row-selection matmuls (exact; no scratch round-trip)
    p2 = jnp.maximum(
        jnp.dot(se_ref[...], h2, preferred_element_type=jnp.float32),
        jnp.dot(so_ref[...], h2, preferred_element_type=jnp.float32),
    ).astype(jnp.bfloat16)                                  # (M2, C)

    # ---- stage 3: conv3 per tap + bias + ReLU
    acc3 = jnp.dot(p2[0:N3, :], w3_ref[0], preferred_element_type=jnp.float32)
    for k in range(1, K3_):
        acc3 = acc3 + jnp.dot(p2[k:k + N3, :], w3_ref[k],
                              preferred_element_type=jnp.float32)
    h3 = jnp.maximum(acc3 + b3_ref[...], 0.0).astype(jnp.bfloat16)   # (N3, C)

    # ---- fused linear on PyTorch's permute+reshape(-1, C) rows, via the
    # position-expanded weight wk (see wrapper):  r[i] = sum_l h3[i+l] @ wk[l];
    # row b*blk of r is the (lane-dense, 128-padded) output row for batch b.
    r = jnp.dot(h3[0:N4, :], wk_ref[0], preferred_element_type=jnp.float32)
    for l in range(1, L3):
        r = r + jnp.dot(h3[l:l + N4, :], wk_ref[l],
                        preferred_element_type=jnp.float32)

    rows = [r[b * blk:b * blk + 1, :] for b in range(B)]    # static 1-row slices
    out_ref[...] = jnp.concatenate(rows, axis=0) + blr_ref[...]


# ----------------------------- wrapper -------------------------------------- #
def cnn_forward(tokens, params):
    C = EMBED_DIM
    # TODO(synk): embedding gather stays in plain JAX glue.
    emb = params["embedding"][tokens].astype(jnp.bfloat16)   # (B, L, C)
    B, L, _ = emb.shape

    L1 = L - (K1 - 1)
    P1 = L1 // 2
    L2 = P1 - (K2 - 1)
    P2 = L2 // 2
    L3 = P2 - (K3 - 1)
    assert L1 % 2 == 0 and L2 % 2 == 0, "even/odd pooling split needs even conv lengths"
    assert L3 >= 1, "sequence too short for this conv stack"
    assert 2 * L3 <= OUT_PAD

    N2 = B * P1 - (K2 - 1)     # conv2 rows over the concatenated batch
    M2 = N2 // 2               # pooled stage-2 rows

    def bn_fold(g, bb, m, v, eps=1e-5):
        s = g / jnp.sqrt(v + eps)
        return s.reshape(1, C), (bb - m * s).reshape(1, C)

    sc1, sh1 = bn_fold(params["bn1_gamma"], params["bn1_beta"],
                       params["bn1_mean"], params["bn1_var"])
    sc2, sh2 = bn_fold(params["bn2_gamma"], params["bn2_beta"],
                       params["bn2_mean"], params["bn2_var"])

    # conv1 im2col (plain JAX, exact per-batch VALID windows), split by output
    # parity so stage-1 pooling is just an elementwise max inside the kernel.
    KC1 = K1 * C
    win_idx = jnp.arange(L1)[:, None] + jnp.arange(K1)[None, :]        # (L1, K1)
    col = emb[:, win_idx, :].reshape(B, L1, KC1)                       # (B, L1, 650)
    a_even = col[:, 0::2, :].reshape(B * P1, KC1)                      # bf16
    a_odd = col[:, 1::2, :].reshape(B * P1, KC1)

    # torch Conv1d weight (Cout, Cin, K) -> (K, Cin, Cout); conv1 stacked to (K*Cin, Cout)
    w1cat = jnp.transpose(params["w1"], (2, 1, 0)).reshape(KC1, C).astype(jnp.bfloat16)
    w2t = jnp.transpose(params["w2"], (2, 1, 0)).astype(jnp.bfloat16)
    w3t = jnp.transpose(params["w3"], (2, 1, 0)).astype(jnp.bfloat16)
    b1r = params["b1"].reshape(1, C)
    b2r = params["b2"].reshape(1, C)
    b3r = params["b3"].reshape(1, C)

    # stage-2 MaxPool1d(2) as two 0/1 row-selection matrices (MXU does the gather)
    rows2 = jnp.arange(M2)[:, None]
    cols2 = jnp.arange(N2)[None, :]
    sel_e = (cols2 == 2 * rows2).astype(jnp.bfloat16)          # (M2, N2)
    sel_o = (cols2 == 2 * rows2 + 1).astype(jnp.bfloat16)

    # Fold PyTorch's `x.reshape(-1, C) @ Wl.T` (x in NCL layout) into a
    # position-expanded weight so the kernel needs no transpose/odd reshape:
    #   rows[b*L3+rr, j] = h_ncl[b, c, l] with c=(rr*C+j)//L3, l=(rr*C+j)%L3
    #   => wk[l, c, 2*rr+o] = Wl[o, c*L3 + l - rr*C]   (0 where out of range)
    wl = params["wl"]                                   # (2, C)
    l_i = jnp.arange(L3)[:, None, None]
    c_i = jnp.arange(C)[None, :, None]
    r_i = jnp.arange(L3)[None, None, :]
    j = c_i * L3 + l_i - r_i * C                        # (L3, C, L3)
    valid = (j >= 0) & (j < C)
    wk = jnp.where(valid[None], wl[:, jnp.clip(j, 0, C - 1)], 0.0)  # (2,L3,C,L3)
    wk = jnp.transpose(wk, (1, 2, 3, 0)).reshape(L3, C, 2 * L3)     # (L3,C,2*L3)
    wk_pad = jnp.zeros((L3, C, OUT_PAD), jnp.float32).at[:, :, :2 * L3].set(wk)
    wk_pad = wk_pad.astype(jnp.bfloat16)
    bl_pad = jnp.zeros((1, OUT_PAD), jnp.float32).at[0, :2 * L3].set(
        jnp.tile(params["bl"], L3))

    # Single pallas_call, single step: total resident footprint is ~0.5 MB, far
    # under VMEM on every generation, so whole-array (default) blocks are used.
    out_pad = pl.pallas_call(
        cnn_fused_kernel,
        out_shape=jax.ShapeDtypeStruct((B, OUT_PAD), jnp.float32),
    )(a_even, a_odd, w1cat, b1r, sc1, sh1,
      w2t, b2r, sc2, sh2, w3t, b3r, sel_e, sel_o, wk_pad, bl_pad)

    # wrapper-side slice of the lane-dense padded output slab
    return out_pad[:, :2 * L3].reshape(B * L3, 2)


# ------------------------- deterministic params ----------------------------- #
def init_params(key, vocab_size, C=EMBED_DIM):
    ks = jax.random.split(key, 17)

    def n(k, shape, scale):
        return scale * jax.random.normal(k, shape, dtype=jnp.float32)

    return {
        "embedding": n(ks[0], (vocab_size + 2, C), 0.1),
        "w1": n(ks[1], (C, C, K1), 0.05), "b1": n(ks[2], (C,), 0.05),
        "bn1_gamma": 1.0 + n(ks[3], (C,), 0.1), "bn1_beta": n(ks[4], (C,), 0.1),
        "bn1_mean": n(ks[5], (C,), 0.1),
        "bn1_var": 1.0 + jnp.abs(n(ks[6], (C,), 0.1)),
        "w2": n(ks[7], (C, C, K2), 0.05), "b2": n(ks[8], (C,), 0.05),
        "bn2_gamma": 1.0 + n(ks[9], (C,), 0.1), "bn2_beta": n(ks[10], (C,), 0.1),
        "bn2_mean": n(ks[11], (C,), 0.1),
        "bn2_var": 1.0 + jnp.abs(n(ks[12], (C,), 0.1)),
        "w3": n(ks[13], (C, C, K3), 0.05), "b3": n(ks[14], (C,), 0.05),
        "wl": n(ks[15], (2, C), 0.05), "bl": n(ks[16], (2,), 0.05),
    }


# ------------------------- pure-JAX reference -------------------------------- #
def ref_forward(tokens, params):
    C = EMBED_DIM
    emb = params["embedding"][tokens]
    x = jnp.transpose(emb, (0, 2, 1))  # (B, C, L) == torch NCL

    def conv(h, W, b):
        y = lax.conv_general_dilated(h, W, window_strides=(1,), padding="VALID",
                                     dimension_numbers=("NCH", "OIH", "NCH"))
        return y + b[None, :, None]

    def bn(h, g, bta, m, v, eps=1e-5):
        s = g / jnp.sqrt(v + eps)
        return h * s[None, :, None] + (bta - m * s)[None, :, None]

    def pool(h):
        m = h.shape[2] // 2
        return jnp.maximum(h[:, :, 0:2 * m:2], h[:, :, 1:2 * m:2])

    h = pool(bn(jnp.maximum(conv(x, params["w1"], params["b1"]), 0.0),
                params["bn1_gamma"], params["bn1_beta"],
                params["bn1_mean"], params["bn1_var"]))
    h = pool(bn(jnp.maximum(conv(h, params["w2"], params["b2"]), 0.0),
                params["bn2_gamma"], params["bn2_beta"],
                params["bn2_mean"], params["bn2_var"]))
    h = jnp.maximum(conv(h, params["w3"], params["b3"]), 0.0)
    return h.reshape(-1, C) @ params["wl"].T + params["bl"]


# --------------------------------- main -------------------------------------- #
if __name__ == "__main__":
    B, L, VOCAB = 2, 96, 30  # L=96 -> conv/pool stack leaves L3=5 positions
    key = jax.random.PRNGKey(0)
    pkey, tkey = jax.random.split(key)
    params = init_params(pkey, VOCAB)
    tokens = jax.random.randint(tkey, (B, L), 0, VOCAB + 2, dtype=jnp.int32)

    out = jax.block_until_ready(cnn_forward(tokens, params))
    ref = jax.block_until_ready(ref_forward(tokens, params))

    assert out.shape == ref.shape, (out.shape, ref.shape)
    assert bool(jnp.allclose(out, ref, atol=2e-2, rtol=2e-2)), "mismatch vs reference"
    print("KERNEL_OK")
</pallas_src>

<mosaic_0001>
module attributes {stable_mosaic.version = 11 : i64} {
  func.func @cnn_fused_kernel(%arg0: memref<84x650xbf16, #tpu.memory_space<vmem>>, %arg1: memref<84x650xbf16, #tpu.memory_space<vmem>>, %arg2: memref<650x50xbf16, #tpu.memory_space<vmem>>, %arg3: memref<1x50xf32, #tpu.memory_space<vmem>>, %arg4: memref<1x50xf32, #tpu.memory_space<vmem>>, %arg5: memref<1x50xf32, #tpu.memory_space<vmem>>, %arg6: memref<13x50x50xbf16, #tpu.memory_space<vmem>>, %arg7: memref<1x50xf32, #tpu.memory_space<vmem>>, %arg8: memref<1x50xf32, #tpu.memory_space<vmem>>, %arg9: memref<1x50xf32, #tpu.memory_space<vmem>>, %arg10: memref<11x50x50xbf16, #tpu.memory_space<vmem>>, %arg11: memref<1x50xf32, #tpu.memory_space<vmem>>, %arg12: memref<36x72xbf16, #tpu.memory_space<vmem>>, %arg13: memref<36x72xbf16, #tpu.memory_space<vmem>>, %arg14: memref<5x50x128xbf16, #tpu.memory_space<vmem>>, %arg15: memref<1x128xf32, #tpu.memory_space<vmem>>, %arg16: memref<2x128xf32, #tpu.memory_space<vmem>>) attributes {dimension_semantics = [], scalar_prefetch = 0 : i64, scratch_operands = 0 : i64, tpu.core_type = #tpu.core_type<tc>} {
    %c0 = arith.constant 0 : index
    %c0_0 = arith.constant 0 : index
    %0 = vector.load %arg0[%c0, %c0_0] : memref<84x650xbf16, #tpu.memory_space<vmem>>, vector<84x650xbf16>
    %c0_1 = arith.constant 0 : index
    %c0_2 = arith.constant 0 : index
    %1 = vector.load %arg2[%c0_1, %c0_2] : memref<650x50xbf16, #tpu.memory_space<vmem>>, vector<650x50xbf16>
    %cst = arith.constant dense<0.000000e+00> : vector<84x50xf32>
    %2 = tpu.matmul %0, %1, %cst {dimension_numbers = #tpu.dot_dimension_numbers<[1], [0], [0], [1], [0, 0, 1, 1], [], []>} : vector<84x650xbf16>, vector<650x50xbf16>, vector<84x50xf32> -> vector<84x50xf32>
    %c0_3 = arith.constant 0 : index
    %c0_4 = arith.constant 0 : index
    %3 = vector.load %arg3[%c0_3, %c0_4] : memref<1x50xf32, #tpu.memory_space<vmem>>, vector<1x50xf32>
    %4 = vector.broadcast %3 : vector<1x50xf32> to vector<84x50xf32>
    %5 = arith.addf %2, %4 : vector<84x50xf32>
    %cst_5 = arith.constant 0.000000e+00 : f32
    %6 = vector.broadcast %cst_5 : f32 to vector<84x50xf32>
    %7 = arith.maximumf %5, %6 : vector<84x50xf32>
    %c0_6 = arith.constant 0 : index
    %c0_7 = arith.constant 0 : index
    %8 = vector.load %arg4[%c0_6, %c0_7] : memref<1x50xf32, #tpu.memory_space<vmem>>, vector<1x50xf32>
    %9 = vector.broadcast %8 : vector<1x50xf32> to vector<84x50xf32>
    %10 = arith.mulf %7, %9 : vector<84x50xf32>
    %c0_8 = arith.constant 0 : index
    %c0_9 = arith.constant 0 : index
    %11 = vector.load %arg5[%c0_8, %c0_9] : memref<1x50xf32, #tpu.memory_space<vmem>>, vector<1x50xf32>
    %12 = vector.broadcast %11 : vector<1x50xf32> to vector<84x50xf32>
    %13 = arith.addf %10, %12 : vector<84x50xf32>
    %c0_10 = arith.constant 0 : index
    %c0_11 = arith.constant 0 : index
    %14 = vector.load %arg1[%c0_10, %c0_11] : memref<84x650xbf16, #tpu.memory_space<vmem>>, vector<84x650xbf16>
    %c0_12 = arith.constant 0 : index
    %c0_13 = arith.constant 0 : index
    %15 = vector.load %arg2[%c0_12, %c0_13] : memref<650x50xbf16, #tpu.memory_space<vmem>>, vector<650x50xbf16>
    %cst_14 = arith.constant dense<0.000000e+00> : vector<84x50xf32>
    %16 = tpu.matmul %14, %15, %cst_14 {dimension_numbers = #tpu.dot_dimension_numbers<[1], [0], [0], [1], [0, 0, 1, 1], [], []>} : vector<84x650xbf16>, vector<650x50xbf16>, vector<84x50xf32> -> vector<84x50xf32>
    %c0_15 = arith.constant 0 : index
    %c0_16 = arith.constant 0 : index
    %17 = vector.load %arg3[%c0_15, %c0_16] : memref<1x50xf32, #tpu.memory_space<vmem>>, vector<1x50xf32>
    %18 = vector.broadcast %17 : vector<1x50xf32> to vector<84x50xf32>
    %19 = arith.addf %16, %18 : vector<84x50xf32>
    %cst_17 = arith.constant 0.000000e+00 : f32
    %20 = vector.broadcast %cst_17 : f32 to vector<84x50xf32>
    %21 = arith.maximumf %19, %20 : vector<84x50xf32>
    %c0_18 = arith.constant 0 : index
    %c0_19 = arith.constant 0 : index
    %22 = vector.load %arg4[%c0_18, %c0_19] : memref<1x50xf32, #tpu.memory_space<vmem>>, vector<1x50xf32>
    %23 = vector.broadcast %22 : vector<1x50xf32> to vector<84x50xf32>
    %24 = arith.mulf %21, %23 : vector<84x50xf32>
    %c0_20 = arith.constant 0 : index
    %c0_21 = arith.constant 0 : index
    %25 = vector.load %arg5[%c0_20, %c0_21] : memref<1x50xf32, #tpu.memory_space<vmem>>, vector<1x50xf32>
    %26 = vector.broadcast %25 : vector<1x50xf32> to vector<84x50xf32>
    %27 = arith.addf %24, %26 : vector<84x50xf32>
    %28 = arith.maximumf %13, %27 : vector<84x50xf32>
    %29 = arith.truncf %28 : vector<84x50xf32> to vector<84x50xbf16>
    %30 = vector.extract_strided_slice %29 {offsets = [0, 0], sizes = [72, 50], strides = [1, 1]} : vector<84x50xbf16> to vector<72x50xbf16>
    %c0_22 = arith.constant 0 : index
    %c0_23 = arith.constant 0 : index
    %c0_24 = arith.constant 0 : index
    %31 = vector.load %arg6[%c0_22, %c0_23, %c0_24] : memref<13x50x50xbf16, #tpu.memory_space<vmem>>, vector<1x50x50xbf16>
    %32 = vector.shape_cast %31 : vector<1x50x50xbf16> to vector<50x50xbf16>
    %cst_25 = arith.constant dense<0.000000e+00> : vector<72x50xf32>
    %33 = tpu.matmul %30, %32, %cst_25 {dimension_numbers = #tpu.dot_dimension_numbers<[1], [0], [0], [1], [0, 0, 1, 1], [], []>} : vector<72x50xbf16>, vector<50x50xbf16>, vector<72x50xf32> -> vector<72x50xf32>
    %34 = vector.extract_strided_slice %29 {offsets = [1, 0], sizes = [72, 50], strides = [1, 1]} : vector<84x50xbf16> to vector<72x50xbf16>
    %c1 = arith.constant 1 : index
    %c0_26 = arith.constant 0 : index
    %c0_27 = arith.constant 0 : index
    %35 = vector.load %arg6[%c1, %c0_26, %c0_27] : memref<13x50x50xbf16, #tpu.memory_space<vmem>>, vector<1x50x50xbf16>
    %36 = vector.shape_cast %35 : vector<1x50x50xbf16> to vector<50x50xbf16>
    %cst_28 = arith.constant dense<0.000000e+00> : vector<72x50xf32>
    %37 = tpu.matmul %34, %36, %cst_28 {dimension_numbers = #tpu.dot_dimension_numbers<[1], [0], [0], [1], [0, 0, 1, 1], [], []>} : vector<72x50xbf16>, vector<50x50xbf16>, vector<72x50xf32> -> vector<72x50xf32>
    %38 = arith.addf %33, %37 : vector<72x50xf32>
    %39 = vector.extract_strided_slice %29 {offsets = [2, 0], sizes = [72, 50], strides = [1, 1]} : vector<84x50xbf16> to vector<72x50xbf16>
    %c2 = arith.constant 2 : index
    %c0_29 = arith.constant 0 : index
    %c0_30 = arith.constant 0 : index
    %40 = vector.load %arg6[%c2, %c0_29, %c0_30] : memref<13x50x50xbf16, #tpu.memory_space<vmem>>, vector<1x50x50xbf16>
    %41 = vector.shape_cast %40 : vector<1x50x50xbf16> to vector<50x50xbf16>
    %cst_31 = arith.constant dense<0.000000e+00> : vector<72x50xf32>
    %42 = tpu.matmul %39, %41, %cst_31 {dimension_numbers = #tpu.dot_dimension_numbers<[1], [0], [0], [1], [0, 0, 1, 1], [], []>} : vector<72x50xbf16>, vector<50x50xbf16>, vector<72x50xf32> -> vector<72x50xf32>
    %43 = arith.addf %38, %42 : vector<72x50xf32>
    %44 = vector.extract_strided_slice %29 {offsets = [3, 0], sizes = [72, 50], strides = [1, 1]} : vector<84x50xbf16> to vector<72x50xbf16>
    %c3 = arith.constant 3 : index
    %c0_32 = arith.constant 0 : index
    %c0_33 = arith.constant 0 : index
    %45 = vector.load %arg6[%c3, %c0_32, %c0_33] : memref<13x50x50xbf16, #tpu.memory_space<vmem>>, vector<1x50x50xbf16>
    %46 = vector.shape_cast %45 : vector<1x50x50xbf16> to vector<50x50xbf16>
    %cst_34 = arith.constant dense<0.000000e+00> : vector<72x50xf32>
    %47 = tpu.matmul %44, %46, %cst_34 {dimension_numbers = #tpu.dot_dimension_numbers<[1], [0], [0], [1], [0, 0, 1, 1], [], []>} : vector<72x50xbf16>, vector<50x50xbf16>, vector<72x50xf32> -> vector<72x50xf32>
    %48 = arith.addf %43, %47 : vector<72x50xf32>
    %49 = vector.extract_strided_slice %29 {offsets = [4, 0], sizes = [72, 50], strides = [1, 1]} : vector<84x50xbf16> to vector<72x50xbf16>
    %c4 = arith.constant 4 : index
    %c0_35 = arith.constant 0 : index
    %c0_36 = arith.constant 0 : index
    %50 = vector.load %arg6[%c4, %c0_35, %c0_36] : memref<13x50x50xbf16, #tpu.memory_space<vmem>>, vector<1x50x50xbf16>
    %51 = vector.shape_cast %50 : vector<1x50x50xbf16> to vector<50x50xbf16>
    %cst_37 = arith.constant dense<0.000000e+00> : vector<72x50xf32>
    %52 = tpu.matmul %49, %51, %cst_37 {dimension_numbers = #tpu.dot_dimension_numbers<[1], [0], [0], [1], [0, 0, 1, 1], [], []>} : vector<72x50xbf16>, vector<50x50xbf16>, vector<72x50xf32> -> vector<72x50xf32>
    %53 = arith.addf %48, %52 : vector<72x50xf32>
    %54 = vector.extract_strided_slice %29 {offsets = [5, 0], sizes = [72, 50], strides = [1, 1]} : vector<84x50xbf16> to vector<72x50xbf16>
    %c5 = arith.constant 5 : index
    %c0_38 = arith.constant 0 : index
    %c0_39 = arith.constant 0 : index
    %55 = vector.load %arg6[%c5, %c0_38, %c0_39] : memref<13x50x50xbf16, #tpu.memory_space<vmem>>, vector<1x50x50xbf16>
    %56 = vector.shape_cast %55 : vector<1x50x50xbf16> to vector<50x50xbf16>
    %cst_40 = arith.constant dense<0.000000e+00> : vector<72x50xf32>
    %57 = tpu.matmul %54, %56, %cst_40 {dimension_numbers = #tpu.dot_dimension_numbers<[1], [0], [0], [1], [0, 0, 1, 1], [], []>} : vector<72x50xbf16>, vector<50x50xbf16>, vector<72x50xf32> -> vector<72x50xf32>
    %58 = arith.addf %53, %57 : vector<72x50xf32>
    %59 = vector.extract_strided_slice %29 {offsets = [6, 0], sizes = [72, 50], strides = [1, 1]} : vector<84x50xbf16> to vector<72x50xbf16>
    %c6 = arith.constant 6 : index
    %c0_41 = arith.constant 0 : index
    %c0_42 = arith.constant 0 : index
    %60 = vector.load %arg6[%c6, %c0_41, %c0_42] : memref<13x50x50xbf16, #tpu.memory_space<vmem>>, vector<1x50x50xbf16>
    %61 = vector.shape_cast %60 : vector<1x50x50xbf16> to vector<50x50xbf16>
    %cst_43 = arith.constant dense<0.000000e+00> : vector<72x50xf32>
    %62 = tpu.matmul %59, %61, %cst_43 {dimension_numbers = #tpu.dot_dimension_numbers<[1], [0], [0], [1], [0, 0, 1, 1], [], []>} : vector<72x50xbf16>, vector<50x50xbf16>, vector<72x50xf32> -> vector<72x50xf32>
    %63 = arith.addf %58, %62 : vector<72x50xf32>
    %64 = vector.extract_strided_slice %29 {offsets = [7, 0], sizes = [72, 50], strides = [1, 1]} : vector<84x50xbf16> to vector<72x50xbf16>
    %c7 = arith.constant 7 : index
    %c0_44 = arith.constant 0 : index
    %c0_45 = arith.constant 0 : index
    %65 = vector.load %arg6[%c7, %c0_44, %c0_45] : memref<13x50x50xbf16, #tpu.memory_space<vmem>>, vector<1x50x50xbf16>
    %66 = vector.shape_cast %65 : vector<1x50x50xbf16> to vector<50x50xbf16>
    %cst_46 = arith.constant dense<0.000000e+00> : vector<72x50xf32>
    %67 = tpu.matmul %64, %66, %cst_46 {dimension_numbers = #tpu.dot_dimension_numbers<[1], [0], [0], [1], [0, 0, 1, 1], [], []>} : vector<72x50xbf16>, vector<50x50xbf16>, vector<72x50xf32> -> vector<72x50xf32>
    %68 = arith.addf %63, %67 : vector<72x50xf32>
    %69 = vector.extract_strided_slice %29 {offsets = [8, 0], sizes = [72, 50], strides = [1, 1]} : vector<84x50xbf16> to vector<72x50xbf16>
    %c8 = arith.constant 8 : index
    %c0_47 = arith.constant 0 : index
    %c0_48 = arith.constant 0 : index
    %70 = vector.load %arg6[%c8, %c0_47, %c0_48] : memref<13x50x50xbf16, #tpu.memory_space<vmem>>, vector<1x50x50xbf16>
    %71 = vector.shape_cast %70 : vector<1x50x50xbf16> to vector<50x50xbf16>
    %cst_49 = arith.constant dense<0.000000e+00> : vector<72x50xf32>
    %72 = tpu.matmul %69, %71, %cst_49 {dimension_numbers = #tpu.dot_dimension_numbers<[1], [0], [0], [1], [0, 0, 1, 1], [], []>} : vector<72x50xbf16>, vector<50x50xbf16>, vector<72x50xf32> -> vector<72x50xf32>
    %73 = arith.addf %68, %72 : vector<72x50xf32>
    %74 = vector.extract_strided_slice %29 {offsets = [9, 0], sizes = [72, 50], strides = [1, 1]} : vector<84x50xbf16> to vector<72x50xbf16>
    %c9 = arith.constant 9 : index
    %c0_50 = arith.constant 0 : index
    %c0_51 = arith.constant 0 : index
    %75 = vector.load %arg6[%c9, %c0_50, %c0_51] : memref<13x50x50xbf16, #tpu.memory_space<vmem>>, vector<1x50x50xbf16>
    %76 = vector.shape_cast %75 : vector<1x50x50xbf16> to vector<50x50xbf16>
    %cst_52 = arith.constant dense<0.000000e+00> : vector<72x50xf32>
    %77 = tpu.matmul %74, %76, %cst_52 {dimension_numbers = #tpu.dot_dimension_numbers<[1], [0], [0], [1], [0, 0, 1, 1], [], []>} : vector<72x50xbf16>, vector<50x50xbf16>, vector<72x50xf32> -> vector<72x50xf32>
    %78 = arith.addf %73, %77 : vector<72x50xf32>
    %79 = vector.extract_strided_slice %29 {offsets = [10, 0], sizes = [72, 50], strides = [1, 1]} : vector<84x50xbf16> to vector<72x50xbf16>
    %c10 = arith.constant 10 : index
    %c0_53 = arith.constant 0 : index
    %c0_54 = arith.constant 0 : index
    %80 = vector.load %arg6[%c10, %c0_53, %c0_54] : memref<13x50x50xbf16, #tpu.memory_space<vmem>>, vector<1x50x50xbf16>
    %81 = vector.shape_cast %80 : vector<1x50x50xbf16> to vector<50x50xbf16>
    %cst_55 = arith.constant dense<0.000000e+00> : vector<72x50xf32>
    %82 = tpu.matmul %79, %81, %cst_55 {dimension_numbers = #tpu.dot_dimension_numbers<[1], [0], [0], [1], [0, 0, 1, 1], [], []>} : vector<72x50xbf16>, vector<50x50xbf16>, vector<72x50xf32> -> vector<72x50xf32>
    %83 = arith.addf %78, %82 : vector<72x50xf32>
    %84 = vector.extract_strided_slice %29 {offsets = [11, 0], sizes = [72, 50], strides = [1, 1]} : vector<84x50xbf16> to vector<72x50xbf16>
    %c11 = arith.constant 11 : index
    %c0_56 = arith.constant 0 : index
    %c0_57 = arith.constant 0 : index
    %85 = vector.load %arg6[%c11, %c0_56, %c0_57] : memref<13x50x50xbf16, #tpu.memory_space<vmem>>, vector<1x50x50xbf16>
    %86 = vector.shape_cast %85 : vector<1x50x50xbf16> to vector<50x50xbf16>
    %cst_58 = arith.constant dense<0.000000e+00> : vector<72x50xf32>
    %87 = tpu.matmul %84, %86, %cst_58 {dimension_numbers = #tpu.dot_dimension_numbers<[1], [0], [0], [1], [0, 0, 1, 1], [], []>} : vector<72x50xbf16>, vector<50x50xbf16>, vector<72x50xf32> -> vector<72x50xf32>
    %88 = arith.addf %83, %87 : vector<72x50xf32>
    %89 = vector.extract_strided_slice %29 {offsets = [12, 0], sizes = [72, 50], strides = [1, 1]} : vector<84x50xbf16> to vector<72x50xbf16>
    %c12 = arith.constant 12 : index
    %c0_59 = arith.constant 0 : index
    %c0_60 = arith.constant 0 : index
    %90 = vector.load %arg6[%c12, %c0_59, %c0_60] : memref<13x50x50xbf16, #tpu.memory_space<vmem>>, vector<1x50x50xbf16>
    %91 = vector.shape_cast %90 : vector<1x50x50xbf16> to vector<50x50xbf16>
    %cst_61 = arith.constant dense<0.000000e+00> : vector<72x50xf32>
    %92 = tpu.matmul %89, %91, %cst_61 {dimension_numbers = #tpu.dot_dimension_numbers<[1], [0], [0], [1], [0, 0, 1, 1], [], []>} : vector<72x50xbf16>, vector<50x50xbf16>, vector<72x50xf32> -> vector<72x50xf32>
    %93 = arith.addf %88, %92 : vector<72x50xf32>
    %c0_62 = arith.constant 0 : index
    %c0_63 = arith.constant 0 : index
    %94 = vector.load %arg7[%c0_62, %c0_63] : memref<1x50xf32, #tpu.memory_space<vmem>>, vector<1x50xf32>
    %95 = vector.broadcast %94 : vector<1x50xf32> to vector<72x50xf32>
    %96 = arith.addf %93, %95 : vector<72x50xf32>
    %cst_64 = arith.constant 0.000000e+00 : f32
    %97 = vector.broadcast %cst_64 : f32 to vector<72x50xf32>
    %98 = arith.maximumf %96, %97 : vector<72x50xf32>
    %c0_65 = arith.constant 0 : index
    %c0_66 = arith.constant 0 : index
    %99 = vector.load %arg8[%c0_65, %c0_66] : memref<1x50xf32, #tpu.memory_space<vmem>>, vector<1x50xf32>
    %100 = vector.broadcast %99 : vector<1x50xf32> to vector<72x50xf32>
    %101 = arith.mulf %98, %100 : vector<72x50xf32>
    %c0_67 = arith.constant 0 : index
    %c0_68 = arith.constant 0 : index
    %102 = vector.load %arg9[%c0_67, %c0_68] : memref<1x50xf32, #tpu.memory_space<vmem>>, vector<1x50xf32>
    %103 = vector.broadcast %102 : vector<1x50xf32> to vector<72x50xf32>
    %104 = arith.addf %101, %103 : vector<72x50xf32>
    %105 = arith.truncf %104 : vector<72x50xf32> to vector<72x50xbf16>
    %c0_69 = arith.constant 0 : index
    %c0_70 = arith.constant 0 : index
    %106 = vector.load %arg12[%c0_69, %c0_70] : memref<36x72xbf16, #tpu.memory_space<vmem>>, vector<36x72xbf16>
    %cst_71 = arith.constant dense<0.000000e+00> : vector<36x50xf32>
    %107 = tpu.matmul %106, %105, %cst_71 {dimension_numbers = #tpu.dot_dimension_numbers<[1], [0], [0], [1], [0, 0, 1, 1], [], []>} : vector<36x72xbf16>, vector<72x50xbf16>, vector<36x50xf32> -> vector<36x50xf32>
    %c0_72 = arith.constant 0 : index
    %c0_73 = arith.constant 0 : index
    %108 = vector.load %arg13[%c0_72, %c0_73] : memref<36x72xbf16, #tpu.memory_space<vmem>>, vector<36x72xbf16>
    %cst_74 = arith.constant dense<0.000000e+00> : vector<36x50xf32>
    %109 = tpu.matmul %108, %105, %cst_74 {dimension_numbers = #tpu.dot_dimension_numbers<[1], [0], [0], [1], [0, 0, 1, 1], [], []>} : vector<36x72xbf16>, vector<72x50xbf16>, vector<36x50xf32> -> vector<36x50xf32>
    %110 = arith.maximumf %107, %109 : vector<36x50xf32>
    %111 = arith.truncf %110 : vector<36x50xf32> to vector<36x50xbf16>
    %112 = vector.extract_strided_slice %111 {offsets = [0, 0], sizes = [26, 50], strides = [1, 1]} : vector<36x50xbf16> to vector<26x50xbf16>
    %c0_75 = arith.constant 0 : index
    %c0_76 = arith.constant 0 : index
    %c0_77 = arith.constant 0 : index
    %113 = vector.load %arg10[%c0_75, %c0_76, %c0_77] : memref<11x50x50xbf16, #tpu.memory_space<vmem>>, vector<1x50x50xbf16>
    %114 = vector.shape_cast %113 : vector<1x50x50xbf16> to vector<50x50xbf16>
    %cst_78 = arith.constant dense<0.000000e+00> : vector<26x50xf32>
    %115 = tpu.matmul %112, %114, %cst_78 {dimension_numbers = #tpu.dot_dimension_numbers<[1], [0], [0], [1], [0, 0, 1, 1], [], []>} : vector<26x50xbf16>, vector<50x50xbf16>, vector<26x50xf32> -> vector<26x50xf32>
    %116 = vector.extract_strided_slice %111 {offsets = [1, 0], sizes = [26, 50], strides = [1, 1]} : vector<36x50xbf16> to vector<26x50xbf16>
    %c1_79 = arith.constant 1 : index
    %c0_80 = arith.constant 0 : index
    %c0_81 = arith.constant 0 : index
    %117 = vector.load %arg10[%c1_79, %c0_80, %c0_81] : memref<11x50x50xbf16, #tpu.memory_space<vmem>>, vector<1x50x50xbf16>
    %118 = vector.shape_cast %117 : vector<1x50x50xbf16> to vector<50x50xbf16>
    %cst_82 = arith.constant dense<0.000000e+00> : vector<26x50xf32>
    %119 = tpu.matmul %116, %118, %cst_82 {dimension_numbers = #tpu.dot_dimension_numbers<[1], [0], [0], [1], [0, 0, 1, 1], [], []>} : vector<26x50xbf16>, vector<50x50xbf16>, vector<26x50xf32> -> vector<26x50xf32>
    %120 = arith.addf %115, %119 : vector<26x50xf32>
    %121 = vector.extract_strided_slice %111 {offsets = [2, 0], sizes = [26, 50], strides = [1, 1]} : vector<36x50xbf16> to vector<26x50xbf16>
    %c2_83 = arith.constant 2 : index
    %c0_84 = arith.constant 0 : index
    %c0_85 = arith.constant 0 : index
    %122 = vector.load %arg10[%c2_83, %c0_84, %c0_85] : memref<11x50x50xbf16, #tpu.memory_space<vmem>>, vector<1x50x50xbf16>
    %123 = vector.shape_cast %122 : vector<1x50x50xbf16> to vector<50x50xbf16>
    %cst_86 = arith.constant dense<0.000000e+00> : vector<26x50xf32>
    %124 = tpu.matmul %121, %123, %cst_86 {dimension_numbers = #tpu.dot_dimension_numbers<[1], [0], [0], [1], [0, 0, 1, 1], [], []>} : vector<26x50xbf16>, vector<50x50xbf16>, vector<26x50xf32> -> vector<26x50xf32>
    %125 = arith.addf %120, %124 : vector<26x50xf32>
    %126 = vector.extract_strided_slice %111 {offsets = [3, 0], sizes = [26, 50], strides = [1, 1]} : vector<36x50xbf16> to vector<26x50xbf16>
    %c3_87 = arith.constant 3 : index
    %c0_88 = arith.constant 0 : index
    %c0_89 = arith.constant 0 : index
    %127 = vector.load %arg10[%c3_87, %c0_88, %c0_89] : memref<11x50x50xbf16, #tpu.memory_space<vmem>>, vector<1x50x50xbf16>
    %128 = vector.shape_cast %127 : vector<1x50x50xbf16> to vector<50x50xbf16>
    %cst_90 = arith.constant dense<0.000000e+00> : vector<26x50xf32>
    %129 = tpu.matmul %126, %128, %cst_90 {dimension_numbers = #tpu.dot_dimension_numbers<[1], [0], [0], [1], [0, 0, 1, 1], [], []>} : vector<26x50xbf16>, vector<50x50xbf16>, vector<26x50xf32> -> vector<26x50xf32>
    %130 = arith.addf %125, %129 : vector<26x50xf32>
    %131 = vector.extract_strided_slice %111 {offsets = [4, 0], sizes = [26, 50], strides = [1, 1]} : vector<36x50xbf16> to vector<26x50xbf16>
    %c4_91 = arith.constant 4 : index
    %c0_92 = arith.constant 0 : index
    %c0_93 = arith.constant 0 : index
    %132 = vector.load %arg10[%c4_91, %c0_92, %c0_93] : memref<11x50x50xbf16, #tpu.memory_space<vmem>>, vector<1x50x50xbf16>
    %133 = vector.shape_cast %132 : vector<1x50x50xbf16> to vector<50x50xbf16>
    %cst_94 = arith.constant dense<0.000000e+00> : vector<26x50xf32>
    %134 = tpu.matmul %131, %133, %cst_94 {dimension_numbers = #tpu.dot_dimension_numbers<[1], [0], [0], [1], [0, 0, 1, 1], [], []>} : vector<26x50xbf16>, vector<50x50xbf16>, vector<26x50xf32> -> vector<26x50xf32>
    %135 = arith.addf %130, %134 : vector<26x50xf32>
    %136 = vector.extract_strided_slice %111 {offsets = [5, 0], sizes = [26, 50], strides = [1, 1]} : vector<36x50xbf16> to vector<26x50xbf16>
    %c5_95 = arith.constant 5 : index
    %c0_96 = arith.constant 0 : index
    %c0_97 = arith.constant 0 : index
    %137 = vector.load %arg10[%c5_95, %c0_96, %c0_97] : memref<11x50x50xbf16, #tpu.memory_space<vmem>>, vector<1x50x50xbf16>
    %138 = vector.shape_cast %137 : vector<1x50x50xbf16> to vector<50x50xbf16>
    %cst_98 = arith.constant dense<0.000000e+00> : vector<26x50xf32>
    %139 = tpu.matmul %136, %138, %cst_98 {dimension_numbers = #tpu.dot_dimension_numbers<[1], [0], [0], [1], [0, 0, 1, 1], [], []>} : vector<26x50xbf16>, vector<50x50xbf16>, vector<26x50xf32> -> vector<26x50xf32>
    %140 = arith.addf %135, %139 : vector<26x50xf32>
    %141 = vector.extract_strided_slice %111 {offsets = [6, 0], sizes = [26, 50], strides = [1, 1]} : vector<36x50xbf16> to vector<26x50xbf16>
    %c6_99 = arith.constant 6 : index
    %c0_100 = arith.constant 0 : index
    %c0_101 = arith.constant 0 : index
    %142 = vector.load %arg10[%c6_99, %c0_100, %c0_101] : memref<11x50x50xbf16, #tpu.memory_space<vmem>>, vector<1x50x50xbf16>
    %143 = vector.shape_cast %142 : vector<1x50x50xbf16> to vector<50x50xbf16>
    %cst_102 = arith.constant dense<0.000000e+00> : vector<26x50xf32>
    %144 = tpu.matmul %141, %143, %cst_102 {dimension_numbers = #tpu.dot_dimension_numbers<[1], [0], [0], [1], [0, 0, 1, 1], [], []>} : vector<26x50xbf16>, vector<50x50xbf16>, vector<26x50xf32> -> vector<26x50xf32>
    %145 = arith.addf %140, %144 : vector<26x50xf32>
    %146 = vector.extract_strided_slice %111 {offsets = [7, 0], sizes = [26, 50], strides = [1, 1]} : vector<36x50xbf16> to vector<26x50xbf16>
    %c7_103 = arith.constant 7 : index
    %c0_104 = arith.constant 0 : index
    %c0_105 = arith.constant 0 : index
    %147 = vector.load %arg10[%c7_103, %c0_104, %c0_105] : memref<11x50x50xbf16, #tpu.memory_space<vmem>>, vector<1x50x50xbf16>
    %148 = vector.shape_cast %147 : vector<1x50x50xbf16> to vector<50x50xbf16>
    %cst_106 = arith.constant dense<0.000000e+00> : vector<26x50xf32>
    %149 = tpu.matmul %146, %148, %cst_106 {dimension_numbers = #tpu.dot_dimension_numbers<[1], [0], [0], [1], [0, 0, 1, 1], [], []>} : vector<26x50xbf16>, vector<50x50xbf16>, vector<26x50xf32> -> vector<26x50xf32>
    %150 = arith.addf %145, %149 : vector<26x50xf32>
    %151 = vector.extract_strided_slice %111 {offsets = [8, 0], sizes = [26, 50], strides = [1, 1]} : vector<36x50xbf16> to vector<26x50xbf16>
    %c8_107 = arith.constant 8 : index
    %c0_108 = arith.constant 0 : index
    %c0_109 = arith.constant 0 : index
    %152 = vector.load %arg10[%c8_107, %c0_108, %c0_109] : memref<11x50x50xbf16, #tpu.memory_space<vmem>>, vector<1x50x50xbf16>
    %153 = vector.shape_cast %152 : vector<1x50x50xbf16> to vector<50x50xbf16>
    %cst_110 = arith.constant dense<0.000000e+00> : vector<26x50xf32>
    %154 = tpu.matmul %151, %153, %cst_110 {dimension_numbers = #tpu.dot_dimension_numbers<[1], [0], [0], [1], [0, 0, 1, 1], [], []>} : vector<26x50xbf16>, vector<50x50xbf16>, vector<26x50xf32> -> vector<26x50xf32>
    %155 = arith.addf %150, %154 : vector<26x50xf32>
    %156 = vector.extract_strided_slice %111 {offsets = [9, 0], sizes = [26, 50], strides = [1, 1]} : vector<36x50xbf16> to vector<26x50xbf16>
    %c9_111 = arith.constant 9 : index
    %c0_112 = arith.constant 0 : index
    %c0_113 = arith.constant 0 : index
    %157 = vector.load %arg10[%c9_111, %c0_112, %c0_113] : memref<11x50x50xbf16, #tpu.memory_space<vmem>>, vector<1x50x50xbf16>
    %158 = vector.shape_cast %157 : vector<1x50x50xbf16> to vector<50x50xbf16>
    %cst_114 = arith.constant dense<0.000000e+00> : vector<26x50xf32>
    %159 = tpu.matmul %156, %158, %cst_114 {dimension_numbers = #tpu.dot_dimension_numbers<[1], [0], [0], [1], [0, 0, 1, 1], [], []>} : vector<26x50xbf16>, vector<50x50xbf16>, vector<26x50xf32> -> vector<26x50xf32>
    %160 = arith.addf %155, %159 : vector<26x50xf32>
    %161 = vector.extract_strided_slice %111 {offsets = [10, 0], sizes = [26, 50], strides = [1, 1]} : vector<36x50xbf16> to vector<26x50xbf16>
    %c10_115 = arith.constant 10 : index
    %c0_116 = arith.constant 0 : index
    %c0_117 = arith.constant 0 : index
    %162 = vector.load %arg10[%c10_115, %c0_116, %c0_117] : memref<11x50x50xbf16, #tpu.memory_space<vmem>>, vector<1x50x50xbf16>
    %163 = vector.shape_cast %162 : vector<1x50x50xbf16> to vector<50x50xbf16>
    %cst_118 = arith.constant dense<0.000000e+00> : vector<26x50xf32>
    %164 = tpu.matmul %161, %163, %cst_118 {dimension_numbers = #tpu.dot_dimension_numbers<[1], [0], [0], [1], [0, 0, 1, 1], [], []>} : vector<26x50xbf16>, vector<50x50xbf16>, vector<26x50xf32> -> vector<26x50xf32>
    %165 = arith.addf %160, %164 : vector<26x50xf32>
    %c0_119 = arith.constant 0 : index
    %c0_120 = arith.constant 0 : index
    %166 = vector.load %arg11[%c0_119, %c0_120] : memref<1x50xf32, #tpu.memory_space<vmem>>, vector<1x50xf32>
    %167 = vector.broadcast %166 : vector<1x50xf32> to vector<26x50xf32>
    %168 = arith.addf %165, %167 : vector<26x50xf32>
    %cst_121 = arith.constant 0.000000e+00 : f32
    %169 = vector.broadcast %cst_121 : f32 to vector<26x50xf32>
    %170 = arith.maximumf %168, %169 : vector<26x50xf32>
    %171 = arith.truncf %170 : vector<26x50xf32> to vector<26x50xbf16>
    %172 = vector.extract_strided_slice %171 {offsets = [0, 0], sizes = [22, 50], strides = [1, 1]} : vector<26x50xbf16> to vector<22x50xbf16>
    %c0_122 = arith.constant 0 : index
    %c0_123 = arith.constant 0 : index
    %c0_124 = arith.constant 0 : index
    %173 = vector.load %arg14[%c0_122, %c0_123, %c0_124] : memref<5x50x128xbf16, #tpu.memory_space<vmem>>, vector<1x50x128xbf16>
    %174 = vector.shape_cast %173 : vector<1x50x128xbf16> to vector<50x128xbf16>
    %cst_125 = arith.constant dense<0.000000e+00> : vector<22x128xf32>
    %175 = tpu.matmul %172, %174, %cst_125 {dimension_numbers = #tpu.dot_dimension_numbers<[1], [0], [0], [1], [0, 0, 1, 1], [], []>} : vector<22x50xbf16>, vector<50x128xbf16>, vector<22x128xf32> -> vector<22x128xf32>
    %176 = vector.extract_strided_slice %171 {offsets = [1, 0], sizes = [22, 50], strides = [1, 1]} : vector<26x50xbf16> to vector<22x50xbf16>
    %c1_126 = arith.constant 1 : index
    %c0_127 = arith.constant 0 : index
    %c0_128 = arith.constant 0 : index
    %177 = vector.load %arg14[%c1_126, %c0_127, %c0_128] : memref<5x50x128xbf16, #tpu.memory_space<vmem>>, vector<1x50x128xbf16>
    %178 = vector.shape_cast %177 : vector<1x50x128xbf16> to vector<50x128xbf16>
    %cst_129 = arith.constant dense<0.000000e+00> : vector<22x128xf32>
    %179 = tpu.matmul %176, %178, %cst_129 {dimension_numbers = #tpu.dot_dimension_numbers<[1], [0], [0], [1], [0, 0, 1, 1], [], []>} : vector<22x50xbf16>, vector<50x128xbf16>, vector<22x128xf32> -> vector<22x128xf32>
    %180 = arith.addf %175, %179 : vector<22x128xf32>
    %181 = vector.extract_strided_slice %171 {offsets = [2, 0], sizes = [22, 50], strides = [1, 1]} : vector<26x50xbf16> to vector<22x50xbf16>
    %c2_130 = arith.constant 2 : index
    %c0_131 = arith.constant 0 : index
    %c0_132 = arith.constant 0 : index
    %182 = vector.load %arg14[%c2_130, %c0_131, %c0_132] : memref<5x50x128xbf16, #tpu.memory_space<vmem>>, vector<1x50x128xbf16>
    %183 = vector.shape_cast %182 : vector<1x50x128xbf16> to vector<50x128xbf16>
    %cst_133 = arith.constant dense<0.000000e+00> : vector<22x128xf32>
    %184 = tpu.matmul %181, %183, %cst_133 {dimension_numbers = #tpu.dot_dimension_numbers<[1], [0], [0], [1], [0, 0, 1, 1], [], []>} : vector<22x50xbf16>, vector<50x128xbf16>, vector<22x128xf32> -> vector<22x128xf32>
    %185 = arith.addf %180, %184 : vector<22x128xf32>
    %186 = vector.extract_strided_slice %171 {offsets = [3, 0], sizes = [22, 50], strides = [1, 1]} : vector<26x50xbf16> to vector<22x50xbf16>
    %c3_134 = arith.constant 3 : index
    %c0_135 = arith.constant 0 : index
    %c0_136 = arith.constant 0 : index
    %187 = vector.load %arg14[%c3_134, %c0_135, %c0_136] : memref<5x50x128xbf16, #tpu.memory_space<vmem>>, vector<1x50x128xbf16>
    %188 = vector.shape_cast %187 : vector<1x50x128xbf16> to vector<50x128xbf16>
    %cst_137 = arith.constant dense<0.000000e+00> : vector<22x128xf32>
    %189 = tpu.matmul %186, %188, %cst_137 {dimension_numbers = #tpu.dot_dimension_numbers<[1], [0], [0], [1], [0, 0, 1, 1], [], []>} : vector<22x50xbf16>, vector<50x128xbf16>, vector<22x128xf32> -> vector<22x128xf32>
    %190 = arith.addf %185, %189 : vector<22x128xf32>
    %191 = vector.extract_strided_slice %171 {offsets = [4, 0], sizes = [22, 50], strides = [1, 1]} : vector<26x50xbf16> to vector<22x50xbf16>
    %c4_138 = arith.constant 4 : index
    %c0_139 = arith.constant 0 : index
    %c0_140 = arith.constant 0 : index
    %192 = vector.load %arg14[%c4_138, %c0_139, %c0_140] : memref<5x50x128xbf16, #tpu.memory_space<vmem>>, vector<1x50x128xbf16>
    %193 = vector.shape_cast %192 : vector<1x50x128xbf16> to vector<50x128xbf16>
    %cst_141 = arith.constant dense<0.000000e+00> : vector<22x128xf32>
    %194 = tpu.matmul %191, %193, %cst_141 {dimension_numbers = #tpu.dot_dimension_numbers<[1], [0], [0], [1], [0, 0, 1, 1], [], []>} : vector<22x50xbf16>, vector<50x128xbf16>, vector<22x128xf32> -> vector<22x128xf32>
    %195 = arith.addf %190, %194 : vector<22x128xf32>
    %196 = vector.extract_strided_slice %195 {offsets = [0, 0], sizes = [1, 128], strides = [1, 1]} : vector<22x128xf32> to vector<1x128xf32>
    %197 = vector.extract_strided_slice %195 {offsets = [21, 0], sizes = [1, 128], strides = [1, 1]} : vector<22x128xf32> to vector<1x128xf32>
    %198 = tpu.concatenate %196, %197 in 0 : vector<1x128xf32>, vector<1x128xf32> -> vector<2x128xf32>
    %c0_142 = arith.constant 0 : index
    %c0_143 = arith.constant 0 : index
    %199 = vector.load %arg15[%c0_142, %c0_143] : memref<1x128xf32, #tpu.memory_space<vmem>>, vector<1x128xf32>
    %200 = vector.broadcast %199 : vector<1x128xf32> to vector<2x128xf32>
    %201 = arith.addf %198, %200 : vector<2x128xf32>
    %c0_144 = arith.constant 0 : index
    %c0_145 = arith.constant 0 : index
    %202 = vector.load %arg16[%c0_144, %c0_145] : memref<2x128xf32, #tpu.memory_space<vmem>>, vector<2x128xf32>
    tpu.vector_store %arg16[%c0_144, %c0_145], %201 {strides = array<i32>} : memref<2x128xf32, #tpu.memory_space<vmem>>, vector<2x128xf32>,
    return
  }
}

</mosaic_0001>

<bundles_post_ra>
// kernel: tpu_custom_call.1
= control target key start
LH: loop header
LB: loop body
LE: loop exit
PB: predicated region body
PF: predicated region fallthrough
CT: control target
= control target key end

     0   :  { %s9131_s0 = inlined_call_operand.hbm [shape: bf16[84,650], index: 0, kind: input, shape index: {}]   ;;  %s9132_s1 = inlined_call_operand.hbm [shape: bf16[84,650], index: 1, kind: input, shape index: {}]   ;;  %s9133_s2 = inlined_call_operand.vmem [shape: bf16[650,50], index: 2, kind: input, shape index: {}]   ;;  %s9134_s3 = inlined_call_operand.vmem [shape: f32[1,50], index: 3, kind: input, shape index: {}]   ;;  %s9135_s4 = inlined_call_operand.vmem [shape: f32[1,50], index: 4, kind: input, shape index: {}]   ;;  %s9136_s5 = inlined_call_operand.hbm [shape: f32[1,50], index: 5, kind: input, shape index: {}]   ;;  %s9137_s6 = inlined_call_operand.vmem [shape: bf16[13,50,50], index: 6, kind: input, shape index: {}]   ;;  %s9138_s7 = inlined_call_operand.hbm [shape: f32[1,50], index: 7, kind: input, shape index: {}]   ;;  %s9139_s8 = inlined_call_operand.hbm [shape: f32[1,50], index: 8, kind: input, shape index: {}]   ;;  %s9140_s9 = inlined_call_operand.hbm [shape: f32[1,50], index: 9, kind: input, shape index: {}]   ;;  %s9141_s10 = inlined_call_operand.hbm [shape: bf16[11,50,50], index: 10, kind: input, shape index: {}]   ;;  %s9142_s11 = inlined_call_operand.vmem [shape: f32[1,50], index: 11, kind: input, shape index: {}]   ;;  %s9143_s12 = inlined_call_operand.vmem [shape: bf16[36,72], index: 12, kind: input, shape index: {}]   ;;  %s9144_s13 = inlined_call_operand.hbm [shape: bf16[36,72], index: 13, kind: input, shape index: {}]   ;;  %s9145_s14 = inlined_call_operand.vmem [shape: bf16[5,50,128], index: 14, kind: input, shape index: {}]   ;;  %s9146_s15 = inlined_call_operand.vmem [shape: f32[1,128], index: 15, kind: input, shape index: {}]   ;;  %s9147_s16 = inlined_call_operand.hbm [shape: f32[2,128], index: 16, kind: output, shape index: {}]  }
   0x1   :  { %9155 = sst [smem:[#allocation23_spill]] %s9131_s0 }
   0x2   :  { %21 = vsyncpa [#allocation3], 0 }
   0x3   :  { %22 = vsyncpa [#allocation6], 0 }
   0x4   :  { %23 = vsyncpa [#allocation9], 0 }
   0x5   :  { %24 = vsyncpa [#allocation12], 0 }
   0x6   :  { %25 = vsyncpa [#allocation15], 0 }
   0x7   :  { %26 = vsyncpa [#allocation4], 0  ;;  %s7251_s21 = smov [#allocation5]   ;;  %s7252_s23 = smov [#allocation8]  }
   0x8   :  { %s44_s22 = sshll.u32 %s7251_s21, 4  ;;  %s75_s24 = sshll.u32 %s7252_s23, 4  ;;  %s45_s22 = int_to_ptr.vmem [resolvable:$true] %s44_s22  ;;  %s7352_s24 = int_to_ptr.vmem [resolvable:$true] %s75_s24 }
   0x9   :  { %s7041_s27 = scalar_lea.hbm %s9132_s1, 4224 }
   0xa   :  { %p7042_p0 = scmp.ne.s32.totalorder %s9132_s1, %s7041_s27  ;;  %p7045_p1 = scmp.lt.u32.totalorder %s7041_s27, %s9132_s1 }
   0xc   :  { %p7047_p2 = pnand %p7045_p1, %p7042_p0 }
   0xe   :  { %7050 = shalt.err (!%p7047_p2)
}
   0xf   :  { %s7051_s17 = scalar_lea.vmem %s45_s22, 4224  ;;  %p7056_p4 = scmp.lt.s32.totalorder %s45_s22, %s45_s22 }
  0x10   :  { %p7052_p3 = scmp.ne.s32.totalorder %s45_s22, %s7051_s17  ;;  %p7057_p5 = scmp.lt.s32.totalorder %s7051_s17, %s7051_s17 }
  0x12   :  { %p7058_p6 = por %p7057_p5, %p7056_p4 }
  0x14   :  { %p7059_p7 = pnand %p7058_p6, %p7052_p3 }
  0x16   :  { %7062 = shalt.err (!%p7059_p7)
}
  0x17   :  { %s7253_s18 = smov 384   ;;  %s7254_s19 = smov 24  }
  0x18   :  { %50 = dma.hbm_to_vmem [thread:$0]  %s9132_s1, 4224, %s45_s22, [#allocation6], %s7253_s18, %s7253_s18, %s7254_s19  }
  0x19   :  { %s7063_s26 = scalar_lea.hbm %s9138_s7, 16 }
  0x1a   :  { %p7064_p8 = scmp.ne.s32.totalorder %s9138_s7, %s7063_s26  ;;  %p7067_p9 = scmp.lt.u32.totalorder %s7063_s26, %s9138_s7 }
  0x1c   :  { %p7069_p10 = pnand %p7067_p9, %p7064_p8 }
  0x1e   :  { %7072 = shalt.err (!%p7069_p10)
}
  0x1f   :  { %s7073_s0 = scalar_lea.vmem %s7352_s24, 16  ;;  %s7077_s1 = scalar_lea.vmem %s7352_s24, 32 }
  0x20   :  { %p7074_p11 = scmp.ne.s32.totalorder %s7352_s24, %s7073_s0  ;;  %p7078_p12 = scmp.lt.s32.totalorder %s7352_s24, %s7352_s24 }
  0x21   :  { %p7079_p13 = scmp.lt.s32.totalorder %s7077_s1, %s7073_s0 }
  0x23   :  { %p7080_p0 = por %p7079_p13, %p7078_p12 }
  0x25   :  { %p7081_p1 = pnand %p7080_p0, %p7074_p11 }
  0x27   :  { %7084 = shalt.err (!%p7081_p1)
}
  0x28   :  { %78 = dma.hbm_to_vmem [thread:$0]  %s9138_s7, 16, %s7352_s24, [#allocation9]  }
  0x29   :  { %s7255_s20 = smov [#allocation11]   ;;  %s7256_s23 = smov [#allocation2]  }
  0x2a   :  { %s95_s21 = sshll.u32 %s7255_s20, 4  ;;  %s32_s25 = sshll.u32 %s7256_s23, 4  ;;  %s96_s21 = int_to_ptr.vmem [resolvable:$true] %s95_s21  ;;  %s7387_s25 = int_to_ptr.vmem [resolvable:$true] %s32_s25 }
  0x2b   :  { %s7085_s28 = scalar_lea.hbm %s9140_s9, 16 }
  0x2c   :  { %p7086_p2 = scmp.ne.s32.totalorder %s9140_s9, %s7085_s28  ;;  %p7089_p3 = scmp.lt.u32.totalorder %s7085_s28, %s9140_s9 }
  0x2e   :  { %p7091_p4 = pnand %p7089_p3, %p7086_p2 }
  0x30   :  { %7094 = shalt.err (!%p7091_p4)
}
  0x31   :  { %s7095_s7 = scalar_lea.vmem %s96_s21, 16  ;;  %s7099_s24 = scalar_lea.vmem %s96_s21, 32 }
  0x32   :  { %p7096_p5 = scmp.ne.s32.totalorder %s96_s21, %s7095_s7  ;;  %p7100_p6 = scmp.lt.s32.totalorder %s96_s21, %s96_s21 }
  0x33   :  { %p7101_p7 = scmp.lt.s32.totalorder %s7099_s24, %s7095_s7 }
  0x35   :  { %p7102_p8 = por %p7101_p7, %p7100_p6 }
  0x37   :  { %p7103_p9 = pnand %p7102_p8, %p7096_p5 }
  0x39   :  { %7106 = shalt.err (!%p7103_p9)
}
  0x3a   :  { %98 = dma.hbm_to_vmem [thread:$0]  %s9140_s9, 16, %s96_s21, [#allocation12]  }
  0x3b   :  { %s9156_s26 = sld [smem:[#allocation23_spill]] }
  0x41   :  { %s7107_s27 = scalar_lea.hbm %s9156_s26, 4224 }
  0x42   :  { %p7108_p10 = scmp.ne.s32.totalorder %s9156_s26, %s7107_s27  ;;  %p7111_p11 = scmp.lt.u32.totalorder %s7107_s27, %s9156_s26 }
  0x44   :  { %p7113_p12 = pnand %p7111_p11, %p7108_p10 }
  0x46   :  { %7116 = shalt.err (!%p7113_p12)
}
  0x47   :  { %s7117_s1 = scalar_lea.vmem %s7387_s25, 4224  ;;  %p7122_p0 = scmp.lt.s32.totalorder %s7387_s25, %s7387_s25 }
  0x48   :  { %p7118_p13 = scmp.ne.s32.totalorder %s7387_s25, %s7117_s1  ;;  %p7123_p1 = scmp.lt.s32.totalorder %s7117_s1, %s7117_s1 }
  0x4a   :  { %p7124_p2 = por %p7123_p1, %p7122_p0 }
  0x4c   :  { %p7125_p3 = pnand %p7124_p2, %p7118_p13 }
  0x4e   :  { %7128 = shalt.err (!%p7125_p3)
}
  0x4f   :  { %38 = dma.hbm_to_vmem [thread:$0]  %s9156_s26, 4224, %s7387_s25, [#allocation3], %s7253_s18, %s7253_s18, %s7254_s19  }
  0x50   :  { %s7257_s7 = smov [#allocation7]   ;;  %s7258_s22 = smov [#allocation10]  }
  0x51   :  { %s63_s24 = sshll.u32 %s7257_s7, 4  ;;  %s85_s17 = sshll.u32 %s7258_s22, 4  ;;  %s64_s24 = int_to_ptr.vmem [resolvable:$true] %s63_s24  ;;  %s86_s17 = int_to_ptr.vmem [resolvable:$true] %s85_s17 }
  0x52   :  { %s7129_s27 = scalar_lea.hbm %s9136_s5, 16 }
  0x53   :  { %p7130_p4 = scmp.ne.s32.totalorder %s9136_s5, %s7129_s27  ;;  %p7133_p5 = scmp.lt.u32.totalorder %s7129_s27, %s9136_s5 }
  0x55   :  { %p7135_p6 = pnand %p7133_p5, %p7130_p4 }
  0x57   :  { %7138 = shalt.err (!%p7135_p6)
}
  0x58   :  { %s7139_s18 = scalar_lea.vmem %s64_s24, 16  ;;  %s7143_s19 = scalar_lea.vmem %s64_s24, 32 }
  0x59   :  { %p7140_p7 = scmp.ne.s32.totalorder %s64_s24, %s7139_s18  ;;  %p7144_p8 = scmp.lt.s32.totalorder %s64_s24, %s64_s24 }
  0x5a   :  { %p7145_p9 = scmp.lt.s32.totalorder %s7143_s19, %s7139_s18 }
  0x5c   :  { %p7146_p10 = por %p7145_p9, %p7144_p8 }
  0x5e   :  { %p7147_p11 = pnand %p7146_p10, %p7140_p7 }
  0x60   :  { %7150 = shalt.err (!%p7147_p11)
}
  0x61   :  { %66 = dma.hbm_to_vmem [thread:$0]  %s9136_s5, 16, %s64_s24, [#allocation6]  }
  0x62   :  { %s7151_s21 = scalar_lea.hbm %s9139_s8, 16 }
  0x63   :  { %p7152_p12 = scmp.ne.s32.totalorder %s9139_s8, %s7151_s21  ;;  %p7155_p13 = scmp.lt.u32.totalorder %s7151_s21, %s9139_s8 }
  0x65   :  { %p7157_p0 = pnand %p7155_p13, %p7152_p12 }
  0x67   :  { %7160 = shalt.err (!%p7157_p0)
}
  0x68   :  { %s7161_s27 = scalar_lea.vmem %s86_s17, 16  ;;  %s7165_s29 = scalar_lea.vmem %s86_s17, 32 }
  0x69   :  { %p7162_p1 = scmp.ne.s32.totalorder %s86_s17, %s7161_s27  ;;  %p7166_p2 = scmp.lt.s32.totalorder %s86_s17, %s86_s17 }
  0x6a   :  { %p7167_p3 = scmp.lt.s32.totalorder %s7165_s29, %s7161_s27 }
  0x6c   :  { %p7168_p4 = por %p7167_p3, %p7166_p2 }
  0x6e   :  { %p7169_p5 = pnand %p7168_p4, %p7162_p1 }
  0x70   :  { %7172 = shalt.err (!%p7169_p5)
}
  0x71   :  { %88 = dma.hbm_to_vmem [thread:$0]  %s9139_s8, 16, %s86_s17, [#allocation9]  }
  0x72   :  { %s7259_s28 = smov [#allocation13]   ;;  %s7173_s19 = scalar_lea.hbm %s9141_s10, 4928 }
  0x73   :  { %s104_s30 = sshll.u32 %s7259_s28, 4  ;;  %p7174_p6 = scmp.ne.s32.totalorder %s9141_s10, %s7173_s19  ;;  %s105_s30 = int_to_ptr.vmem [resolvable:$true] %s104_s30 }
  0x74   :  { %p7177_p7 = scmp.lt.u32.totalorder %s7173_s19, %s9141_s10 }
  0x76   :  { %p7179_p8 = pnand %p7177_p7, %p7174_p6 }
  0x78   :  { %7182 = shalt.err (!%p7179_p8)
}
  0x79   :  { %s7183_s21 = scalar_lea.vmem %s105_s30, 4928  ;;  %p7188_p10 = scmp.lt.s32.totalorder %s105_s30, %s105_s30 }
  0x7a   :  { %p7184_p9 = scmp.ne.s32.totalorder %s105_s30, %s7183_s21  ;;  %p7189_p11 = scmp.lt.s32.totalorder %s7183_s21, %s7183_s21 }
  0x7c   :  { %p7190_p12 = por %p7189_p11, %p7188_p10 }
  0x7e   :  { %p7191_p13 = pnand %p7190_p12, %p7184_p9 }
  0x80   :  { %7194 = shalt.err (!%p7191_p13)
}
  0x81   :  { %s7260_s8 = smov 64   ;;  %s7261_s17 = smov 4  }
  0x82   :  { %110 = dma.hbm_to_vmem [thread:$0]  %s9141_s10, 4928, %s105_s30, [#allocation12], %s7260_s8, %s7260_s8, %s7261_s17  }
  0x83   :  { %s7262_s20 = smov [#allocation14]   ;;  %s7195_s5 = scalar_lea.hbm %s9144_s13, 320 }
  0x84   :  { %s120_s23 = sshll.u32 %s7262_s20, 4  ;;  %p7196_p0 = scmp.ne.s32.totalorder %s9144_s13, %s7195_s5  ;;  %s121_s23 = int_to_ptr.vmem [resolvable:$true] %s120_s23 }
  0x85   :  { %p7199_p1 = scmp.lt.u32.totalorder %s7195_s5, %s9144_s13 }
  0x87   :  { %p7201_p2 = pnand %p7199_p1, %p7196_p0 }
  0x89   :  { %7204 = shalt.err (!%p7201_p2)
}
  0x8a   :  { %s7205_s19 = scalar_lea.vmem %s121_s23, 320  ;;  %p7210_p4 = scmp.lt.s32.totalorder %s121_s23, %s121_s23 }
  0x8b   :  { %p7206_p3 = scmp.ne.s32.totalorder %s121_s23, %s7205_s19  ;;  %p7211_p5 = scmp.lt.s32.totalorder %s7205_s19, %s7205_s19 }
  0x8d   :  { %p7212_p6 = por %p7211_p5, %p7210_p4 }
  0x8f   :  { %p7213_p7 = pnand %p7212_p6, %p7206_p3 }
  0x91   :  { %7216 = shalt.err (!%p7213_p7)
}
  0x92   :  { %126 = dma.hbm_to_vmem [thread:$0]  %s9144_s13, 320, %s121_s23, [#allocation15], %s7260_s8, %s7260_s8, %s7261_s17  }
  0x93   :  { %7239 = dma.done.wait [#allocation3], 4224  }
  0x94   :  { %7240 = vsyncadd [#allocation3], 4294963072 }
  0x95   :  { %7241 = dma.done.wait [#allocation6], 4240  }
  0x96   :  { %7242 = vsyncadd [#allocation6], 4294963056 }
  0x97   :  { %7243 = dma.done.wait [#allocation9], 32  }
  0x98   :  { %7244 = vsyncadd [#allocation9], 4294967264 }
  0x99   :  { %7245 = dma.done.wait [#allocation12], 4944  }
  0x9a   :  { %7246 = vsyncadd [#allocation12], 4294962352 }
  0x9b   :  { %7247 = dma.done.wait [#allocation15], 320  }
  0x9c   :  { %7248 = vsyncadd [#allocation15], 4294966976  ;;  %v7263_v0 = vmov 0   ;;  %v7473_v1 = vld [vmem:[%s9133_s2 + $0x40] sm:$0xff]   ;;  %v7484_v3 = vld [vmem:[%s9133_s2 + $0x48] sm:$0xff]   ;;  %vm688_vm0 = vcmask 80896  }
  0x9d   :  { %871 = vmatprep.subr.bf16.mxu0 %v7263_v0  ;;  %v7478_v2 = vld [vmem:[%s9133_s2] sm:$0xff]   ;;  %5651 = vmatprep.subr.bf16.mxu1 %v7473_v1  ;;  %v7490_v4 = vld [vmem:[%s9133_s2 + $0x8] sm:$0xff]   ;;  %v7496_v5 = vld [vmem:[%s9133_s2 + $0x50] sm:$0xff]   ;;  %vm707_vm1 = vcmask 1044480   ;;  %vm1596_vm2 = vcmask 1040384   ;;  %vm7265_vm3 = vmmov 0  }
  0x9e   :  { %5652 = vmatpush3.bf16.msra.mxu1 %v7478_v2  ;;  %v7502_v6 = vld [vmem:[%s9133_s2 + $0x10] sm:$0xff]   ;;  %v7508_v7 = vld [vmem:[%s9133_s2 + $0x58] sm:$0xff]   ;;  %v7520_v9 = vld [vmem:[%s9133_s2 + $0x60] sm:$0xff]   ;;  %vm1580_vm4 = vcmask 408576   ;;  %vm1791_vm5 = vcmask 1046528   ;;  %vm2077_vm7 = vcmask 1045504  }
  0x9f   :  { %5653 = vmatprep.subr.bf16.mxu1 %v7484_v3  ;;  %v7514_v8 = vld [vmem:[%s9133_s2 + $0x18] sm:$0xff]   ;;  %v7526_v10 = vld [vmem:[%s9133_s2 + $0x20] sm:$0xff]   ;;  %v7532_v11 = vld [vmem:[%s9133_s2 + $0x68] sm:$0xff]   ;;  %vm1519_vm6 = vsmask.f32 7424  ;;  %vm2649_vm11 = vcmask 1043456  }
  0xa0   :  { %v6794_v12 = vld [vmem:[#allocation2 + $0x4] ss:$24 sps:$4 sm:$0xff]   ;;  %v7538_v13 = vld [vmem:[%s9133_s2 + $0x28] sm:$0xff]   ;;  %v7544_v14 = vld [vmem:[%s9133_s2 + $0x70] sm:$0xff]   ;;  %vm1929_vm8 = vsmask.f32 6400 }
  0xa1   :  { %743 = vmatprep.mubr.bf16.mxu1 %v6794_v12  ;;  %v7550_v15 = vld [vmem:[%s9133_s2 + $0x30] sm:$0xff]   ;;  %v7556_v16 = vld [vmem:[%s9133_s2 + $0x78] sm:$0xff]   ;;  %v7561_v17 = vld [vmem:[%s9133_s2 + $0x100] sm:$0xff]   ;;  %vm2215_vm9 = vsmask.f32 5376  ;;  %vm2941_vm14 = vcmask 1042432  }
  0xa2   :  { %5654 = vmatpush3.bf16.msra.mxu1 %v7490_v4  ;;  %v7566_v18 = vld [vmem:[%s9133_s2 + $0x38] sm:$0xff]   ;;  %872 = vmatpush1.bf16.msra.mxu0 %v7561_v17  ;;  %v7574_v19 = vld [vmem:[%s9133_s2 + $0x108] sm:$0xff]   ;;  %v7580_v21 = vld [vmem:[%s9133_s2 + $0xc0] sm:$0xff]   ;;  %vm2501_vm10 = vsmask.f32 4352  ;;  %vm3235_vm15 = vcmask 1041408  }
  0xa3   :  { %5655 = vmatprep.subr.bf16.mxu1 %v7496_v5  ;;  %873 = vmatprep.subr.bf16.mxu0 %v7263_v0  ;;  %v6792_v20 = vld [vmem:[#allocation2] ss:$24 sps:$4 sm:$0xff]   ;;  %v7591_v23 = vld [vmem:[%s9133_s2 + $0x110] sm:$0xff]   ;;  %v7599_v25 = vld [vmem:[%s9133_s2 + $0xc8] sm:$0xff]   ;;  %vm2787_vm12 = vsmask.f32 3328 }
  0xa4   :  { %v7585_v22 = vld [vmem:[%s9133_s2 + $0x80] sm:$0xff]   ;;  %v6797_v24 = vld [vmem:[#allocation2 + $0x34] ss:$24 sps:$4 sm:$0xff]   ;;  %v7605_v26 = vld [vmem:[%s9133_s2 + $0x118] sm:$0xff]   ;;  %vm3081_vm13 = vsmask.f32 2304 }
  0xa5   :  { %v7611_v27 = vld [vmem:[%s9133_s2 + $0x88] sm:$0xff]   ;;  %v7617_v28 = vld [vmem:[%s9133_s2 + $0xd0] sm:$0xff]   ;;  %v6802_v30 = vld [vmem:[#allocation2 + $0x64] ss:$24 sps:$4 sm:$0xff]   ;;  %s7266_s0 = smov [#allocation16]  }
  0xa6   :  { %5656 = vmatpush3.bf16.msra.mxu1 %v7502_v6  ;;  %874 = vmatpush1.bf16.msra.mxu0 %v7574_v19  ;;  %v6799_v29 = vld [vmem:[#allocation2 + $0x30] ss:$24 sps:$4 sm:$0xff]   ;;  %v7624_v31 = vld [vmem:[%s9133_s2 + $0x120] sm:$0xff]   ;;  %v7637_v33 = vld [vmem:[%s9133_s2 + $0xd8] sm:$0xff]   ;;  %s5168_s18 = sshll.u32 %s7266_s0, 4  ;;  %s5169_s18 = int_to_ptr.vmem [resolvable:$true] %s5168_s18 }
  0xa7   :  { %5657 = vmatprep.subr.bf16.mxu1 %v7508_v7  ;;  %875 = vmatprep.subr.bf16.mxu0 %v7263_v0  ;;  %v7630_v32 = vld [vmem:[%s9133_s2 + $0x90] sm:$0xff]   ;;  %v7643_v34 = vld [vmem:[%s9133_s2 + $0x128] sm:$0xff]   ;;  %v7649_v35 = vld [vmem:[%s9133_s2 + $0x98] sm:$0xff]   ;;  %p7222_p9 = scmp.lt.s32.totalorder %s5169_s18, %s5169_s18 }
  0xa8   :  { %v6805_v36 = vld [vmem:[#allocation2 + $0x60] ss:$24 sps:$4 sm:$0xff]   ;;  %v6809_v38 = vld [vmem:[#allocation2 + $0x94] ss:$24 sps:$4 sm:$0xff]   ;;  %v6813_v47 = vld [vmem:[#allocation2 + $0x90] ss:$24 sps:$4 sm:$0xff]  }
  0xa9   :  { %v7655_v37 = vld [vmem:[%s9133_s2 + $0xe0] sm:$0xff]   ;;  %v7662_v39 = vld [vmem:[%s9133_s2 + $0x130] sm:$0xff]   ;;  %v7675_v41 = vld [vmem:[%s9133_s2 + $0xe8] sm:$0xff]  }
  0xaa   :  { %5658 = vmatpush3.bf16.msra.mxu1 %v7514_v8  ;;  %876 = vmatpush1.bf16.msra.mxu0 %v7591_v23  ;;  %v7668_v40 = vld [vmem:[%s9133_s2 + $0xa0] sm:$0xff]   ;;  %v7681_v42 = vld [vmem:[%s9133_s2 + $0x138] sm:$0xff]   ;;  %v6839_v43 = vld [vmem:[#allocation2 + $0x14] ss:$24 sps:$4 sm:$0xff]  }
  0xab   :  { %5659 = vmatprep.subr.bf16.mxu1 %v7520_v9  ;;  %877 = vmatprep.subr.bf16.mxu0 %v7263_v0  ;;  %v6824_v44 = vld [vmem:[%s9133_s2 + $0xa8] sm:$0xff]   ;;  %v6836_v45 = vld [vmem:[%s9133_s2 + $0x140] sm:$0x1f]   ;;  %v6828_v46 = vld [vmem:[%s9133_s2 + $0xf0] sm:$0xff]  }
  0xac   :  { %5259 = vmatprep.mubr.msk.bf16.mxu0 %vm688_vm0, %v6839_v43  ;;  %v6818_v48 = vld [vmem:[#allocation2 + $0xc4] ss:$24 sps:$4 sm:$0xff]   ;;  %v6829_v49 = vld [vmem:[%s9133_s2 + $0xb0] sm:$0xff]   ;;  %v7702_v50 = vsel %vm707_vm1, %v6836_v45, 0  ;;  %v6821_v56 = vld [vmem:[#allocation2 + $0xc0] ss:$24 sps:$4 sm:$0xff]  }
  0xad   :  { %v6831_v51 = vld [vmem:[%s9133_s2 + $0xf8] sm:$0xff]   ;;  %v6837_v52 = vld [vmem:[#allocation2 + $0x10] ss:$24 sps:$4 sm:$0xff]   ;;  %v6849_v59 = vld [vmem:[#allocation2 + $0x74] ss:$24 sps:$4 sm:$0xff]  }
  0xae   :  { %5660 = vmatpush3.bf16.msra.mxu1 %v7526_v10  ;;  %878 = vmatpush1.bf16.msra.mxu0 %v7605_v26  ;;  %v6843_v53 = vld [vmem:[#allocation2 + $0x44] ss:$24 sps:$4 sm:$0xff]   ;;  %v186_v55 = vld [vmem:[#allocation2 + $0xf0] sm:$0x33]  ;;  %v6845_v58 = vld [vmem:[#allocation2 + $0x40] ss:$24 sps:$4 sm:$0xff]  }
  0xaf   :  { %5661 = vmatprep.subr.bf16.mxu1 %v7532_v11  ;;  %879 = vmatprep.subr.bf16.mxu0 %v7263_v0  ;;  %v6832_v54 = vld [vmem:[%s9133_s2 + $0xb8] sm:$0xff]   ;;  %v5213_v57 = vcombine.high %v186_v55, %v186_v55  ;;  %v5212_v60 = vcombine.low %v186_v55, %v186_v55  ;;  %v6835_v61 = vld [vmem:[#allocation2 + $0xc] ss:$24 sps:$4 sm:$0xff]   ;;  %v6851_v62 = vld [vmem:[#allocation2 + $0x70] ss:$24 sps:$4 sm:$0xff]  }
  0xb0   :  { %v6855_v63 = vld [vmem:[#allocation2 + $0xa4] ss:$24 sps:$4 sm:$0xff]  }
  0xb1   :  { %v6840_v12 = vld [vmem:[#allocation2 + $0x3c] ss:$24 sps:$4 sm:$0xff]  }
  0xb2   :  { %5662 = vmatpush3.bf16.msra.mxu1 %v7538_v13  ;;  %880 = vmatpush1.bf16.msra.mxu0 %v7624_v31 }
  0xb3   :  { %5663 = vmatprep.subr.bf16.mxu1 %v7544_v14  ;;  %881 = vmatprep.subr.bf16.mxu0 %v7263_v0 }
  0xb6   :  { %5664 = vmatpush3.bf16.msra.mxu1 %v7550_v15  ;;  %882 = vmatpush1.bf16.msra.mxu0 %v7643_v34 }
  0xb7   :  { %5665 = vmatprep.subr.bf16.mxu1 %v7556_v16  ;;  %883 = vmatprep.subr.bf16.mxu0 %v7263_v0 }
  0xba   :  { %5666 = vmatpush3.bf16.msra.mxu1 %v7566_v18  ;;  %884 = vmatpush1.bf16.msra.mxu0 %v7662_v39 }
  0xbb   :  { %5703 = vmatprep.subr.bf16.mxu1 %v7580_v21  ;;  %885 = vmatprep.subr.bf16.mxu0 %v7263_v0 }
  0xbd   :  { %744 = vmatmul.mubr.bf16.vlgmr.msra.gmra.mrb[0].mxu1 %v6792_v20  ;;  %v6857_v20 = vld [vmem:[#allocation2 + $0xa0] ss:$24 sps:$4 sm:$0xff]  }
  0xbe   :  { %5704 = vmatpush3.bf16.msra.mxu1 %v7585_v22  ;;  %751 = vmatprep.mubr.bf16.mxu1 %v6797_v24  ;;  %v6846_v24 = vld [vmem:[#allocation2 + $0x6c] ss:$24 sps:$4 sm:$0xff]  }
  0xbf   :  { %5705 = vmatprep.subr.bf16.mxu1 %v7599_v25  ;;  %886 = vmatpush1.bf16.msra.mxu0 %v7681_v42 }
  0xc0   :  { %887 = vmatprep.subr.bf16.mxu0 %v7263_v0 }
  0xc2   :  { %5706 = vmatpush3.bf16.msra.mxu1 %v7611_v27 }
  0xc3   :  { %5707 = vmatprep.subr.bf16.mxu1 %v7617_v28  ;;  %888 = vmatpush1.bf16.msra.mxu0 %v7702_v50 }
  0xc4   :  { %5807 = vmatprep.subr.bf16.mxu0 %v7580_v21  ;;  %v6861_v21 = vld [vmem:[#allocation2 + $0xd4] ss:$24 sps:$4 sm:$0xff]  }
  0xc5   :  { %752 = vmatmul.mubr.bf16.gmra.mrb[4].mxu1 %v6799_v29 }
  0xc6   :  { %759 = vmatprep.mubr.bf16.mxu1 %v6802_v30  ;;  %5708 = vmatpush3.bf16.msra.mxu1 %v7630_v32  ;;  %v6860_v30 = vld [vmem:[#allocation2 + $0xc8] ss:$24 sps:$4 sm:$0xff]  }
  0xc7   :  { %5709 = vmatprep.subr.bf16.mxu1 %v7637_v33  ;;  %904 = vmatmul.mubr.bf16.vlgmr.msra.gmra.mrb[0].mxu0 %v6837_v52  ;;  %v6914_v52 = vld [vmem:[#allocation5 + $0xd4] ss:$24 sps:$4 sm:$0xff]  }
  0xc8   :  { %5260 = vmatprep.mubr.msk.bf16.mxu0 %vm688_vm0, %v6843_v53  ;;  %5808 = vmatpush3.bf16.msra.mxu0 %v7585_v22  ;;  %v6842_v22 = vld [vmem:[#allocation2 + $0x38] ss:$24 sps:$4 sm:$0xff]   ;;  %v1030_v53 = vld [vmem:[#allocation5 + $0x100] sm:$0x33] }
  0xc9   :  { %5809 = vmatprep.subr.bf16.mxu0 %v7599_v25  ;;  %v188_v25 = vld [vmem:[#allocation2 + $0x100] sm:$0x33]  ;;  %v5302_v55 = vcombine.high %v1030_v53, %v1030_v53 }
  0xca   :  { %5710 = vmatpush3.bf16.msra.mxu1 %v7649_v35  ;;  %v5216_v29 = vcombine.low %v188_v25, %v188_v25 }
  0xcb   :  { %5711 = vmatprep.subr.bf16.mxu1 %v7655_v37 }
  0xcc   :  { %5810 = vmatpush3.bf16.msra.mxu0 %v7611_v27  ;;  %v6863_v27 = vld [vmem:[#allocation2 + $0xd0] ss:$24 sps:$4 sm:$0xff]  }
  0xcd   :  { %760 = vmatmul.mubr.bf16.gmra.mrb[8].mxu1 %v6805_v36  ;;  %5811 = vmatprep.subr.bf16.mxu0 %v7617_v28  ;;  %v5217_v28 = vcombine.high %v188_v25, %v188_v25  ;;  %v6891_v36 = vld [vmem:[#allocation5 + $0x98] ss:$24 sps:$4 sm:$0xff]  }
  0xce   :  { %767 = vmatprep.mubr.bf16.mxu1 %v6809_v38  ;;  %5712 = vmatpush3.bf16.msra.mxu1 %v7668_v40  ;;  %v6880_v38 = vld [vmem:[#allocation5 + $0x64] ss:$24 sps:$4 sm:$0xff]  }
  0xcf   :  { %5713 = vmatprep.subr.bf16.mxu1 %v7675_v41  ;;  %912 = vmatmul.mubr.bf16.gmra.mrb[4].mxu0 %v6845_v58 }
  0xd0   :  { %5261 = vmatprep.mubr.msk.bf16.mxu0 %vm688_vm0, %v6849_v59  ;;  %5812 = vmatpush3.bf16.msra.mxu0 %v7630_v32 }
  0xd1   :  { %5813 = vmatprep.subr.bf16.mxu0 %v7637_v33  ;;  %v6885_v33 = vld [vmem:[#allocation5 + $0x68] ss:$24 sps:$4 sm:$0xff]  }
  0xd2   :  { %5714 = vmatpush3.bf16.msra.mxu1 %v6824_v44 }
  0xd3   :  { %5715 = vmatprep.subr.bf16.mxu1 %v6828_v46 }
  0xd4   :  { %5814 = vmatpush3.bf16.msra.mxu0 %v7649_v35  ;;  %v6874_v35 = vld [vmem:[#allocation5 + $0x34] ss:$24 sps:$4 sm:$0xff]  }
  0xd5   :  { %768 = vmatmul.mubr.bf16.gmra.mrb[12].mxu1 %v6813_v47  ;;  %5815 = vmatprep.subr.bf16.mxu0 %v7655_v37  ;;  %v6876_v37 = vld [vmem:[#allocation5 + $0x30] ss:$24 sps:$4 sm:$0xff]  }
  0xd6   :  { %775 = vmatprep.mubr.bf16.mxu1 %v6818_v48  ;;  %5716 = vmatpush3.bf16.msra.mxu1 %v6829_v49  ;;  %v6902_v48 = vld [vmem:[#allocation5 + $0x10] ss:$24 sps:$4 sm:$0xff]  }
  0xd7   :  { %5717 = vmatprep.subr.bf16.mxu1 %v6831_v51  ;;  %920 = vmatmul.mubr.bf16.gmra.mrb[8].mxu0 %v6851_v62 }
  0xd8   :  { %5262 = vmatprep.mubr.msk.bf16.mxu0 %vm688_vm0, %v6855_v63  ;;  %5816 = vmatpush3.bf16.msra.mxu0 %v7668_v40  ;;  %v1029_v40 = vld [vmem:[#allocation5 + $0xf8] sm:$0x33] }
  0xd9   :  { %5817 = vmatprep.subr.bf16.mxu0 %v7675_v41  ;;  %v6897_v41 = vld [vmem:[#allocation5 + $0xc8] ss:$24 sps:$4 sm:$0xff]   ;;  %v5300_v43 = vcombine.high %v1029_v40, %v1029_v40  ;;  %v5299_v45 = vcombine.low %v1029_v40, %v1029_v40  ;;  %v6919_v63 = vld [vmem:[%s9137_s6 + $0x1c] sm:$0xff]  }
  0xda   :  { %5718 = vmatpush3.bf16.msra.mxu1 %v6832_v54 }
  0xdb   :  { %5755 = vmatprep.subr.bf16.mxu1 %v7473_v1  ;;  %v6833_v1 = vld [vmem:[#allocation2 + $0x8] ss:$24 sps:$4 sm:$0xff]  }
  0xdc   :  { %5818 = vmatpush3.bf16.msra.mxu0 %v6824_v44  ;;  %v6882_v44 = vld [vmem:[#allocation5 + $0x60] ss:$24 sps:$4 sm:$0xff]  }
  0xdd   :  { %776 = vmatmul.mubr.bf16.gmra.mrb[16].mxu1 %v6821_v56  ;;  %5819 = vmatprep.subr.bf16.mxu0 %v6828_v46  ;;  %v6892_v46 = vld [vmem:[#allocation5 + $0xc4] ss:$24 sps:$4 sm:$0xff]   ;;  %v5301_v56 = vcombine.low %v1030_v53, %v1030_v53 }
  0xde   :  { %783 = vmatprep.mubr.bf16.mxu1 %v5213_v57 }
  0xdf   :  { %928 = vmatmul.mubr.bf16.gmra.mrb[12].mxu0 %v6857_v20 }
  0xe0   :  { %5263 = vmatprep.mubr.msk.bf16.mxu0 %vm688_vm0, %v6861_v21  ;;  %5820 = vmatpush3.bf16.msra.mxu0 %v6829_v49  ;;  %v6907_v49 = vld [vmem:[#allocation5 + $0x40] ss:$24 sps:$4 sm:$0xff]  }
  0xe1   :  { %5821 = vmatprep.subr.bf16.mxu0 %v6831_v51  ;;  %v6908_v51 = vld [vmem:[#allocation5 + $0x74] ss:$24 sps:$4 sm:$0xff]  }
  0xe4   :  { %5822 = vmatpush3.bf16.msra.mxu0 %v6832_v54  ;;  %v6916_v54 = vld [vmem:[#allocation5 + $0xd0] ss:$24 sps:$4 sm:$0xff]  }
  0xe5   :  { %784 = vmatmul.mubr.bf16.gmra.mrb[20].mxu1 %v5212_v60 }
  0xe6   :  { %823 = vmatprep.mubr.bf16.mxu1 %v6835_v61 }
  0xe7   :  { %936 = vmatmul.mubr.bf16.gmra.mrb[16].mxu0 %v6863_v27  ;;  %v6920_v27 = vld [vmem:[%s9137_s6 + $0x24] sm:$0xff]  }
  0xe8   :  { %5264 = vmatprep.mubr.msk.bf16.mxu0 %vm688_vm0, %v5217_v28  ;;  %v6921_v28 = vld [vmem:[%s9137_s6] sm:$0xff]  }
  0xed   :  { %824 = vmatmul.mubr.bf16.vlgmr.msra.gmra.mrb[24].mxu1 %v6833_v1  ;;  %v9153_v1 = vmov 0.0  }
  0xee   :  { %5756 = vmatpush3.bf16.msra.mxu1 %v7478_v2  ;;  %831 = vmatprep.mubr.bf16.mxu1 %v6840_v12  ;;  %v6848_v2 = vld [vmem:[#allocation2 + $0x68] ss:$24 sps:$4 sm:$0xff]  }
  0xef   :  { %5757 = vmatprep.subr.bf16.mxu1 %v7484_v3  ;;  %v6852_v3 = vld [vmem:[#allocation2 + $0x9c] ss:$24 sps:$4 sm:$0xff]   ;;  %944 = vmatmul.mubr.bf16.gmra.mrb[20].mxu0 %v5216_v29 }
  0xf0   :  { %6088 = vmatprep.subr.bf16.mxu0 %v9153_v1 }
  0xf2   :  { %5758 = vmatpush3.bf16.msra.mxu1 %v7490_v4  ;;  %v6873_v4 = vld [vmem:[#allocation5 + $0xc] ss:$24 sps:$4 sm:$0xff]  }
  0xf3   :  { %5759 = vmatprep.subr.bf16.mxu1 %v7496_v5  ;;  %v6854_v5 = vld [vmem:[#allocation2 + $0x98] ss:$24 sps:$4 sm:$0xff]   ;;  %1326 = vmatprep.mubr.bf16.mxu0 %v6873_v4 }
  0xf5   :  { %832 = vmatmul.mubr.bf16.gmra.mrb[28].mxu1 %v6842_v22 }
  0xf6   :  { %839 = vmatprep.mubr.bf16.mxu1 %v6846_v24  ;;  %5760 = vmatpush3.bf16.msra.mxu1 %v7502_v6  ;;  %v6858_v6 = vld [vmem:[#allocation2 + $0xcc] ss:$24 sps:$4 sm:$0xff]  }
  0xf7   :  { %5761 = vmatprep.subr.bf16.mxu1 %v7508_v7  ;;  %v6871_v7 = vld [vmem:[#allocation5 + $0x8] ss:$24 sps:$4 sm:$0xff]  }
  0xf8   :  { %1327 = vmatmul.mubr.bf16.vlgmr.msra.gmra.mrb[24].mxu0 %v6871_v7 }
  0xf9   :  { %6089 = vmatpush3.bf16.msra.mxu0 %v6919_v63 }
  0xfa   :  { %5762 = vmatpush3.bf16.msra.mxu1 %v7514_v8  ;;  %v6877_v8 = vld [vmem:[#allocation5 + $0x3c] ss:$24 sps:$4 sm:$0xff]   ;;  %6090 = vmatprep.subr.bf16.mxu0 %v9153_v1 }
  0xfb   :  { %5763 = vmatprep.subr.bf16.mxu1 %v7520_v9  ;;  %v187_v9 = vld [vmem:[#allocation2 + $0xf8] sm:$0x33]  ;;  %1334 = vmatprep.mubr.bf16.mxu0 %v6877_v8  ;;  %v6923_v8 = vld [vmem:[%s9137_s6 + $0x10] sm:$0xff]  }
  0xfc   :  { %v5214_v32 = vcombine.low %v187_v9, %v187_v9 }
  0xfd   :  { %840 = vmatmul.mubr.bf16.gmra.mrb[32].mxu1 %v6848_v2  ;;  %6091 = vmatpush3.bf16.msra.mxu0 %v6920_v27 }
  0xfe   :  { %847 = vmatprep.mubr.bf16.mxu1 %v6852_v3  ;;  %5764 = vmatpush3.bf16.msra.mxu1 %v7526_v10  ;;  %v5215_v10 = vcombine.high %v187_v9, %v187_v9 }
  0xff   :  { %5765 = vmatprep.subr.bf16.mxu1 %v7532_v11  ;;  %v6879_v11 = vld [vmem:[#allocation5 + $0x38] ss:$24 sps:$4 sm:$0xff]   ;;  %6092 = vmatprep.subr.bf16.mxu0 %v9153_v1 }
 0x100   :  { %1335 = vmatmul.mubr.bf16.gmra.mrb[28].mxu0 %v6879_v11 }
 0x102   :  { %5766 = vmatpush3.bf16.msra.mxu1 %v7538_v13  ;;  %v6883_v13 = vld [vmem:[#allocation5 + $0x6c] ss:$24 sps:$4 sm:$0xff]  }
 0x103   :  { %5767 = vmatprep.subr.bf16.mxu1 %v7544_v14  ;;  %v6870_v14 = vld [vmem:[#allocation5 + $0x4] ss:$24 sps:$4 sm:$0xff]   ;;  %1342 = vmatprep.mubr.bf16.mxu0 %v6883_v13 }
 0x105   :  { %848 = vmatmul.mubr.bf16.gmra.mrb[36].mxu1 %v6854_v5  ;;  %v6922_v5 = vld [vmem:[%s9137_s6 + $0x8] sm:$0xff]  }
 0x106   :  { %855 = vmatprep.mubr.bf16.mxu1 %v6858_v6  ;;  %5768 = vmatpush3.bf16.msra.mxu1 %v7550_v15  ;;  %v6889_v15 = vld [vmem:[#allocation5 + $0x9c] ss:$24 sps:$4 sm:$0xff]  }
 0x107   :  { %5769 = vmatprep.subr.bf16.mxu1 %v7556_v16  ;;  %v6868_v16 = vld [vmem:[#allocation5] ss:$24 sps:$4 sm:$0xff]  }
 0x108   :  { %1343 = vmatmul.mubr.bf16.gmra.mrb[32].mxu0 %v6885_v33 }
 0x109   :  { %1350 = vmatprep.mubr.bf16.mxu0 %v6889_v15 }
 0x10a   :  { %5770 = vmatpush3.bf16.msra.mxu1 %v7566_v18  ;;  %v6895_v18 = vld [vmem:[#allocation5 + $0xcc] ss:$24 sps:$4 sm:$0xff]  }
 0x10b   :  { %1374 = vmatprep.subr.bf16.mxu1 %v7263_v0 }
 0x10d   :  { %856 = vmatmul.mubr.bf16.gmra.mrb[40].mxu1 %v6860_v30 }
 0x10e   :  { %863 = vmatprep.mubr.bf16.mxu1 %v5215_v10  ;;  %v6925_v10 = vld [vmem:[%s9137_s6 + $0x18] ss:$0 sps:$4 sm:$0x11]  }
 0x10f   :  { %v1704_v33 = vsel %vm1596_vm2, %v6925_v10, 0 }
 0x110   :  { %1351 = vmatmul.mubr.bf16.gmra.mrb[36].mxu0 %v6891_v36 }
 0x111   :  { %1358 = vmatprep.mubr.bf16.mxu0 %v6895_v18 }
 0x115   :  { %864 = vmatmul.mubr.bf16.gmra.mrb[44].mxu1 %v5214_v32 }
 0x116   :  { %1246 = vmatprep.mubr.bf16.mxu1 %v6870_v14 }
 0x118   :  { %1359 = vmatmul.mubr.bf16.gmra.mrb[40].mxu0 %v6897_v41 }
 0x119   :  { %1366 = vmatprep.mubr.bf16.mxu0 %v5300_v43 }
 0x11d   :  { %1247 = vmatmul.mubr.bf16.vlgmr.msra.gmra.mrb[48].mxu1 %v6868_v16 }
 0x11e   :  { %1375 = vmatpush1.bf16.msra.mxu1 %v7561_v17  ;;  %1254 = vmatprep.mubr.bf16.mxu1 %v6874_v35  ;;  %v6886_v17 = vld [vmem:[#allocation5 + $0x94] ss:$24 sps:$4 sm:$0xff]  }
 0x11f   :  { %1376 = vmatprep.subr.bf16.mxu1 %v7263_v0 }
 0x120   :  { %1367 = vmatmul.mubr.bf16.gmra.mrb[44].mxu0 %v5299_v45 }
 0x121   :  { %6096 = vmatprep.mubr.msk.bf16.mxu0 %vm7265_vm3, %v9153_v1 }
 0x122   :  { %1377 = vmatpush1.bf16.msra.mxu1 %v7574_v19  ;;  %v6888_v19 = vld [vmem:[#allocation5 + $0x90] ss:$24 sps:$4 sm:$0xff]  }
 0x123   :  { %1378 = vmatprep.subr.bf16.mxu1 %v7263_v0 }
 0x125   :  { %1255 = vmatmul.mubr.bf16.gmra.mrb[52].mxu1 %v6876_v37 }
 0x126   :  { %1262 = vmatprep.mubr.bf16.mxu1 %v6880_v38  ;;  %1379 = vmatpush1.bf16.msra.mxu1 %v7591_v23  ;;  %v1028_v23 = vld [vmem:[#allocation5 + $0xf0] sm:$0x33] }
 0x127   :  { %1380 = vmatprep.subr.bf16.mxu1 %v7263_v0  ;;  %v5298_v47 = vcombine.high %v1028_v23, %v1028_v23 }
 0x12a   :  { %1381 = vmatpush1.bf16.msra.mxu1 %v7605_v26  ;;  %v6894_v26 = vld [vmem:[#allocation5 + $0xc0] ss:$24 sps:$4 sm:$0xff]  }
 0x12b   :  { %1382 = vmatprep.subr.bf16.mxu1 %v7263_v0 }
 0x12d   :  { %1263 = vmatmul.mubr.bf16.gmra.mrb[56].mxu1 %v6882_v44  ;;  %v6924_v44 = vld [vmem:[%s9137_s6 + $0x2c] sm:$0xff]  }
 0x12e   :  { %1270 = vmatprep.mubr.bf16.mxu1 %v6886_v17  ;;  %1383 = vmatpush1.bf16.msra.mxu1 %v7624_v31  ;;  %v5297_v31 = vcombine.low %v1028_v23, %v1028_v23  ;;  %v6926_v23 = vld [vmem:[%s9137_s6 + $0x34] ss:$0 sps:$4 sm:$0x11]  }
 0x12f   :  { %1384 = vmatprep.subr.bf16.mxu1 %v7263_v0  ;;  %6093 = vmatpush3.bf16.msra.mxu0 %v6924_v44 }
 0x130   :  { %6094 = vmatprep.subr.bf16.mxu0 %v9153_v1 }
 0x132   :  { %1385 = vmatpush1.bf16.msra.mxu1 %v7643_v34  ;;  %v6904_v34 = vld [vmem:[#allocation5 + $0x14] ss:$24 sps:$4 sm:$0xff]  }
 0x133   :  { %1386 = vmatprep.subr.bf16.mxu1 %v7263_v0 }
 0x135   :  { %1271 = vmatmul.mubr.bf16.gmra.mrb[60].mxu1 %v6888_v19 }
 0x136   :  { %1278 = vmatprep.mubr.bf16.mxu1 %v6892_v46  ;;  %1387 = vmatpush1.bf16.msra.mxu1 %v7662_v39  ;;  %v6905_v39 = vld [vmem:[#allocation5 + $0x44] ss:$24 sps:$4 sm:$0xff]  }
 0x137   :  { %1388 = vmatprep.subr.bf16.mxu1 %v7263_v0 }
 0x13a   :  { %1389 = vmatpush1.bf16.msra.mxu1 %v7681_v42  ;;  %v6911_v42 = vld [vmem:[#allocation5 + $0xa4] ss:$24 sps:$4 sm:$0xff]  }
 0x13b   :  { %1390 = vmatprep.subr.bf16.mxu1 %v7263_v0  ;;  %v6910_v0 = vld [vmem:[#allocation5 + $0x70] ss:$24 sps:$4 sm:$0xff]  }
 0x13d   :  { %1279 = vmatmul.mubr.bf16.gmra.mrb[64].mxu1 %v6894_v26 }
 0x13e   :  { %1286 = vmatprep.mubr.bf16.mxu1 %v5298_v47  ;;  %1391 = vmatpush1.bf16.msra.mxu1 %v7702_v50  ;;  %v6913_v50 = vld [vmem:[#allocation5 + $0xa0] ss:$24 sps:$4 sm:$0xff]   ;;  %v1598_v47 = vsel %vm1596_vm2, %v6926_v23, 0 }
 0x13f   :  { %6116 = vmatprep.subr.bf16.mxu1 %v9153_v1  ;;  %6095 = vmatpush3.bf16.msra.mxu0 %v1598_v47 }
 0x140   :  { %6144 = vmatprep.subr.bf16.mxu0 %v9153_v1 }
 0x145   :  { %1287 = vmatmul.mubr.bf16.gmra.mrb[68].mxu1 %v5297_v31 }
 0x146   :  { %5303 = vmatprep.mubr.msk.bf16.mxu1 %vm688_vm0, %v6904_v34 }
 0x14d   :  { %1407 = vmatmul.mubr.bf16.vlgmr.msra.gmra.mrb[72].mxu1 %v6902_v48 }
 0x14e   :  { %5304 = vmatprep.mubr.msk.bf16.mxu1 %vm688_vm0, %v6905_v39  ;;  %6117 = vmatpush3.bf16.msra.mxu1 %v6921_v28 }
 0x14f   :  { %6118 = vmatprep.subr.bf16.mxu1 %v9153_v1 }
 0x152   :  { %6119 = vmatpush3.bf16.msra.mxu1 %v6922_v5 }
 0x153   :  { %6120 = vmatprep.subr.bf16.mxu1 %v9153_v1 }
 0x155   :  { %1415 = vmatmul.mubr.bf16.gmra.mrb[76].mxu1 %v6907_v49 }
 0x156   :  { %5305 = vmatprep.mubr.msk.bf16.mxu1 %vm688_vm0, %v6908_v51  ;;  %6121 = vmatpush3.bf16.msra.mxu1 %v6923_v8 }
 0x157   :  { %6122 = vmatprep.subr.bf16.mxu1 %v9153_v1 }
 0x15a   :  { %6123 = vmatpush3.bf16.msra.mxu1 %v1704_v33 }
 0x15b   :  { %6172 = vmatprep.subr.bf16.mxu1 %v9153_v1 }
 0x15d   :  { %1423 = vmatmul.mubr.bf16.gmra.mrb[80].mxu1 %v6910_v0 }
 0x15e   :  { %5306 = vmatprep.mubr.msk.bf16.mxu1 %vm688_vm0, %v6911_v42 }
 0x165   :  { %1431 = vmatmul.mubr.bf16.gmra.mrb[84].mxu1 %v6913_v50  ;;  %v7832_v50 = vld [vmem:[%s9134_s3] ss:$0 sm:$0xff] }
 0x166   :  { %5307 = vmatprep.mubr.msk.bf16.mxu1 %vm688_vm0, %v6914_v52 }
 0x16d   :  { %1439 = vmatmul.mubr.bf16.gmra.mrb[88].mxu1 %v6916_v54 }
 0x16e   :  { %5308 = vmatprep.mubr.msk.bf16.mxu1 %vm688_vm0, %v5302_v55  ;;  %vm3447_vm0 = vcmask 588800  }
 0x175   :  { %1447 = vmatmul.mubr.bf16.gmra.mrb[92].mxu1 %v5301_v56 }
 0x176   :  { %6124 = vmatprep.mubr.msk.bf16.mxu1 %vm7265_vm3, %v9153_v1 }
 0x190   :  { %v5667_v57 = vpop.f32.mrb[0].mxu1 }
 0x191   :  { %v5668_v58 = vpop.f32.mrb[1].mxu1 }
 0x192   :  { %v7767_v59 = vadd.f32 %v5668_v58, %v5667_v57  ;;  %v5670_v60 = vpop.f32.mrb[2].mxu1 }
 0x193   :  { %v5671_v61 = vpop.f32.mrb[3].mxu1 }
 0x194   :  { %v7769_v62 = vadd.f32 %v5671_v61, %v5670_v60  ;;  %v746_v54 = vadd.f32 %v7767_v59, %v7832_v50 }
 0x196   :  { %v749_v60 = vadd.f32 %v7769_v62, %v7832_v50 }
 0x198   :  { %v5673_v12 = vpop.f32.mrb[4].mxu1 }
 0x199   :  { %v5674_v20 = vpop.f32.mrb[5].mxu1 }
 0x19a   :  { %v7777_v21 = vadd.f32 %v5674_v20, %v5673_v12  ;;  %v5676_v22 = vpop.f32.mrb[6].mxu1  ;;  %v905_v32 = vpop.f32.mrb[0].mxu0 }
 0x19b   :  { %v5677_v24 = vpop.f32.mrb[7].mxu1  ;;  %v907_v16 = vpop.f32.mrb[1].mxu0 }
 0x19c   :  { %v7779_v25 = vadd.f32 %v5677_v24, %v5676_v22  ;;  %v908_v35 = vpop.f32.mrb[2].mxu0  ;;  %v754_v59 = vadd.f32 %v7777_v21, %v7832_v50 }
 0x19d   :  { %v910_v36 = vpop.f32.mrb[3].mxu0 }
 0x19e   :  { %v757_v62 = vadd.f32 %v7779_v25, %v7832_v50 }
 0x1a0   :  { %v5679_v2 = vpop.f32.mrb[8].mxu1 }
 0x1a1   :  { %v5680_v3 = vpop.f32.mrb[9].mxu1 }
 0x1a2   :  { %v7789_v4 = vadd.f32 %v5680_v3, %v5679_v2  ;;  %v5682_v29 = vpop.f32.mrb[10].mxu1  ;;  %v913_v43 = vpop.f32.mrb[4].mxu0 }
 0x1a3   :  { %v5683_v6 = vpop.f32.mrb[11].mxu1  ;;  %v915_v45 = vpop.f32.mrb[5].mxu0 }
 0x1a4   :  { %v7794_v7 = vadd.f32 %v5683_v6, %v5682_v29  ;;  %v916_v19 = vpop.f32.mrb[6].mxu0  ;;  %v762_v21 = vadd.f32 %v7789_v4, %v7832_v50 }
 0x1a5   :  { %v918_v46 = vpop.f32.mrb[7].mxu0 }
 0x1a6   :  { %v765_v25 = vadd.f32 %v7794_v7, %v7832_v50 }
 0x1a8   :  { %v5685_v9 = vpop.f32.mrb[12].mxu1 }
 0x1a9   :  { %v5686_v30 = vpop.f32.mrb[13].mxu1 }
 0x1aa   :  { %v7804_v11 = vadd.f32 %v5686_v30, %v5685_v9  ;;  %v5688_v13 = vpop.f32.mrb[14].mxu1  ;;  %v921_v49 = vpop.f32.mrb[8].mxu0 }
 0x1ab   :  { %v5689_v14 = vpop.f32.mrb[15].mxu1  ;;  %v923_v51 = vpop.f32.mrb[9].mxu0 }
 0x1ac   :  { %v7807_v15 = vadd.f32 %v5689_v14, %v5688_v13  ;;  %v924_v0 = vpop.f32.mrb[10].mxu0  ;;  %v770_v4 = vadd.f32 %v7804_v11, %v7832_v50 }
 0x1ad   :  { %v926_v42 = vpop.f32.mrb[11].mxu0 }
 0x1ae   :  { %v773_v7 = vadd.f32 %v7807_v15, %v7832_v50 }
 0x1b0   :  { %v5691_v18 = vpop.f32.mrb[16].mxu1 }
 0x1b1   :  { %v5692_v37 = vpop.f32.mrb[17].mxu1 }
 0x1b2   :  { %v7814_v38 = vadd.f32 %v5692_v37, %v5691_v18  ;;  %v5694_v40 = vpop.f32.mrb[18].mxu1  ;;  %v929_v58 = vpop.f32.mrb[12].mxu0 }
 0x1b3   :  { %v5695_v41 = vpop.f32.mrb[19].mxu1  ;;  %v931_v12 = vpop.f32.mrb[13].mxu0 }
 0x1b4   :  { %v7819_v17 = vadd.f32 %v5695_v41, %v5694_v40  ;;  %v932_v20 = vpop.f32.mrb[14].mxu0 }
 0x1b5   :  { %v934_v27 = vpop.f32.mrb[15].mxu0 }
 0x1b8   :  { %v5697_v26 = vpop.f32.mrb[20].mxu1 }
 0x1b9   :  { %v5698_v31 = vpop.f32.mrb[21].mxu1 }
 0x1ba   :  { %v7826_v34 = vadd.f32 %v5698_v31, %v5697_v26  ;;  %v5700_v48 = vpop.f32.mrb[22].mxu1  ;;  %v937_v8 = vpop.f32.mrb[16].mxu0 }
 0x1bb   :  { %v5701_v39 = vpop.f32.mrb[23].mxu1  ;;  %v939_v10 = vpop.f32.mrb[17].mxu0 }
 0x1bc   :  { %v940_v13 = vpop.f32.mrb[18].mxu0 }
 0x1bd   :  { %v942_v33 = vpop.f32.mrb[19].mxu0 }
 0x1c0   :  { %v5719_v52 = vpop.f32.mrb[24].mxu1 }
 0x1c1   :  { %v5720_v53 = vpop.f32.mrb[25].mxu1 }
 0x1c2   :  { %v5721_v55 = vadd.f32 %v5720_v53, %v5719_v52  ;;  %v5722_v56 = vpop.f32.mrb[26].mxu1  ;;  %v945_v41 = vpop.f32.mrb[20].mxu0 }
 0x1c3   :  { %v5723_v57 = vpop.f32.mrb[27].mxu1 }
 0x1c4   :  { %v5724_v61 = vadd.f32 %v5723_v57, %v5722_v56  ;;  %v826_v63 = vadd.f32 %v5721_v55, %v746_v54 }
 0x1c6   :  { %v7838_v22 = vadd.f32 %v905_v32, %v826_v63  ;;  %v829_v24 = vadd.f32 %v5724_v61, %v749_v60 }
 0x1c8   :  { %v7840_v28 = vadd.f32 %v908_v35, %v829_v24  ;;  %v5725_v2 = vpop.f32.mrb[28].mxu1  ;;  %v778_v24 = vadd.f32 %v7814_v38, %v7832_v50 }
 0x1c9   :  { %v5726_v3 = vpop.f32.mrb[29].mxu1 }
 0x1ca   :  { %v5727_v29 = vadd.f32 %v5726_v3, %v5725_v2  ;;  %v5728_v5 = vpop.f32.mrb[30].mxu1 }
 0x1cb   :  { %v5729_v6 = vpop.f32.mrb[31].mxu1 }
 0x1cc   :  { %v5730_v9 = vadd.f32 %v5729_v6, %v5728_v5  ;;  %v834_v30 = vadd.f32 %v5727_v29, %v754_v59  ;;  %v781_v59 = vadd.f32 %v7819_v17, %v7832_v50 }
 0x1ce   :  { %v7846_v14 = vadd.f32 %v913_v43, %v834_v30  ;;  %v837_v32 = vadd.f32 %v5730_v9, %v757_v62  ;;  %v947_v43 = vpop.f32.mrb[21].mxu0 }
 0x1cf   :  { %v948_v46 = vpop.f32.mrb[22].mxu0 }
 0x1d0   :  { %v7848_v16 = vadd.f32 %v916_v19, %v837_v32  ;;  %v5731_v35 = vpop.f32.mrb[32].mxu1  ;;  %v949_v26 = vpop.f32.mrb[23].mxu0 }
 0x1d1   :  { %v5732_v36 = vpop.f32.mrb[33].mxu1  ;;  %v5823_v52 = vpop.f32.mrb[24].mxu0 }
 0x1d2   :  { %v5733_v18 = vadd.f32 %v5732_v36, %v5731_v35  ;;  %v5734_v37 = vpop.f32.mrb[34].mxu1  ;;  %v786_v35 = vadd.f32 %v7826_v34, %v7832_v50 }
 0x1d3   :  { %v5735_v40 = vpop.f32.mrb[35].mxu1 }
 0x1d4   :  { %v5736_v44 = vadd.f32 %v5735_v40, %v5734_v37  ;;  %v842_v45 = vadd.f32 %v5733_v18, %v762_v21 }
 0x1d6   :  { %v7854_v23 = vadd.f32 %v921_v49, %v842_v45  ;;  %v845_v19 = vadd.f32 %v5736_v44, %v765_v25  ;;  %v5824_v49 = vpop.f32.mrb[25].mxu0 }
 0x1d7   :  { %v5825_v55 = vadd.f32 %v5824_v49, %v5823_v52  ;;  %v5826_v56 = vpop.f32.mrb[26].mxu0 }
 0x1d8   :  { %v7856_v47 = vadd.f32 %v924_v0, %v845_v19  ;;  %v5737_v31 = vpop.f32.mrb[36].mxu1  ;;  %v5827_v60 = vpop.f32.mrb[27].mxu0 }
 0x1d9   :  { %v5738_v48 = vpop.f32.mrb[37].mxu1  ;;  %v5828_v61 = vadd.f32 %v5827_v60, %v5826_v56  ;;  %v5829_v3 = vpop.f32.mrb[28].mxu0 }
 0x1da   :  { %v5739_v39 = vadd.f32 %v5738_v48, %v5737_v31  ;;  %v5740_v51 = vpop.f32.mrb[38].mxu1  ;;  %v5830_v5 = vpop.f32.mrb[29].mxu0 }
 0x1db   :  { %v5741_v42 = vpop.f32.mrb[39].mxu1  ;;  %v5831_v6 = vadd.f32 %v5830_v5, %v5829_v3  ;;  %v5832_v62 = vpop.f32.mrb[30].mxu0 }
 0x1dc   :  { %v5742_v53 = vadd.f32 %v5741_v42, %v5740_v51  ;;  %v850_v54 = vadd.f32 %v5739_v39, %v770_v4  ;;  %v5833_v30 = vpop.f32.mrb[31].mxu0 }
 0x1dd   :  { %v5834_v10 = vadd.f32 %v5833_v30, %v5832_v62  ;;  %v5835_v18 = vpop.f32.mrb[32].mxu0 }
 0x1de   :  { %v7862_v57 = vadd.f32 %v929_v58, %v850_v54  ;;  %v853_v0 = vadd.f32 %v5742_v53, %v773_v7  ;;  %v5836_v40 = vpop.f32.mrb[33].mxu0 }
 0x1df   :  { %v5837_v25 = vadd.f32 %v5836_v40, %v5835_v18  ;;  %v5838_v44 = vpop.f32.mrb[34].mxu0 }
 0x1e0   :  { %v7864_v63 = vadd.f32 %v932_v20, %v853_v0  ;;  %v5743_v11 = vpop.f32.mrb[40].mxu1  ;;  %v5839_v45 = vpop.f32.mrb[35].mxu0 }
 0x1e1   :  { %v5744_v12 = vpop.f32.mrb[41].mxu1  ;;  %v5840_v43 = vadd.f32 %v5839_v45, %v5838_v44 }
 0x1e2   :  { %v5745_v27 = vadd.f32 %v5744_v12, %v5743_v11  ;;  %v5746_v2 = vpop.f32.mrb[42].mxu1 }
 0x1e3   :  { %v5747_v15 = vpop.f32.mrb[43].mxu1  ;;  %v5841_v48 = vpop.f32.mrb[36].mxu0 }
 0x1e4   :  { %v5748_v29 = vadd.f32 %v5747_v15, %v5746_v2  ;;  %v858_v58 = vadd.f32 %v5745_v27, %v778_v24  ;;  %v5842_v39 = vpop.f32.mrb[37].mxu0 }
 0x1e5   :  { %v5843_v51 = vadd.f32 %v5842_v39, %v5841_v48  ;;  %v5844_v42 = vpop.f32.mrb[38].mxu0 }
 0x1e6   :  { %v7870_v9 = vadd.f32 %v937_v8, %v858_v58  ;;  %v861_v20 = vadd.f32 %v5748_v29, %v781_v59  ;;  %v5845_v7 = vpop.f32.mrb[39].mxu0 }
 0x1e8   :  { %v7872_v32 = vadd.f32 %v940_v13, %v861_v20  ;;  %v5749_v38 = vpop.f32.mrb[44].mxu1 }
 0x1e9   :  { %v5750_v33 = vpop.f32.mrb[45].mxu1 }
 0x1ea   :  { %v5751_v36 = vadd.f32 %v5750_v33, %v5749_v38  ;;  %v5752_v21 = vpop.f32.mrb[46].mxu1 }
 0x1eb   :  { %v5753_v17 = vpop.f32.mrb[47].mxu1  ;;  %v5847_v12 = vpop.f32.mrb[40].mxu0 }
 0x1ec   :  { %v866_v37 = vadd.f32 %v5751_v36, %v786_v35  ;;  %v5848_v2 = vpop.f32.mrb[41].mxu0 }
 0x1ed   :  { %v5849_v15 = vadd.f32 %v5848_v2, %v5847_v12  ;;  %v5850_v3 = vpop.f32.mrb[42].mxu0 }
 0x1ee   :  { %v7876_v8 = vadd.f32 %v945_v41, %v866_v37  ;;  %v5846_v41 = vadd.f32 %v5845_v7, %v5844_v42  ;;  %v5851_v29 = vpop.f32.mrb[43].mxu0 }
 0x1ef   :  { %v5852_v58 = vadd.f32 %v5851_v29, %v5850_v3  ;;  %v951_v3 = vmax.f32 %v7838_v22, 0.0 }
 0x1f0   :  { %v5771_v46 = vpop.f32.mrb[48].mxu1 }
 0x1f1   :  { %v5772_v13 = vpop.f32.mrb[49].mxu1 }
 0x1f2   :  { %v5773_v19 = vadd.f32 %v5772_v13, %v5771_v46  ;;  %v5774_v26 = vpop.f32.mrb[50].mxu1 }
 0x1f3   :  { %v5775_v31 = vpop.f32.mrb[51].mxu1  ;;  %v5853_v33 = vpop.f32.mrb[44].mxu0 }
 0x1f4   :  { %v1249_v34 = vadd.f32 %v5773_v19, %v7832_v50  ;;  %v5776_v4 = vadd.f32 %v5775_v31, %v5774_v26  ;;  %v5854_v21 = vpop.f32.mrb[45].mxu0 }
 0x1f5   :  { %v5855_v17 = vadd.f32 %v5854_v21, %v5853_v33  ;;  %v5856_v18 = vpop.f32.mrb[46].mxu0  ;;  %v7923_v33 = vld [vmem:[#allocation7] ss:$0 sm:$0xff] }
 0x1f6   :  { %v1252_v52 = vadd.f32 %v5776_v4, %v7832_v50  ;;  %v7880_v53 = vadd.f32 %v5825_v55, %v1249_v34  ;;  %v957_v18 = vmax.f32 %v7862_v57, 0.0 }
 0x1f8   :  { %v5777_v54 = vpop.f32.mrb[52].mxu1  ;;  %v7882_v49 = vadd.f32 %v5828_v61, %v1252_v52 }
 0x1f9   :  { %v5778_v56 = vpop.f32.mrb[53].mxu1 }
 0x1fa   :  { %v5779_v0 = vadd.f32 %v5778_v56, %v5777_v54  ;;  %v5780_v60 = vpop.f32.mrb[54].mxu1 }
 0x1fb   :  { %v5781_v11 = vpop.f32.mrb[55].mxu1 }
 0x1fc   :  { %v1257_v24 = vadd.f32 %v5779_v0, %v7832_v50  ;;  %v5782_v27 = vadd.f32 %v5781_v11, %v5780_v60 }
 0x1fe   :  { %v1260_v59 = vadd.f32 %v5782_v27, %v7832_v50  ;;  %v7886_v55 = vadd.f32 %v5831_v6, %v1257_v24  ;;  %v5857_v6 = vpop.f32.mrb[47].mxu0 }
 0x200   :  { %v5783_v5 = vpop.f32.mrb[56].mxu1  ;;  %v7888_v61 = vadd.f32 %v5834_v10, %v1260_v59  ;;  %v952_v59 = vmax.f32 %v7840_v28, 0.0 }
 0x201   :  { %v5784_v62 = vpop.f32.mrb[57].mxu1 }
 0x202   :  { %v5785_v20 = vadd.f32 %v5784_v62, %v5783_v5  ;;  %v5786_v30 = vpop.f32.mrb[58].mxu1  ;;  %v953_v62 = vmax.f32 %v7846_v14, 0.0 }
 0x203   :  { %v5787_v38 = vpop.f32.mrb[59].mxu1 }
 0x204   :  { %v1265_v35 = vadd.f32 %v5785_v20, %v7832_v50  ;;  %v5788_v36 = vadd.f32 %v5787_v38, %v5786_v30 }
 0x206   :  { %v1268_v37 = vadd.f32 %v5788_v36, %v7832_v50  ;;  %v7892_v40 = vadd.f32 %v5837_v25, %v1265_v35  ;;  %v954_v35 = vmax.f32 %v7848_v16, 0.0  ;;  %v955_v36 = vmax.f32 %v7854_v23, 0.0 }
 0x208   :  { %v5789_v44 = vpop.f32.mrb[60].mxu1  ;;  %v7894_v45 = vadd.f32 %v5840_v43, %v1268_v37  ;;  %v958_v37 = vmax.f32 %v7864_v63, 0.0  ;;  %v960_v63 = vmax.f32 %v7872_v32, 0.0 }
 0x209   :  { %v5790_v10 = vpop.f32.mrb[61].mxu1 }
 0x20a   :  { %v5791_v46 = vadd.f32 %v5790_v10, %v5789_v44  ;;  %v5792_v13 = vpop.f32.mrb[62].mxu1  ;;  %v6932_v44 = vld [vmem:[%s9137_s6 + $0x6c] ss:$0 sps:$4 sm:$0x11]  }
 0x20b   :  { %v5793_v19 = vpop.f32.mrb[63].mxu1 }
 0x20c   :  { %v1273_v26 = vadd.f32 %v5791_v46, %v7832_v50  ;;  %v5794_v31 = vadd.f32 %v5793_v19, %v5792_v13 }
 0x20e   :  { %v1276_v48 = vadd.f32 %v5794_v31, %v7832_v50  ;;  %v7898_v34 = vadd.f32 %v5843_v51, %v1273_v26 }
 0x210   :  { %v5795_v4 = vpop.f32.mrb[64].mxu1  ;;  %v7900_v39 = vadd.f32 %v5846_v41, %v1276_v48 }
 0x211   :  { %v5796_v25 = vpop.f32.mrb[65].mxu1 }
 0x212   :  { %v5797_v42 = vadd.f32 %v5796_v25, %v5795_v4  ;;  %v5798_v52 = vpop.f32.mrb[66].mxu1 }
 0x213   :  { %v5799_v7 = vpop.f32.mrb[67].mxu1 }
 0x214   :  { %v1281_v43 = vadd.f32 %v5797_v42, %v7832_v50  ;;  %v5800_v54 = vadd.f32 %v5799_v7, %v5798_v52 }
 0x216   :  { %v1284_v56 = vadd.f32 %v5800_v54, %v7832_v50  ;;  %v7904_v0 = vadd.f32 %v5849_v15, %v1281_v43  ;;  %v7916_v15 = vld [vmem:[%s9135_s4] ss:$0 sm:$0xff] }
 0x217   :  { %v970_v30 = vmul.f32 %v7916_v15, %v952_v59  ;;  %v972_v10 = vmul.f32 %v7916_v15, %v954_v35  ;;  %v973_v57 = vmul.f32 %v7916_v15, %v955_v36  ;;  %v975_v25 = vmul.f32 %v7916_v15, %v957_v18 }
 0x218   :  { %v5801_v60 = vpop.f32.mrb[68].mxu1  ;;  %v7906_v11 = vadd.f32 %v5852_v58, %v1284_v56  ;;  %v976_v42 = vmul.f32 %v7916_v15, %v958_v37  ;;  %v7958_v56 = vsel %vm1596_vm2, %v6932_v44, 0 }
 0x219   :  { %v5802_v12 = vpop.f32.mrb[69].mxu1  ;;  %v988_v16 = vadd.f32 %v7923_v33, %v970_v30 }
 0x21a   :  { %v5803_v51 = vadd.f32 %v5802_v12, %v5801_v60  ;;  %v5804_v24 = vpop.f32.mrb[70].mxu1  ;;  %v990_v60 = vadd.f32 %v7923_v33, %v972_v10  ;;  %v7962_v12 = vadd.f32 %v7923_v33, %v973_v57 }
 0x21b   :  { %v5805_v27 = vpop.f32.mrb[71].mxu1 }
 0x21c   :  { %v1289_v41 = vadd.f32 %v5803_v51, %v7832_v50  ;;  %v969_v50 = vmul.f32 %v7916_v15, %v951_v3  ;;  %v978_v51 = vmul.f32 %v7916_v15, %v960_v63  ;;  %v6928_v27 = vld [vmem:[%s9137_s6 + $0x54] sm:$0xff]  }
 0x21e   :  { %v7909_v2 = vadd.f32 %v5855_v17, %v1289_v41  ;;  %v971_v17 = vmul.f32 %v7916_v15, %v953_v62  ;;  %v987_v6 = vadd.f32 %v7923_v33, %v969_v50 }
 0x220   :  { %v1408_v29 = vpop.f32.mrb[72].mxu1  ;;  %v7948_v4 = vadd.f32 %v7923_v33, %v971_v17 }
 0x221   :  { %v1409_v58 = vadd.f32 %v1408_v29, %v7880_v53  ;;  %v1410_v5 = vpop.f32.mrb[73].mxu1  ;;  %v956_v53 = vmax.f32 %v7856_v47, 0.0 }
 0x222   :  { %v1411_v20 = vpop.f32.mrb[74].mxu1  ;;  %v7982_v5 = vadd.f32 %v7923_v33, %v976_v42 }
 0x223   :  { %v1454_v38 = vmax.f32 %v1409_v58, 0.0  ;;  %v1412_v22 = vadd.f32 %v1411_v20, %v7882_v49  ;;  %v1413_v28 = vpop.f32.mrb[75].mxu1  ;;  %v959_v49 = vmax.f32 %v7870_v9, 0.0  ;;  %v961_v9 = vmax.f32 %v7876_v8, 0.0 }
 0x224   :  { %v974_v13 = vmul.f32 %v7916_v15, %v956_v53  ;;  %v6934_v8 = vld [vmem:[%s9137_s6 + $0x50] ss:$0 sps:$4 sm:$0x11]   ;;  %v7979_v58 = vadd.f32 %v7923_v33, %v975_v25  ;;  %v8001_v28 = vadd.f32 %v7923_v33, %v978_v51  ;;  %v6930_v53 = vld [vmem:[%s9137_s6 + $0x5c] sm:$0xff]  }
 0x225   :  { %v1465_v21 = vmul.f32 %v7916_v15, %v1454_v38  ;;  %v1455_v14 = vmax.f32 %v1412_v22, 0.0  ;;  %v977_v32 = vmul.f32 %v7916_v15, %v959_v49  ;;  %v979_v24 = vmul.f32 %v7916_v15, %v961_v9 }
 0x226   :  { %v7973_v41 = vadd.f32 %v7923_v33, %v974_v13  ;;  %v7988_v20 = vsel %vm1596_vm2, %v6934_v8, 0  ;;  %v6931_v13 = vld [vmem:[%s9137_s6 + $0x64] sm:$0xff]  }
 0x227   :  { %v1476_v23 = vadd.f32 %v7923_v33, %v1465_v21  ;;  %v1466_v47 = vmul.f32 %v7916_v15, %v1455_v14  ;;  %v7985_v62 = vadd.f32 %v7923_v33, %v977_v32  ;;  %v8004_v35 = vadd.f32 %v7923_v33, %v979_v24 }
 0x228   :  { %v1416_v46 = vpop.f32.mrb[76].mxu1 }
 0x229   :  { %v1487_v19 = vmax.f32 %v987_v6, %v1476_v23  ;;  %v1477_v26 = vadd.f32 %v7923_v33, %v1466_v47  ;;  %v1417_v31 = vadd.f32 %v1416_v46, %v7886_v55  ;;  %v1418_v48 = vpop.f32.mrb[77].mxu1 }
 0x22a   :  { %v1419_v52 = vpop.f32.mrb[78].mxu1 }
 0x22b   :  { %v1488_v7 = vmax.f32 %v988_v16, %v1477_v26  ;;  %v1456_v43 = vmax.f32 %v1417_v31, 0.0  ;;  %v1420_v54 = vadd.f32 %v1419_v52, %v7888_v61  ;;  %v1421_v55 = vpop.f32.mrb[79].mxu1  ;;  %v6940_v61 = vld [vmem:[%s9137_s6 + $0xa4] ss:$0 sps:$4 sm:$0x11]  }
 0x22c   :  { %v8013_v14 = vsel %vm1596_vm2, %v6940_v61, 0 }
 0x22d   :  { %v7975_v3 = vpack.c.bf16 %v1488_v7, %v1487_v19  ;;  %v1467_v59 = vmul.f32 %v7916_v15, %v1456_v43  ;;  %v1457_v29 = vmax.f32 %v1420_v54, 0.0 }
 0x22f   :  { %v1478_v50 = vadd.f32 %v7923_v33, %v1467_v59  ;;  %v1468_v30 = vmul.f32 %v7916_v15, %v1457_v29  ;;  %6125 = vmatmul.mubr.msk.bf16.vlgmr.msra.gmra.mrb[96].mxu1 %vm1580_vm4, %v7975_v3  ;;  %v7995_v38 = vshrl.u32 %v7975_v3, 16  ;;  %v7998_v22 = vshll.u32 %v7975_v3, 16 }
 0x230   :  { %v1424_v36 = vpop.f32.mrb[80].mxu1  ;;  %6128 = vmatprep.mubr.msk.bf16.mxu1 %vm7265_vm3, %v9153_v1  ;;  %6173 = vmatpush3.bf16.msra.mxu1 %v6928_v27  ;;  %v1792_v21 = vrot.slane %v7975_v3, 1  ;;  %v2078_v46 = vrot.slane %v7975_v3, 2  ;;  %v2364_v48 = vrot.slane %v7975_v3, 3 }
 0x231   :  { %v1489_v17 = vmax.f32 %v7948_v4, %v1478_v50  ;;  %v1479_v18 = vadd.f32 %v7923_v33, %v1468_v30  ;;  %v1425_v37 = vadd.f32 %v1424_v36, %v7892_v40  ;;  %v1426_v49 = vpop.f32.mrb[81].mxu1  ;;  %v1525_v6 = vrot.slane %v7998_v22, 1  ;;  %6174 = vmatprep.subr.bf16.mxu1 %v9153_v1 }
 0x232   :  { %v1427_v16 = vpop.f32.mrb[82].mxu1  ;;  %v1930_v23 = vrot.slane %v7995_v38, 1  ;;  %v1931_v47 = vrot.slane %v7998_v22, 2  ;;  %v2216_v44 = vrot.slane %v7995_v38, 2  ;;  %v2217_v10 = vrot.slane %v7998_v22, 3 }
 0x233   :  { %v1490_v57 = vmax.f32 %v990_v60, %v1479_v18  ;;  %v1458_v63 = vmax.f32 %v1425_v37, 0.0  ;;  %v1428_v9 = vadd.f32 %v1427_v16, %v7894_v45  ;;  %v1429_v40 = vpop.f32.mrb[83].mxu1  ;;  %v2502_v26 = vrot.slane %v7995_v38, 3 }
 0x234   :  { %6175 = vmatpush3.bf16.msra.mxu1 %v6930_v53  ;;  %v8029_v19 = vor.u32 %v2217_v10, %v2216_v44  ;;  %v2503_v31 = vrot.slane %v7998_v22, 4  ;;  %v1526_v42 = vor.u32 %v1525_v6, %v7995_v38  ;;  %v1932_v32 = vor.u32 %v1931_v47, %v1930_v23 }
 0x235   :  { %v8034_v4 = vpack.c.bf16 %v1490_v57, %v1489_v17  ;;  %v1469_v45 = vmul.f32 %v7916_v15, %v1458_v63  ;;  %v1459_v25 = vmax.f32 %v1428_v9, 0.0  ;;  %6176 = vmatprep.subr.bf16.mxu1 %v9153_v1  ;;  %v2788_v8 = vrot.slane %v7995_v38, 4  ;;  %v6927_v17 = vld [vmem:[%s9137_s6 + $0x38] sm:$0xff]  }
 0x236   :  { %v8039_v52 = vor.u32 %v2503_v31, %v2502_v26  ;;  %v2789_v7 = vrot.slane %v7998_v22, 5 }
 0x237   :  { %v1480_v43 = vadd.f32 %v7923_v33, %v1469_v45  ;;  %v1470_v54 = vmul.f32 %v7916_v15, %v1459_v25  ;;  %6129 = vmatmul.mubr.msk.bf16.gmra.mrb[100].mxu1 %vm1580_vm4, %v8034_v4  ;;  %v8048_v55 = vshll.u32 %v8034_v4, 16  ;;  %v8051_v60 = vshrl.u32 %v8034_v4, 16 }
 0x238   :  { %v1432_v51 = vpop.f32.mrb[84].mxu1  ;;  %6132 = vmatprep.mubr.msk.bf16.mxu1 %vm7265_vm3, %v9153_v1  ;;  %6177 = vmatpush3.bf16.msra.mxu1 %v6931_v13  ;;  %v1793_v24 = vrot.slane %v8034_v4, 1  ;;  %v2079_v27 = vrot.slane %v8034_v4, 2  ;;  %v2365_v61 = vrot.slane %v8034_v4, 3  ;;  %v8058_v59 = vor.u32 %v2789_v7, %v2788_v8 }
 0x239   :  { %v1491_v29 = vmax.f32 %v7962_v12, %v1480_v43  ;;  %v1481_v50 = vadd.f32 %v7923_v33, %v1470_v54  ;;  %v1433_v30 = vadd.f32 %v1432_v51, %v7898_v34  ;;  %v1434_v36 = vpop.f32.mrb[85].mxu1  ;;  %v1530_v53 = vrot.slane %v8048_v55, 1  ;;  %6178 = vmatprep.subr.bf16.mxu1 %v9153_v1 }
 0x23a   :  { %v1435_v18 = vpop.f32.mrb[86].mxu1  ;;  %v1933_v37 = vrot.slane %v8051_v60, 1  ;;  %v1934_v49 = vrot.slane %v8048_v55, 2  ;;  %v8073_v12 = vsel %vm1791_vm5, %v1792_v21, %v1793_v24  ;;  %v2219_v34 = vrot.slane %v8051_v60, 2 }
 0x23b   :  { %v1492_v6 = vmax.f32 %v7973_v41, %v1481_v50  ;;  %v1460_v16 = vmax.f32 %v1433_v30, 0.0  ;;  %v1436_v23 = vadd.f32 %v1435_v18, %v7900_v39  ;;  %v1437_v47 = vpop.f32.mrb[87].mxu1  ;;  %v1531_v44 = vsel %vm1519_vm6, %v1526_v42, %v1530_v53 }
 0x23c   :  { %6097 = vmatmul.mubr.msk.bf16.vlgmr.msra.gmra.mrb[48].mxu0 %vm1580_vm4, %v1531_v44  ;;  %v1534_v10 = vor.u32 %v8051_v60, %v1530_v53  ;;  %6179 = vmatpush3.bf16.msra.mxu1 %v7958_v56  ;;  %v1935_v57 = vor.u32 %v1934_v49, %v1933_v37  ;;  %v2220_v21 = vrot.slane %v8048_v55, 3  ;;  %v8086_v63 = vsel %vm2077_vm7, %v2078_v46, %v2079_v27  ;;  %v6929_v56 = vld [vmem:[%s9137_s6 + $0x40] sm:$0xff]   ;;  %v6933_v53 = vld [vmem:[%s9137_s6 + $0x48] sm:$0xff]  }
 0x23d   :  { %v8088_v41 = vpack.c.bf16 %v1492_v6, %v1491_v29  ;;  %v1471_v39 = vmul.f32 %v7916_v15, %v1460_v16  ;;  %v1461_v9 = vmax.f32 %v1436_v23, 0.0  ;;  %6145 = vmatpush3.bf16.msra.mxu0 %v6927_v17  ;;  %6100 = vmatprep.mubr.msk.bf16.mxu0 %vm7265_vm3, %v9153_v1  ;;  %v2505_v40 = vrot.slane %v8051_v60, 3 }
 0x23e   :  { %6146 = vmatprep.subr.bf16.mxu0 %v9153_v1  ;;  %v8099_v46 = vsel %vm1929_vm8, %v1932_v32, %v1935_v57  ;;  %6228 = vmatprep.subr.bf16.mxu1 %v9153_v1  ;;  %v2221_v13 = vor.u32 %v2220_v21, %v2219_v34  ;;  %v2506_v26 = vrot.slane %v8048_v55, 4  ;;  %v8106_v31 = vsel %vm707_vm1, %v2364_v48, %v2365_v61 }
 0x23f   :  { %v1482_v45 = vadd.f32 %v7923_v33, %v1471_v39  ;;  %v1472_v25 = vmul.f32 %v7916_v15, %v1461_v9  ;;  %6133 = vmatmul.mubr.msk.bf16.gmra.mrb[104].mxu1 %vm1580_vm4, %v8088_v41  ;;  %v8113_v42 = vshll.u32 %v8088_v41, 16  ;;  %v8116_v32 = vshrl.u32 %v8088_v41, 16 }
 0x240   :  { %v1440_v8 = vpop.f32.mrb[88].mxu1  ;;  %6136 = vmatprep.mubr.msk.bf16.mxu1 %vm7265_vm3, %v9153_v1  ;;  %v1795_v48 = vrot.slane %v8088_v41, 1  ;;  %v8123_v7 = vsel %vm2215_vm9, %v8029_v19, %v2221_v13  ;;  %v2081_v43 = vrot.slane %v8088_v41, 2  ;;  %v8126_v54 = vor.u32 %v2506_v26, %v2505_v40 }
 0x241   :  { %v1493_v51 = vmax.f32 %v7979_v58, %v1482_v45  ;;  %v1483_v29 = vadd.f32 %v7923_v33, %v1472_v25  ;;  %v1441_v50 = vadd.f32 %v1440_v8, %v7904_v0  ;;  %v1442_v30 = vpop.f32.mrb[89].mxu1  ;;  %v1538_v36 = vrot.slane %v8113_v42, 1  ;;  %6147 = vmatpush3.bf16.msra.mxu0 %v6929_v56 }
 0x242   :  { %v1443_v19 = vpop.f32.mrb[90].mxu1  ;;  %6148 = vmatprep.subr.bf16.mxu0 %v9153_v1  ;;  %v1937_v17 = vrot.slane %v8116_v32, 1  ;;  %v1938_v18 = vrot.slane %v8113_v42, 2  ;;  %v8141_v58 = vsel %vm1791_vm5, %v1793_v24, %v1795_v48  ;;  %v2223_v0 = vrot.slane %v8116_v32, 2 }
 0x243   :  { %v1494_v37 = vmax.f32 %v7982_v5, %v1483_v29  ;;  %v1462_v49 = vmax.f32 %v1441_v50, 0.0  ;;  %v1444_v34 = vadd.f32 %v1443_v19, %v7906_v11  ;;  %v1445_v6 = vpop.f32.mrb[91].mxu1  ;;  %v1539_v16 = vsel %vm1519_vm6, %v1534_v10, %v1538_v36 }
 0x244   :  { %6101 = vmatmul.mubr.msk.bf16.gmra.mrb[52].mxu0 %vm1580_vm4, %v1539_v16  ;;  %v1542_v23 = vor.u32 %v8116_v32, %v1538_v36  ;;  %v1939_v47 = vor.u32 %v1938_v18, %v1937_v17  ;;  %v2224_v44 = vrot.slane %v8113_v42, 3  ;;  %v8155_v24 = vsel %vm2077_vm7, %v2079_v27, %v2081_v43 }
 0x245   :  { %v8157_v5 = vpack.c.bf16 %v1494_v37, %v1493_v51  ;;  %v1473_v11 = vmul.f32 %v7916_v15, %v1462_v49  ;;  %v1463_v21 = vmax.f32 %v1444_v34, 0.0  ;;  %6104 = vmatprep.mubr.msk.bf16.mxu0 %vm7265_vm3, %v9153_v1  ;;  %6149 = vmatpush3.bf16.msra.mxu0 %v6933_v53  ;;  %v8165_v10 = vsel %vm2501_vm10, %v8039_v52, %v8126_v54 }
 0x246   :  { %6150 = vmatprep.subr.bf16.mxu0 %v9153_v1  ;;  %v8169_v39 = vsel %vm1929_vm8, %v1935_v57, %v1939_v47  ;;  %v2225_v27 = vor.u32 %v2224_v44, %v2223_v0  ;;  %v2509_v9 = vrot.slane %v8116_v32, 3  ;;  %v2510_v56 = vrot.slane %v8113_v42, 4 }
 0x247   :  { %v1484_v40 = vadd.f32 %v7923_v33, %v1473_v11  ;;  %v1474_v26 = vmul.f32 %v7916_v15, %v1463_v21  ;;  %6137 = vmatmul.mubr.msk.bf16.gmra.mrb[108].mxu1 %vm1580_vm4, %v8157_v5  ;;  %v8178_v52 = vshll.u32 %v8157_v5, 16  ;;  %v8181_v45 = vshrl.u32 %v8157_v5, 16 }
 0x248   :  { %v1448_v57 = vpop.f32.mrb[92].mxu1  ;;  %6140 = vmatprep.mubr.msk.bf16.mxu1 %vm7265_vm3, %v9153_v1  ;;  %v1797_v25 = vrot.slane %v8157_v5, 1  ;;  %v8187_v8 = vsel %vm2215_vm9, %v2221_v13, %v2225_v27  ;;  %v2083_v51 = vrot.slane %v8157_v5, 2  ;;  %v2511_v29 = vor.u32 %v2510_v56, %v2509_v9 }
 0x249   :  { %v1495_v50 = vmax.f32 %v7985_v62, %v1484_v40  ;;  %v1485_v30 = vadd.f32 %v7923_v33, %v1474_v26  ;;  %v1449_v36 = vadd.f32 %v1448_v57, %v7909_v2  ;;  %v1546_v53 = vrot.slane %v8178_v52, 1  ;;  %6151 = vmatpush3.bf16.msra.mxu0 %v7988_v20  ;;  %v1450_v19 = vpop.f32.mrb[93].mxu1 }
 0x24a   :  { %v1941_v17 = vrot.slane %v8181_v45, 1  ;;  %v1942_v18 = vrot.slane %v8178_v52, 2  ;;  %6200 = vmatprep.subr.bf16.mxu0 %v9153_v1  ;;  %v8199_v13 = vsel %vm1791_vm5, %v1795_v48, %v1797_v25  ;;  %v2227_v62 = vrot.slane %v8181_v45, 2  ;;  %v1451_v0 = vpop.f32.mrb[94].mxu1 }
 0x24b   :  { %v1496_v37 = vmax.f32 %v8001_v28, %v1485_v30  ;;  %v1464_v2 = vmax.f32 %v1449_v36, 0.0  ;;  %v1547_v49 = vsel %vm1519_vm6, %v1542_v23, %v1546_v53  ;;  %v1550_v20 = vor.u32 %v8181_v45, %v1546_v53  ;;  %v1452_v34 = vpop.f32.mrb[95].mxu1 }
 0x24c   :  { %6105 = vmatmul.mubr.msk.bf16.gmra.mrb[56].mxu0 %vm1580_vm4, %v1547_v49  ;;  %v1943_v6 = vor.u32 %v1942_v18, %v1941_v17  ;;  %v2228_v16 = vrot.slane %v8178_v52, 3  ;;  %v8210_v48 = vsel %vm2077_vm7, %v2081_v43, %v2083_v51  ;;  %v8214_v44 = vsel %vm2501_vm10, %v8126_v54, %v2511_v29 }
 0x24d   :  { %v8216_v28 = vpack.c.bf16 %v1496_v37, %v1495_v50  ;;  %v1475_v23 = vmul.f32 %v7916_v15, %v1464_v2  ;;  %6108 = vmatprep.mubr.msk.bf16.mxu0 %vm7265_vm3, %v9153_v1  ;;  %v2513_v11 = vrot.slane %v8181_v45, 3  ;;  %v2514_v21 = vrot.slane %v8178_v52, 4 }
 0x24e   :  { %v8224_v9 = vsel %vm1929_vm8, %v1939_v47, %v1943_v6  ;;  %v2229_v43 = vor.u32 %v2228_v16, %v2227_v62  ;;  %v2367_v56 = vrot.slane %v8088_v41, 3  ;;  %v2369_v54 = vrot.slane %v8157_v5, 3 }
 0x24f   :  { %v1486_v40 = vadd.f32 %v7923_v33, %v1475_v23  ;;  %6141 = vmatmul.mubr.msk.bf16.gmra.mrb[112].mxu1 %vm1580_vm4, %v8216_v28  ;;  %v8232_v15 = vshll.u32 %v8216_v28, 16  ;;  %v8235_v26 = vshrl.u32 %v8216_v28, 16  ;;  %v9151_v47 = vrot.slane %v8216_v28, 1 }
 0x250   :  { %6180 = vmatprep.mubr.msk.bf16.mxu1 %vm7265_vm3, %v9153_v1  ;;  %v8241_v57 = vsel %vm2215_vm9, %v2225_v27, %v2229_v43  ;;  %v9150_v33 = vrot.slane %v8216_v28, 2  ;;  %v2515_v50 = vor.u32 %v2514_v21, %v2513_v11  ;;  %v8247_v30 = vsel %vm707_vm1, %v2365_v61, %v2367_v56 }
 0x251   :  { %v1497_v36 = vmax.f32 %v8004_v35, %v1486_v40  ;;  %v1554_v53 = vrot.slane %v8232_v15, 1  ;;  %v1945_v19 = vrot.slane %v8235_v26, 1  ;;  %v1946_v17 = vrot.slane %v8232_v15, 2 }
 0x252   :  { %v8256_v27 = vsel %vm1791_vm5, %v1797_v25, %v9151_v47  ;;  %v2231_v18 = vrot.slane %v8235_v26, 2  ;;  %v2232_v62 = vrot.slane %v8232_v15, 3  ;;  %v8263_v61 = vsel %vm2077_vm7, %v2083_v51, %v9150_v33  ;;  %v6936_v25 = vld [vmem:[%s9137_s6 + $0x8c] sm:$0xff]  }
 0x253   :  { %v1555_v35 = vsel %vm1519_vm6, %v1550_v20, %v1554_v53  ;;  %v8266_v0 = vor.u32 %v1946_v17, %v1945_v19  ;;  %v2650_v37 = vrot.slane %v7975_v3, 4  ;;  %v3082_v2 = vrot.slane %v7995_v38, 5 }
 0x254   :  { %6109 = vmatmul.mubr.msk.bf16.gmra.mrb[60].mxu0 %vm1580_vm4, %v1555_v35  ;;  %v8274_v49 = vor.u32 %v2232_v62, %v2231_v18  ;;  %v8277_v34 = vsel %vm2501_vm10, %v2511_v29, %v2515_v50  ;;  %v2517_v51 = vrot.slane %v8235_v26, 3  ;;  %v2518_v20 = vrot.slane %v8232_v15, 4 }
 0x255   :  { %v8281_v16 = vpack.c.bf16 %v1497_v36, %v1497_v36  ;;  %6112 = vmatprep.mubr.msk.bf16.mxu0 %vm7265_vm3, %v9153_v1  ;;  %v8287_v38 = vsel %vm1929_vm8, %v1943_v6, %v8266_v0  ;;  %v8290_v23 = vsel %vm707_vm1, %v2367_v56, %v2369_v54  ;;  %v9149_v11 = vrot.slane %v8216_v28, 3 }
 0x256   :  { %v8295_v29 = vsel %vm2215_vm9, %v2229_v43, %v8274_v49  ;;  %v8297_v21 = vor.u32 %v2518_v20, %v2517_v51  ;;  %v2791_v40 = vrot.slane %v8051_v60, 4  ;;  %v2792_v36 = vrot.slane %v8048_v55, 5 }
 0x257   :  { %6181 = vmatmul.mubr.msk.bf16.vlgmr.msra.gmra.mrb[116].mxu1 %vm1580_vm4, %v8099_v46  ;;  %v8306_v6 = vsel %vm707_vm1, %v2369_v54, %v9149_v11  ;;  %v2795_v56 = vrot.slane %v8116_v32, 4  ;;  %v2796_v43 = vrot.slane %v8113_v42, 5  ;;  %v2651_v19 = vrot.slane %v8034_v4, 4  ;;  %v6938_v46 = vld [vmem:[%s9137_s6 + $0x94] sm:$0xff]  }
 0x258   :  { %6184 = vmatprep.mubr.msk.bf16.mxu1 %vm7265_vm3, %v9153_v1  ;;  %6229 = vmatpush3.bf16.msra.mxu1 %v6936_v25  ;;  %v8318_v17 = vsel %vm2501_vm10, %v2515_v50, %v8297_v21  ;;  %v2793_v54 = vor.u32 %v2792_v36, %v2791_v40  ;;  %v2799_v18 = vrot.slane %v8181_v45, 4  ;;  %v2800_v62 = vrot.slane %v8178_v52, 5 }
 0x259   :  { %v1558_v35 = vor.u32 %v8235_v26, %v1554_v53  ;;  %6230 = vmatprep.subr.bf16.mxu1 %v9153_v1  ;;  %v2797_v51 = vor.u32 %v2796_v43, %v2795_v56  ;;  %v8325_v25 = vsel %vm2649_vm11, %v2650_v37, %v2651_v19  ;;  %v2653_v20 = vrot.slane %v8088_v41, 4 }
 0x25a   :  { %v8330_v11 = vsel %vm2787_vm12, %v8058_v59, %v2793_v54  ;;  %v2801_v50 = vor.u32 %v2800_v62, %v2799_v18  ;;  %v2803_v40 = vrot.slane %v8235_v26, 4  ;;  %v2804_v36 = vrot.slane %v8232_v15, 5  ;;  %v6939_v59 = vld [vmem:[%s9137_s6 + $0x9c] sm:$0xff]  }
 0x25b   :  { %v8335_v33 = vsel %vm2787_vm12, %v2793_v54, %v2797_v51  ;;  %v8338_v53 = vsel %vm2649_vm11, %v2651_v19, %v2653_v20  ;;  %v2655_v37 = vrot.slane %v8157_v5, 4  ;;  %v2808_v56 = vshll.u32 %v8281_v16, 16 }
 0x25c   :  { %6113 = vmatmul.mubr.msk.bf16.gmra.mrb[64].mxu0 %vm1580_vm4, %v1558_v35  ;;  %6231 = vmatpush3.bf16.msra.mxu1 %v6938_v46  ;;  %v8347_v43 = vsel %vm2787_vm12, %v2797_v51, %v2801_v50  ;;  %v2805_v18 = vor.u32 %v2804_v36, %v2803_v40  ;;  %v9152_v54 = vrot.slane %v8216_v28, 4  ;;  %v3083_v19 = vrot.slane %v7998_v22, 6 }
 0x25d   :  { %6152 = vmatprep.mubr.msk.bf16.mxu0 %vm7265_vm3, %v9153_v1  ;;  %6232 = vmatprep.subr.bf16.mxu1 %v9153_v1  ;;  %v8355_v46 = vsel %vm2649_vm11, %v2653_v20, %v2655_v37  ;;  %v2810_v62 = vrot.slane %v2808_v56, 5  ;;  %v3085_v35 = vrot.slane %v8051_v60, 5  ;;  %v3086_v51 = vrot.slane %v8048_v55, 6 }
 0x25e   :  { %v8360_v40 = vsel %vm2787_vm12, %v2801_v50, %v2805_v18  ;;  %v8365_v22 = vsel %vm2649_vm11, %v2655_v37, %v9152_v54  ;;  %v3084_v36 = vor.u32 %v3083_v19, %v3082_v2  ;;  %v3089_v47 = vrot.slane %v8116_v32, 5 }
 0x25f   :  { %6185 = vmatmul.mubr.msk.bf16.gmra.mrb[120].mxu1 %vm1580_vm4, %v8169_v39  ;;  %v8371_v20 = vsel %vm2787_vm12, %v2805_v18, %v2810_v62  ;;  %v3087_v60 = vor.u32 %v3086_v51, %v3085_v35  ;;  %v3090_v55 = vrot.slane %v8113_v42, 6  ;;  %v2942_v50 = vrot.slane %v7975_v3, 5  ;;  %v6935_v18 = vld [vmem:[%s9137_s6 + $0x70] sm:$0xff]  }
 0x260   :  { %6188 = vmatprep.mubr.msk.bf16.mxu1 %vm7265_vm3, %v9153_v1  ;;  %6233 = vmatpush3.bf16.msra.mxu1 %v6939_v59  ;;  %v2943_v37 = vrot.slane %v8034_v4, 5  ;;  %v3093_v2 = vrot.slane %v8181_v45, 5  ;;  %v3094_v32 = vrot.slane %v8178_v52, 6  ;;  %v2945_v39 = vrot.slane %v8088_v41, 5 }
 0x261   :  { %6234 = vmatprep.subr.bf16.mxu1 %v9153_v1  ;;  %v8386_v42 = vsel %vm3081_vm13, %v3084_v36, %v3087_v60  ;;  %v3091_v19 = vor.u32 %v3090_v55, %v3089_v47  ;;  %v3097_v59 = vrot.slane %v8235_v26, 5  ;;  %v3098_v62 = vrot.slane %v8232_v15, 6 }
 0x262   :  { %v8391_v45 = vsel %vm2941_vm14, %v2942_v50, %v2943_v37  ;;  %v3095_v52 = vor.u32 %v3094_v32, %v3093_v2  ;;  %v8394_v35 = vsel %vm2941_vm14, %v2943_v37, %v2945_v39  ;;  %v2947_v51 = vrot.slane %v8157_v5, 5 }
 0x263   :  { %v8398_v54 = vsel %vm3081_vm13, %v3087_v60, %v3091_v19  ;;  %v3099_v1 = vor.u32 %v3098_v62, %v3097_v59  ;;  %v3101_v36 = vshrl.u32 %v8281_v16, 16  ;;  %v3104_v47 = vrot.slane %v2808_v56, 6 }
 0x264   :  { %6153 = vmatmul.mubr.msk.bf16.vlgmr.msra.gmra.mrb[68].mxu0 %vm1580_vm4, %v8073_v12  ;;  %6235 = vmatpush3.bf16.msra.mxu1 %v8013_v14  ;;  %v8405_v15 = vsel %vm3081_vm13, %v3091_v19, %v3095_v52  ;;  %v8408_v26 = vsel %vm2941_vm14, %v2945_v39, %v2947_v51  ;;  %v2949_v55 = vrot.slane %v8216_v28, 5  ;;  %v2951_v60 = vrot.slane %v8281_v16, 5  ;;  %v6937_v12 = vld [vmem:[%s9137_s6 + $0x78] sm:$0xff]  }
 0x265   :  { %6201 = vmatpush3.bf16.msra.mxu0 %v6935_v18  ;;  %v9157_v50 = vmov 0.0   ;;  %v8418_v14 = vsel %vm3081_vm13, %v3095_v52, %v3099_v1  ;;  %v3103_v56 = vrot.slane %v3101_v36, 5  ;;  %v3236_v37 = vrot.slane %v7975_v3, 6  ;;  %v6942_v36 = vld [vmem:[%s9137_s6 + $0x88] ss:$0 sps:$4 sm:$0x11]  }
 0x266   :  { %6156 = vmatprep.mubr.msk.bf16.mxu0 %vm7265_vm3, %v9157_v50  ;;  %v3237_v2 = vrot.slane %v8034_v4, 6  ;;  %6202 = vmatprep.subr.bf16.mxu0 %v9157_v50  ;;  %v8425_v32 = vsel %vm2941_vm14, %v2947_v51, %v2949_v55  ;;  %v8428_v39 = vsel %vm2941_vm14, %v2949_v55, %v2951_v60  ;;  %v3239_v18 = vrot.slane %v8088_v41, 6  ;;  %v6950_v55 = vld [vmem:[%s9137_s6 + $0xc0] ss:$0 sps:$4 sm:$0x11]  }
 0x267   :  { %6284 = vmatprep.subr.bf16.mxu1 %v9157_v50  ;;  %v3241_v19 = vrot.slane %v8157_v5, 6  ;;  %6189 = vmatmul.mubr.msk.bf16.gmra.mrb[124].mxu1 %vm1580_vm4, %v8224_v9  ;;  %v3105_v3 = vor.u32 %v3104_v47, %v3103_v56  ;;  %v3243_v59 = vrot.slane %v8216_v28, 6  ;;  %v3245_v62 = vrot.slane %v8281_v16, 6  ;;  %v6941_v5 = vld [vmem:[%s9137_s6 + $0x80] sm:$0xff]  }
 0x268   :  { %v8435_v4 = vsel %vm3235_vm15, %v3236_v37, %v3237_v2  ;;  %6192 = vmatprep.mubr.msk.bf16.mxu1 %vm7265_vm3, %v9157_v50  ;;  %v8442_v52 = vsel %vm3235_vm15, %v3237_v2, %v3239_v18  ;;  %v6966_v37 = vld [vmem:[%s9137_s6 + $0x130] ss:$0 sps:$4 sm:$0x11]   ;;  %v6970_v2 = vld [vmem:[%s9137_s6 + $0x168] ss:$0 sps:$4 sm:$0x11]  }
 0x269   :  { %v8445_v41 = vsel %vm3235_vm15, %v3239_v18, %v3241_v19  ;;  %6203 = vmatpush3.bf16.msra.mxu0 %v6937_v12  ;;  %v8451_v9 = vsel %vm3081_vm13, %v3099_v1, %v3105_v3  ;;  %v8454_v51 = vsel %vm3235_vm15, %v3241_v19, %v3243_v59  ;;  %v8457_v16 = vsel %vm3235_vm15, %v3243_v59, %v3245_v62  ;;  %v6958_v12 = vld [vmem:[%s9137_s6 + $0xf8] ss:$0 sps:$4 sm:$0x11]  }
 0x26a   :  { %6204 = vmatprep.subr.bf16.mxu0 %v9157_v50  ;;  %v2124_v1 = vsel %vm1596_vm2, %v6942_v36, 0  ;;  %v3284_v3 = vsel %vm1596_vm2, %v6970_v2, 0 }
 0x26c   :  { %6157 = vmatmul.mubr.msk.bf16.gmra.mrb[72].mxu0 %vm1580_vm4, %v8141_v58  ;;  %v6944_v58 = vld [vmem:[%s9137_s6 + $0xc4] sm:$0xff]  }
 0x26d   :  { %6160 = vmatprep.mubr.msk.bf16.mxu0 %vm7265_vm3, %v9157_v50  ;;  %6205 = vmatpush3.bf16.msra.mxu0 %v6941_v5 }
 0x26e   :  { %6206 = vmatprep.subr.bf16.mxu0 %v9157_v50 }
 0x26f   :  { %6193 = vmatmul.mubr.msk.bf16.gmra.mrb[128].mxu1 %vm1580_vm4, %v8287_v38  ;;  %v6943_v38 = vld [vmem:[%s9137_s6 + $0xa8] sm:$0xff]  }
 0x270   :  { %6196 = vmatprep.mubr.msk.bf16.mxu1 %vm7265_vm3, %v9157_v50 }
 0x271   :  { %6207 = vmatpush3.bf16.msra.mxu0 %v2124_v1 }
 0x272   :  { %6256 = vmatprep.subr.bf16.mxu0 %v9157_v50 }
 0x274   :  { %6161 = vmatmul.mubr.msk.bf16.gmra.mrb[76].mxu0 %vm1580_vm4, %v8199_v13  ;;  %v6946_v13 = vld [vmem:[%s9137_s6 + $0xcc] sm:$0xff]  }
 0x275   :  { %6164 = vmatprep.mubr.msk.bf16.mxu0 %vm7265_vm3, %v9157_v50 }
 0x277   :  { %6197 = vmatmul.mubr.msk.bf16.gmra.mrb[132].mxu1 %vm1580_vm4, %v8266_v0  ;;  %v6947_v0 = vld [vmem:[%s9137_s6 + $0xd4] sm:$0xff]  }
 0x278   :  { %6236 = vmatprep.mubr.msk.bf16.mxu1 %vm7265_vm3, %v9157_v50 }
 0x27c   :  { %6165 = vmatmul.mubr.msk.bf16.gmra.mrb[80].mxu0 %vm1580_vm4, %v8256_v27  ;;  %v9158_v27 = vrot.slane %v8216_v28, 1 }
 0x27d   :  { %6168 = vmatprep.mubr.msk.bf16.mxu0 %vm7265_vm3, %v9157_v50 }
 0x27f   :  { %6237 = vmatmul.mubr.msk.bf16.vlgmr.msra.gmra.mrb[136].mxu1 %vm1580_vm4, %v8123_v7  ;;  %v6948_v7 = vld [vmem:[%s9137_s6 + $0xdc] ss:$0 sps:$4 sm:$0x11]  }
 0x280   :  { %6240 = vmatprep.mubr.msk.bf16.mxu1 %vm7265_vm3, %v9157_v50  ;;  %6285 = vmatpush3.bf16.msra.mxu1 %v6944_v58  ;;  %v2558_v47 = vsel %vm1596_vm2, %v6948_v7, 0 }
 0x281   :  { %6286 = vmatprep.subr.bf16.mxu1 %v9157_v50 }
 0x284   :  { %6169 = vmatmul.mubr.msk.bf16.gmra.mrb[84].mxu0 %vm1580_vm4, %v9158_v27  ;;  %6287 = vmatpush3.bf16.msra.mxu1 %v6946_v13 }
 0x285   :  { %6208 = vmatprep.mubr.msk.bf16.mxu0 %vm7265_vm3, %v9157_v50  ;;  %6288 = vmatprep.subr.bf16.mxu1 %v9157_v50 }
 0x287   :  { %6241 = vmatmul.mubr.msk.bf16.gmra.mrb[140].mxu1 %vm1580_vm4, %v8187_v8  ;;  %v6945_v8 = vld [vmem:[%s9137_s6 + $0xb0] sm:$0xff]  }
 0x288   :  { %6244 = vmatprep.mubr.msk.bf16.mxu1 %vm7265_vm3, %v9157_v50  ;;  %6289 = vmatpush3.bf16.msra.mxu1 %v6947_v0 }
 0x289   :  { %6290 = vmatprep.subr.bf16.mxu1 %v9157_v50 }
 0x28c   :  { %6209 = vmatmul.mubr.msk.bf16.vlgmr.msra.gmra.mrb[88].mxu0 %vm1580_vm4, %v8086_v63  ;;  %6291 = vmatpush3.bf16.msra.mxu1 %v2558_v47  ;;  %v6949_v63 = vld [vmem:[%s9137_s6 + $0xb8] sm:$0xff]  }
 0x28d   :  { %6257 = vmatpush3.bf16.msra.mxu0 %v6943_v38  ;;  %6212 = vmatprep.mubr.msk.bf16.mxu0 %vm7265_vm3, %v9157_v50 }
 0x28e   :  { %6258 = vmatprep.subr.bf16.mxu0 %v9157_v50  ;;  %6340 = vmatprep.subr.bf16.mxu1 %v9157_v50 }
 0x28f   :  { %6245 = vmatmul.mubr.msk.bf16.gmra.mrb[144].mxu1 %vm1580_vm4, %v8241_v57  ;;  %v2410_v57 = vsel %vm1596_vm2, %v6950_v55, 0 }
 0x290   :  { %6248 = vmatprep.mubr.msk.bf16.mxu1 %vm7265_vm3, %v9157_v50 }
 0x291   :  { %6259 = vmatpush3.bf16.msra.mxu0 %v6945_v8 }
 0x292   :  { %6260 = vmatprep.subr.bf16.mxu0 %v9157_v50 }
 0x294   :  { %6213 = vmatmul.mubr.msk.bf16.gmra.mrb[92].mxu0 %vm1580_vm4, %v8155_v24  ;;  %v6952_v24 = vld [vmem:[%s9137_s6 + $0xfc] sm:$0xff]  }
 0x295   :  { %6216 = vmatprep.mubr.msk.bf16.mxu0 %vm7265_vm3, %v9157_v50  ;;  %6261 = vmatpush3.bf16.msra.mxu0 %v6949_v63 }
 0x296   :  { %6262 = vmatprep.subr.bf16.mxu0 %v9157_v50 }
 0x297   :  { %6249 = vmatmul.mubr.msk.bf16.gmra.mrb[148].mxu1 %vm1580_vm4, %v8295_v29  ;;  %v6951_v29 = vld [vmem:[%s9137_s6 + $0xe0] sm:$0xff]  }
 0x298   :  { %6252 = vmatprep.mubr.msk.bf16.mxu1 %vm7265_vm3, %v9157_v50 }
 0x299   :  { %6263 = vmatpush3.bf16.msra.mxu0 %v2410_v57 }
 0x29a   :  { %6312 = vmatprep.subr.bf16.mxu0 %v9157_v50 }
 0x29c   :  { %6217 = vmatmul.mubr.msk.bf16.gmra.mrb[96].mxu0 %vm1580_vm4, %v8210_v48  ;;  %v6954_v48 = vld [vmem:[%s9137_s6 + $0x104] sm:$0xff]  }
 0x29d   :  { %6220 = vmatprep.mubr.msk.bf16.mxu0 %vm7265_vm3, %v9157_v50 }
 0x29f   :  { %6253 = vmatmul.mubr.msk.bf16.gmra.mrb[152].mxu1 %vm1580_vm4, %v8274_v49  ;;  %v6955_v49 = vld [vmem:[%s9137_s6 + $0x10c] sm:$0xff]  }
 0x2a0   :  { %6292 = vmatprep.mubr.msk.bf16.mxu1 %vm7265_vm3, %v9157_v50 }
 0x2a4   :  { %6221 = vmatmul.mubr.msk.bf16.gmra.mrb[100].mxu0 %vm1580_vm4, %v8263_v61  ;;  %v9159_v61 = vrot.slane %v8216_v28, 2 }
 0x2a5   :  { %6224 = vmatprep.mubr.msk.bf16.mxu0 %vm7265_vm3, %v9157_v50 }
 0x2a7   :  { %6293 = vmatmul.mubr.msk.bf16.vlgmr.msra.gmra.mrb[156].mxu1 %vm1580_vm4, %v8165_v10  ;;  %v6956_v10 = vld [vmem:[%s9137_s6 + $0x114] ss:$0 sps:$4 sm:$0x11]  }
 0x2a8   :  { %6296 = vmatprep.mubr.msk.bf16.mxu1 %vm7265_vm3, %v9157_v50  ;;  %6341 = vmatpush3.bf16.msra.mxu1 %v6952_v24  ;;  %v2849_v60 = vsel %vm1596_vm2, %v6956_v10, 0 }
 0x2a9   :  { %6342 = vmatprep.subr.bf16.mxu1 %v9157_v50 }
 0x2ac   :  { %6225 = vmatmul.mubr.msk.bf16.gmra.mrb[104].mxu0 %vm1580_vm4, %v9159_v61  ;;  %6343 = vmatpush3.bf16.msra.mxu1 %v6954_v48 }
 0x2ad   :  { %6264 = vmatprep.mubr.msk.bf16.mxu0 %vm7265_vm3, %v9157_v50  ;;  %6344 = vmatprep.subr.bf16.mxu1 %v9157_v50 }
 0x2af   :  { %6297 = vmatmul.mubr.msk.bf16.gmra.mrb[160].mxu1 %vm1580_vm4, %v8214_v44  ;;  %v6953_v44 = vld [vmem:[%s9137_s6 + $0xe8] sm:$0xff]  }
 0x2b0   :  { %6300 = vmatprep.mubr.msk.bf16.mxu1 %vm7265_vm3, %v9157_v50  ;;  %6345 = vmatpush3.bf16.msra.mxu1 %v6955_v49 }
 0x2b1   :  { %6346 = vmatprep.subr.bf16.mxu1 %v9157_v50 }
 0x2b4   :  { %6265 = vmatmul.mubr.msk.bf16.vlgmr.msra.gmra.mrb[108].mxu0 %vm1580_vm4, %v8106_v31  ;;  %6347 = vmatpush3.bf16.msra.mxu1 %v2849_v60  ;;  %v6957_v31 = vld [vmem:[%s9137_s6 + $0xf0] sm:$0xff]  }
 0x2b5   :  { %6313 = vmatpush3.bf16.msra.mxu0 %v6951_v29  ;;  %6268 = vmatprep.mubr.msk.bf16.mxu0 %vm7265_vm3, %v9157_v50 }
 0x2b6   :  { %6314 = vmatprep.subr.bf16.mxu0 %v9157_v50  ;;  %6396 = vmatprep.subr.bf16.mxu1 %v9157_v50 }
 0x2b7   :  { %6301 = vmatmul.mubr.msk.bf16.gmra.mrb[164].mxu1 %vm1580_vm4, %v8277_v34  ;;  %v2696_v34 = vsel %vm1596_vm2, %v6958_v12, 0 }
 0x2b8   :  { %6304 = vmatprep.mubr.msk.bf16.mxu1 %vm7265_vm3, %v9157_v50 }
 0x2b9   :  { %6315 = vmatpush3.bf16.msra.mxu0 %v6953_v44 }
 0x2ba   :  { %6316 = vmatprep.subr.bf16.mxu0 %v9157_v50 }
 0x2bc   :  { %6269 = vmatmul.mubr.msk.bf16.gmra.mrb[112].mxu0 %vm1580_vm4, %v8247_v30  ;;  %v6960_v30 = vld [vmem:[%s9137_s6 + $0x134] sm:$0xff]  }
 0x2bd   :  { %6272 = vmatprep.mubr.msk.bf16.mxu0 %vm7265_vm3, %v9157_v50  ;;  %6317 = vmatpush3.bf16.msra.mxu0 %v6957_v31 }
 0x2be   :  { %6318 = vmatprep.subr.bf16.mxu0 %v9157_v50 }
 0x2bf   :  { %6305 = vmatmul.mubr.msk.bf16.gmra.mrb[168].mxu1 %vm1580_vm4, %v8318_v17  ;;  %v6959_v17 = vld [vmem:[%s9137_s6 + $0x118] sm:$0xff]  }
 0x2c0   :  { %6308 = vmatprep.mubr.msk.bf16.mxu1 %vm7265_vm3, %v9157_v50 }
 0x2c1   :  { %6319 = vmatpush3.bf16.msra.mxu0 %v2696_v34 }
 0x2c2   :  { %6368 = vmatprep.subr.bf16.mxu0 %v9157_v50 }
 0x2c4   :  { %6273 = vmatmul.mubr.msk.bf16.gmra.mrb[116].mxu0 %vm1580_vm4, %v8290_v23  ;;  %v6962_v23 = vld [vmem:[%s9137_s6 + $0x13c] sm:$0xff]  }
 0x2c5   :  { %6276 = vmatprep.mubr.msk.bf16.mxu0 %vm7265_vm3, %v9157_v50 }
 0x2c7   :  { %6309 = vmatmul.mubr.msk.bf16.gmra.mrb[172].mxu1 %vm1580_vm4, %v8297_v21  ;;  %v9160_v21 = vrot.slane %v8216_v28, 3 }
 0x2c8   :  { %6348 = vmatprep.mubr.msk.bf16.mxu1 %vm7265_vm3, %v9157_v50 }
 0x2cc   :  { %6277 = vmatmul.mubr.msk.bf16.gmra.mrb[120].mxu0 %vm1580_vm4, %v8306_v6  ;;  %v6963_v6 = vld [vmem:[%s9137_s6 + $0x144] sm:$0xff]  }
 0x2cd   :  { %6280 = vmatprep.mubr.msk.bf16.mxu0 %vm7265_vm3, %v9157_v50 }
 0x2cf   :  { %6349 = vmatmul.mubr.msk.bf16.vlgmr.msra.gmra.mrb[176].mxu1 %vm1580_vm4, %v8330_v11  ;;  %v6964_v11 = vld [vmem:[%s9137_s6 + $0x14c] ss:$0 sps:$4 sm:$0x11]  }
 0x2d0   :  { %6352 = vmatprep.mubr.msk.bf16.mxu1 %vm7265_vm3, %v9157_v50  ;;  %6397 = vmatpush3.bf16.msra.mxu1 %v6960_v30  ;;  %v3144_v56 = vsel %vm1596_vm2, %v6964_v11, 0 }
 0x2d1   :  { %6398 = vmatprep.subr.bf16.mxu1 %v9157_v50 }
 0x2d4   :  { %6281 = vmatmul.mubr.msk.bf16.gmra.mrb[124].mxu0 %vm1580_vm4, %v9160_v21  ;;  %6399 = vmatpush3.bf16.msra.mxu1 %v6962_v23 }
 0x2d5   :  { %6320 = vmatprep.mubr.msk.bf16.mxu0 %vm7265_vm3, %v9157_v50  ;;  %6400 = vmatprep.subr.bf16.mxu1 %v9157_v50 }
 0x2d7   :  { %6353 = vmatmul.mubr.msk.bf16.gmra.mrb[180].mxu1 %vm1580_vm4, %v8335_v33  ;;  %v6961_v33 = vld [vmem:[%s9137_s6 + $0x120] sm:$0xff]  }
 0x2d8   :  { %6356 = vmatprep.mubr.msk.bf16.mxu1 %vm7265_vm3, %v9157_v50  ;;  %6401 = vmatpush3.bf16.msra.mxu1 %v6963_v6 }
 0x2d9   :  { %6402 = vmatprep.subr.bf16.mxu1 %v9157_v50 }
 0x2dc   :  { %6321 = vmatmul.mubr.msk.bf16.vlgmr.msra.gmra.mrb[128].mxu0 %vm1580_vm4, %v8325_v25  ;;  %6403 = vmatpush3.bf16.msra.mxu1 %v3144_v56  ;;  %v6965_v25 = vld [vmem:[%s9137_s6 + $0x128] sm:$0xff]  }
 0x2dd   :  { %6369 = vmatpush3.bf16.msra.mxu0 %v6959_v17  ;;  %6324 = vmatprep.mubr.msk.bf16.mxu0 %vm7265_vm3, %v9157_v50 }
 0x2de   :  { %6370 = vmatprep.subr.bf16.mxu0 %v9157_v50  ;;  %6452 = vmatprep.subr.bf16.mxu1 %v9157_v50 }
 0x2df   :  { %6357 = vmatmul.mubr.msk.bf16.gmra.mrb[184].mxu1 %vm1580_vm4, %v8347_v43  ;;  %v2990_v43 = vsel %vm1596_vm2, %v6966_v37, 0 }
 0x2e0   :  { %6360 = vmatprep.mubr.msk.bf16.mxu1 %vm7265_vm3, %v9157_v50 }
 0x2e1   :  { %6371 = vmatpush3.bf16.msra.mxu0 %v6961_v33 }
 0x2e2   :  { %6372 = vmatprep.subr.bf16.mxu0 %v9157_v50 }
 0x2e4   :  { %6325 = vmatmul.mubr.msk.bf16.gmra.mrb[132].mxu0 %vm1580_vm4, %v8338_v53  ;;  %v9161_v53 = vrot.slane %v8216_v28, 4 }
 0x2e5   :  { %6328 = vmatprep.mubr.msk.bf16.mxu0 %vm7265_vm3, %v9157_v50  ;;  %6373 = vmatpush3.bf16.msra.mxu0 %v6965_v25 }
 0x2e6   :  { %6374 = vmatprep.subr.bf16.mxu0 %v9157_v50 }
 0x2e7   :  { %6361 = vmatmul.mubr.msk.bf16.gmra.mrb[188].mxu1 %vm1580_vm4, %v8360_v40 }
 0x2e8   :  { %6364 = vmatprep.mubr.msk.bf16.mxu1 %vm7265_vm3, %v9157_v50 }
 0x2e9   :  { %6375 = vmatpush3.bf16.msra.mxu0 %v2990_v43 }
 0x2ea   :  { %6424 = vmatprep.subr.bf16.mxu0 %v9157_v50 }
 0x2ec   :  { %6329 = vmatmul.mubr.msk.bf16.gmra.mrb[136].mxu0 %vm1580_vm4, %v8355_v46  ;;  %v6967_v46 = vld [vmem:[%s9137_s6 + $0x150] sm:$0xff]  }
 0x2ed   :  { %6332 = vmatprep.mubr.msk.bf16.mxu0 %vm7265_vm3, %v9157_v50 }
 0x2ef   :  { %6365 = vmatmul.mubr.msk.bf16.gmra.mrb[192].mxu1 %vm1580_vm4, %v8371_v20 }
 0x2f0   :  { %6404 = vmatprep.mubr.msk.bf16.mxu1 %vm7265_vm3, %v9157_v50 }
 0x2f4   :  { %6333 = vmatmul.mubr.msk.bf16.gmra.mrb[140].mxu0 %vm1580_vm4, %v8365_v22 }
 0x2f5   :  { %6336 = vmatprep.mubr.msk.bf16.mxu0 %vm7265_vm3, %v9157_v50 }
 0x2f7   :  { %6405 = vmatmul.mubr.msk.bf16.vlgmr.msra.gmra.mrb[196].mxu1 %vm1580_vm4, %v8386_v42  ;;  %v6969_v42 = vld [vmem:[%s9137_s6 + $0x160] sm:$0xff]  }
 0x2f8   :  { %6408 = vmatprep.mubr.msk.bf16.mxu1 %vm7265_vm3, %v9157_v50 }
 0x2fc   :  { %6337 = vmatmul.mubr.msk.bf16.gmra.mrb[144].mxu0 %vm1580_vm4, %v9161_v53 }
 0x2fd   :  { %6376 = vmatprep.mubr.msk.bf16.mxu0 %vm7265_vm3, %v9157_v50 }
 0x2ff   :  { %6409 = vmatmul.mubr.msk.bf16.gmra.mrb[200].mxu1 %vm1580_vm4, %v8398_v54  ;;  %v6968_v54 = vld [vmem:[%s9137_s6 + $0x158] sm:$0xff]  }
 0x300   :  { %6412 = vmatprep.mubr.msk.bf16.mxu1 %vm7265_vm3, %v9157_v50 }
 0x302   :  { %v1740_v40 = vpop.f32.mrb[96].mxu1 }
 0x303   :  { %v6126_v22 = vpop.f32.mrb[97].mxu1 }
 0x304   :  { %v1743_v20 = vpop.f32.mrb[98].mxu1  ;;  %6377 = vmatmul.mubr.msk.bf16.vlgmr.msra.gmra.mrb[148].mxu0 %vm1580_vm4, %v8391_v45 }
 0x305   :  { %v6127_v28 = vpop.f32.mrb[99].mxu1  ;;  %6425 = vmatpush3.bf16.msra.mxu0 %v6967_v46  ;;  %6380 = vmatprep.mubr.msk.bf16.mxu0 %vm7265_vm3, %v9157_v50 }
 0x306   :  { %6426 = vmatprep.subr.bf16.mxu0 %v9157_v50 }
 0x307   :  { %6413 = vmatmul.mubr.msk.bf16.gmra.mrb[204].mxu1 %vm1580_vm4, %v8405_v15 }
 0x308   :  { %6416 = vmatprep.mubr.msk.bf16.mxu1 %vm7265_vm3, %v9157_v50 }
 0x309   :  { %6427 = vmatpush3.bf16.msra.mxu0 %v6968_v54 }
 0x30a   :  { %v1748_v45 = vpop.f32.mrb[100].mxu1  ;;  %6428 = vmatprep.subr.bf16.mxu0 %v9157_v50 }
 0x30b   :  { %v6130_v18 = vpop.f32.mrb[101].mxu1 }
 0x30c   :  { %v1751_v19 = vpop.f32.mrb[102].mxu1  ;;  %6381 = vmatmul.mubr.msk.bf16.gmra.mrb[152].mxu0 %vm1580_vm4, %v8394_v35 }
 0x30d   :  { %v6131_v15 = vpop.f32.mrb[103].mxu1  ;;  %6384 = vmatprep.mubr.msk.bf16.mxu0 %vm7265_vm3, %v9157_v50  ;;  %6429 = vmatpush3.bf16.msra.mxu0 %v6969_v42 }
 0x30e   :  { %6430 = vmatprep.subr.bf16.mxu0 %v9157_v50 }
 0x30f   :  { %v1634_v59 = vpop.f32.mrb[48].mxu0  ;;  %6417 = vmatmul.mubr.msk.bf16.gmra.mrb[208].mxu1 %vm1580_vm4, %v8418_v14 }
 0x310   :  { %v8754_v62 = vadd.f32 %v1740_v40, %v1634_v59  ;;  %v6098_v5 = vpop.f32.mrb[49].mxu0  ;;  %6420 = vmatprep.mubr.msk.bf16.mxu1 %vm7265_vm3, %v9157_v50 }
 0x311   :  { %v1637_v35 = vpop.f32.mrb[50].mxu0  ;;  %6431 = vmatpush3.bf16.msra.mxu0 %v3284_v3 }
 0x312   :  { %v1744_v36 = vadd.f32 %v1743_v20, %v1637_v35  ;;  %v6099_v1 = vpop.f32.mrb[51].mxu0  ;;  %v1756_v58 = vpop.f32.mrb[104].mxu1 }
 0x313   :  { %v6134_v13 = vpop.f32.mrb[105].mxu1 }
 0x314   :  { %v1759_v27 = vpop.f32.mrb[106].mxu1  ;;  %6385 = vmatmul.mubr.msk.bf16.gmra.mrb[156].mxu0 %vm1580_vm4, %v8408_v26 }
 0x315   :  { %v6135_v0 = vpop.f32.mrb[107].mxu1  ;;  %6388 = vmatprep.mubr.msk.bf16.mxu0 %vm7265_vm3, %v9157_v50 }
 0x317   :  { %v1642_v14 = vpop.f32.mrb[52].mxu0  ;;  %6421 = vmatmul.mubr.msk.bf16.gmra.mrb[212].mxu1 %vm1580_vm4, %v8451_v9 }
 0x318   :  { %v1749_v7 = vadd.f32 %v1748_v45, %v1642_v14  ;;  %v6102_v38 = vpop.f32.mrb[53].mxu0  ;;  %6462 = vmatprep.mubr.msk.bf16.mxu1 %vm7265_vm3, %v9157_v50 }
 0x319   :  { %v1645_v47 = vpop.f32.mrb[54].mxu0 }
 0x31a   :  { %v1752_v8 = vadd.f32 %v1751_v19, %v1645_v47  ;;  %v6103_v63 = vpop.f32.mrb[55].mxu0  ;;  %v1764_v55 = vpop.f32.mrb[108].mxu1 }
 0x31b   :  { %v6138_v57 = vpop.f32.mrb[109].mxu1 }
 0x31c   :  { %v1767_v24 = vpop.f32.mrb[110].mxu1  ;;  %6389 = vmatmul.mubr.msk.bf16.gmra.mrb[160].mxu0 %vm1580_vm4, %v8425_v32 }
 0x31d   :  { %v6139_v26 = vpop.f32.mrb[111].mxu1  ;;  %6392 = vmatprep.mubr.msk.bf16.mxu0 %vm7265_vm3, %v9157_v50 }
 0x31f   :  { %v1650_v48 = vpop.f32.mrb[56].mxu0 }
 0x320   :  { %v8770_v9 = vadd.f32 %v1756_v58, %v1650_v48  ;;  %v6106_v61 = vpop.f32.mrb[57].mxu0 }
 0x321   :  { %v1653_v49 = vpop.f32.mrb[58].mxu0 }
 0x322   :  { %v8772_v10 = vadd.f32 %v1759_v27, %v1653_v49  ;;  %v6107_v29 = vpop.f32.mrb[59].mxu0  ;;  %v1772_v60 = vpop.f32.mrb[112].mxu1 }
 0x323   :  { %v6142_v44 = vpop.f32.mrb[113].mxu1 }
 0x324   :  { %v1775_v31 = vpop.f32.mrb[114].mxu1  ;;  %6393 = vmatmul.mubr.msk.bf16.gmra.mrb[164].mxu0 %vm1580_vm4, %v8428_v39 }
 0x325   :  { %v6143_v12 = vpop.f32.mrb[115].mxu1  ;;  %6432 = vmatprep.mubr.msk.bf16.mxu0 %vm7265_vm3, %v9157_v50 }
 0x327   :  { %v1658_v32 = vpop.f32.mrb[60].mxu0 }
 0x328   :  { %v8778_v34 = vadd.f32 %v1764_v55, %v1658_v32  ;;  %v6110_v30 = vpop.f32.mrb[61].mxu0 }
 0x329   :  { %v1661_v23 = vpop.f32.mrb[62].mxu0 }
 0x32a   :  { %v8780_v21 = vadd.f32 %v1767_v24, %v1661_v23  ;;  %v6111_v6 = vpop.f32.mrb[63].mxu0  ;;  %v2022_v11 = vpop.f32.mrb[116].mxu1 }
 0x32b   :  { %v6182_v17 = vpop.f32.mrb[117].mxu1 }
 0x32c   :  { %v2025_v56 = vpop.f32.mrb[118].mxu1  ;;  %6433 = vmatmul.mubr.msk.bf16.vlgmr.msra.gmra.mrb[168].mxu0 %vm1580_vm4, %v8435_v4 }
 0x32d   :  { %v6183_v33 = vpop.f32.mrb[119].mxu1  ;;  %6436 = vmatprep.mubr.msk.bf16.mxu0 %vm7265_vm3, %v9157_v50 }
 0x32f   :  { %v1666_v39 = vpop.f32.mrb[64].mxu0 }
 0x330   :  { %v8786_v25 = vadd.f32 %v1772_v60, %v1666_v39  ;;  %v6114_v37 = vpop.f32.mrb[65].mxu0 }
 0x331   :  { %v1669_v43 = vpop.f32.mrb[66].mxu0 }
 0x332   :  { %v6115_v53 = vpop.f32.mrb[67].mxu0  ;;  %v2030_v46 = vpop.f32.mrb[120].mxu1 }
 0x333   :  { %v6186_v40 = vpop.f32.mrb[121].mxu1 }
 0x334   :  { %v2033_v22 = vpop.f32.mrb[122].mxu1  ;;  %6437 = vmatmul.mubr.msk.bf16.gmra.mrb[172].mxu0 %vm1580_vm4, %v8442_v52 }
 0x335   :  { %v6187_v20 = vpop.f32.mrb[123].mxu1  ;;  %6440 = vmatprep.mubr.msk.bf16.mxu0 %vm7265_vm3, %v9157_v50 }
 0x337   :  { %v1874_v4 = vpop.f32.mrb[68].mxu0 }
 0x338   :  { %v1912_v28 = vadd.f32 %v1874_v4, %v8754_v62  ;;  %v6154_v54 = vpop.f32.mrb[69].mxu0 }
 0x339   :  { %v1877_v42 = vpop.f32.mrb[70].mxu0 }
 0x33a   :  { %v1913_v45 = vadd.f32 %v1877_v42, %v1744_v36  ;;  %v6155_v2 = vpop.f32.mrb[71].mxu0  ;;  %v2038_v18 = vpop.f32.mrb[124].mxu1  ;;  %v2060_v19 = vadd.f32 %v2022_v11, %v1912_v28 }
 0x33b   :  { %v6190_v15 = vpop.f32.mrb[125].mxu1 }
 0x33c   :  { %v2041_v3 = vpop.f32.mrb[126].mxu1  ;;  %6441 = vmatmul.mubr.msk.bf16.gmra.mrb[176].mxu0 %vm1580_vm4, %v8445_v41  ;;  %v2061_v59 = vadd.f32 %v2025_v56, %v1913_v45 }
 0x33d   :  { %v6191_v52 = vpop.f32.mrb[127].mxu1  ;;  %6444 = vmatprep.mubr.msk.bf16.mxu0 %vm7265_vm3, %v9157_v50 }
 0x33f   :  { %v1882_v5 = vpop.f32.mrb[72].mxu0 }
 0x340   :  { %v1914_v35 = vadd.f32 %v1882_v5, %v1749_v7  ;;  %v6158_v1 = vpop.f32.mrb[73].mxu0 }
 0x341   :  { %v1885_v62 = vpop.f32.mrb[74].mxu0 }
 0x342   :  { %v1915_v58 = vadd.f32 %v1885_v62, %v1752_v8  ;;  %v6159_v13 = vpop.f32.mrb[75].mxu0  ;;  %v2046_v36 = vpop.f32.mrb[128].mxu1  ;;  %v2062_v27 = vadd.f32 %v2030_v46, %v1914_v35 }
 0x343   :  { %v6194_v0 = vpop.f32.mrb[129].mxu1 }
 0x344   :  { %v2049_v14 = vpop.f32.mrb[130].mxu1  ;;  %6445 = vmatmul.mubr.msk.bf16.gmra.mrb[180].mxu0 %vm1580_vm4, %v8454_v51  ;;  %v2063_v38 = vadd.f32 %v2033_v22, %v1915_v58 }
 0x345   :  { %v6195_v41 = vpop.f32.mrb[131].mxu1  ;;  %6448 = vmatprep.mubr.msk.bf16.mxu0 %vm7265_vm3, %v9157_v50 }
 0x347   :  { %v1890_v47 = vpop.f32.mrb[76].mxu0 }
 0x348   :  { %v1916_v63 = vadd.f32 %v1890_v47, %v8770_v9  ;;  %v6162_v7 = vpop.f32.mrb[77].mxu0 }
 0x349   :  { %v1893_v55 = vpop.f32.mrb[78].mxu0 }
 0x34a   :  { %v1917_v8 = vadd.f32 %v1893_v55, %v8772_v10  ;;  %v6163_v57 = vpop.f32.mrb[79].mxu0  ;;  %v2054_v24 = vpop.f32.mrb[132].mxu1  ;;  %v2064_v26 = vadd.f32 %v2038_v18, %v1916_v63 }
 0x34b   :  { %v6198_v48 = vpop.f32.mrb[133].mxu1 }
 0x34c   :  { %v2057_v61 = vpop.f32.mrb[134].mxu1  ;;  %6449 = vmatmul.mubr.msk.bf16.gmra.mrb[184].mxu0 %vm1580_vm4, %v8457_v16  ;;  %v2065_v51 = vadd.f32 %v2041_v3, %v1917_v8 }
 0x34d   :  { %v6199_v49 = vpop.f32.mrb[135].mxu1 }
 0x34f   :  { %v1898_v29 = vpop.f32.mrb[80].mxu0 }
 0x350   :  { %v1918_v60 = vadd.f32 %v1898_v29, %v8778_v34  ;;  %v6166_v44 = vpop.f32.mrb[81].mxu0 }
 0x351   :  { %v1901_v31 = vpop.f32.mrb[82].mxu0 }
 0x352   :  { %v1919_v9 = vadd.f32 %v1901_v31, %v8780_v21  ;;  %v6167_v12 = vpop.f32.mrb[83].mxu0  ;;  %v2308_v32 = vpop.f32.mrb[136].mxu1  ;;  %v2066_v10 = vadd.f32 %v2046_v36, %v1918_v60 }
 0x353   :  { %v6238_v30 = vpop.f32.mrb[137].mxu1 }
 0x354   :  { %v2311_v23 = vpop.f32.mrb[138].mxu1  ;;  %v2067_v6 = vadd.f32 %v2049_v14, %v1919_v9 }
 0x355   :  { %v6239_v11 = vpop.f32.mrb[139].mxu1 }
 0x357   :  { %v1906_v17 = vpop.f32.mrb[84].mxu0 }
 0x358   :  { %v1920_v56 = vadd.f32 %v1906_v17, %v8786_v25  ;;  %v6170_v16 = vpop.f32.mrb[85].mxu0 }
 0x359   :  { %v1909_v33 = vpop.f32.mrb[86].mxu0 }
 0x35a   :  { %v6171_v39 = vpop.f32.mrb[87].mxu0  ;;  %v2316_v37 = vpop.f32.mrb[140].mxu1  ;;  %v2068_v43 = vadd.f32 %v2054_v24, %v1920_v56 }
 0x35b   :  { %v6242_v34 = vpop.f32.mrb[141].mxu1 }
 0x35c   :  { %v2319_v53 = vpop.f32.mrb[142].mxu1 }
 0x35d   :  { %v6243_v46 = vpop.f32.mrb[143].mxu1 }
 0x35f   :  { %v2160_v40 = vpop.f32.mrb[88].mxu0 }
 0x360   :  { %v2198_v21 = vadd.f32 %v2160_v40, %v2060_v19  ;;  %v6210_v22 = vpop.f32.mrb[89].mxu0 }
 0x361   :  { %v2163_v20 = vpop.f32.mrb[90].mxu0 }
 0x362   :  { %v2199_v4 = vadd.f32 %v2163_v20, %v2061_v59  ;;  %v6211_v28 = vpop.f32.mrb[91].mxu0  ;;  %v2324_v54 = vpop.f32.mrb[144].mxu1  ;;  %v2346_v42 = vadd.f32 %v2308_v32, %v2198_v21 }
 0x363   :  { %v6246_v45 = vpop.f32.mrb[145].mxu1 }
 0x364   :  { %v2327_v2 = vpop.f32.mrb[146].mxu1  ;;  %v2347_v18 = vadd.f32 %v2311_v23, %v2199_v4 }
 0x365   :  { %v6247_v25 = vpop.f32.mrb[147].mxu1 }
 0x367   :  { %v2168_v15 = vpop.f32.mrb[92].mxu0 }
 0x368   :  { %v2200_v3 = vadd.f32 %v2168_v15, %v2062_v27  ;;  %v6214_v52 = vpop.f32.mrb[93].mxu0 }
 0x369   :  { %v2171_v5 = vpop.f32.mrb[94].mxu0 }
 0x36a   :  { %v2201_v35 = vadd.f32 %v2171_v5, %v2063_v38  ;;  %v6215_v1 = vpop.f32.mrb[95].mxu0  ;;  %v2332_v62 = vpop.f32.mrb[148].mxu1  ;;  %v2348_v58 = vadd.f32 %v2316_v37, %v2200_v3 }
 0x36b   :  { %v6250_v13 = vpop.f32.mrb[149].mxu1 }
 0x36c   :  { %v2335_v19 = vpop.f32.mrb[150].mxu1  ;;  %v2349_v36 = vadd.f32 %v2319_v53, %v2201_v35 }
 0x36d   :  { %v6251_v0 = vpop.f32.mrb[151].mxu1 }
 0x36f   :  { %v2176_v59 = vpop.f32.mrb[96].mxu0 }
 0x370   :  { %v2202_v14 = vadd.f32 %v2176_v59, %v2064_v26  ;;  %v6218_v41 = vpop.f32.mrb[97].mxu0 }
 0x371   :  { %v2179_v47 = vpop.f32.mrb[98].mxu0 }
 0x372   :  { %v2203_v63 = vadd.f32 %v2179_v47, %v2065_v51  ;;  %v6219_v7 = vpop.f32.mrb[99].mxu0  ;;  %v2340_v55 = vpop.f32.mrb[152].mxu1  ;;  %v2350_v8 = vadd.f32 %v2324_v54, %v2202_v14 }
 0x373   :  { %v6254_v57 = vpop.f32.mrb[153].mxu1 }
 0x374   :  { %v2343_v27 = vpop.f32.mrb[154].mxu1  ;;  %v2351_v24 = vadd.f32 %v2327_v2, %v2203_v63 }
 0x375   :  { %v6255_v48 = vpop.f32.mrb[155].mxu1 }
 0x377   :  { %v2184_v38 = vpop.f32.mrb[100].mxu0 }
 0x378   :  { %v2204_v61 = vadd.f32 %v2184_v38, %v2066_v10  ;;  %v6222_v49 = vpop.f32.mrb[101].mxu0 }
 0x379   :  { %v2187_v29 = vpop.f32.mrb[102].mxu0 }
 0x37a   :  { %v2205_v60 = vadd.f32 %v2187_v29, %v2067_v6  ;;  %v6223_v44 = vpop.f32.mrb[103].mxu0  ;;  %v2594_v31 = vpop.f32.mrb[156].mxu1  ;;  %v2352_v9 = vadd.f32 %v2332_v62, %v2204_v61 }
 0x37b   :  { %v6294_v12 = vpop.f32.mrb[157].mxu1 }
 0x37c   :  { %v2597_v26 = vpop.f32.mrb[158].mxu1  ;;  %v2353_v32 = vadd.f32 %v2335_v19, %v2205_v60 }
 0x37d   :  { %v6295_v30 = vpop.f32.mrb[159].mxu1 }
 0x37f   :  { %v2192_v51 = vpop.f32.mrb[104].mxu0 }
 0x380   :  { %v2206_v23 = vadd.f32 %v2192_v51, %v2068_v43  ;;  %v6226_v11 = vpop.f32.mrb[105].mxu0 }
 0x381   :  { %v2195_v17 = vpop.f32.mrb[106].mxu0 }
 0x382   :  { %v6227_v56 = vpop.f32.mrb[107].mxu0  ;;  %v2602_v16 = vpop.f32.mrb[160].mxu1  ;;  %v2354_v33 = vadd.f32 %v2340_v55, %v2206_v23 }
 0x383   :  { %v6298_v39 = vpop.f32.mrb[161].mxu1 }
 0x384   :  { %v2605_v37 = vpop.f32.mrb[162].mxu1 }
 0x385   :  { %v6299_v10 = vpop.f32.mrb[163].mxu1 }
 0x387   :  { %v2446_v34 = vpop.f32.mrb[108].mxu0 }
 0x388   :  { %v2484_v53 = vadd.f32 %v2446_v34, %v2346_v42  ;;  %v6266_v6 = vpop.f32.mrb[109].mxu0 }
 0x389   :  { %v2449_v46 = vpop.f32.mrb[110].mxu0 }
 0x38a   :  { %v2485_v40 = vadd.f32 %v2449_v46, %v2347_v18  ;;  %v6267_v21 = vpop.f32.mrb[111].mxu0  ;;  %v2610_v22 = vpop.f32.mrb[164].mxu1  ;;  %v2632_v20 = vadd.f32 %v2594_v31, %v2484_v53 }
 0x38b   :  { %v6302_v4 = vpop.f32.mrb[165].mxu1 }
 0x38c   :  { %v2613_v28 = vpop.f32.mrb[166].mxu1  ;;  %v2633_v54 = vadd.f32 %v2597_v26, %v2485_v40 }
 0x38d   :  { %v6303_v43 = vpop.f32.mrb[167].mxu1 }
 0x38f   :  { %v2454_v45 = vpop.f32.mrb[112].mxu0 }
 0x390   :  { %v2486_v2 = vadd.f32 %v2454_v45, %v2348_v58  ;;  %v6270_v25 = vpop.f32.mrb[113].mxu0 }
 0x391   :  { %v2457_v15 = vpop.f32.mrb[114].mxu0 }
 0x392   :  { %v2487_v3 = vadd.f32 %v2457_v15, %v2349_v36  ;;  %v6271_v52 = vpop.f32.mrb[115].mxu0  ;;  %v2618_v5 = vpop.f32.mrb[168].mxu1  ;;  %v2634_v35 = vadd.f32 %v2602_v16, %v2486_v2 }
 0x393   :  { %v6306_v1 = vpop.f32.mrb[169].mxu1 }
 0x394   :  { %v2621_v42 = vpop.f32.mrb[170].mxu1  ;;  %v2635_v62 = vadd.f32 %v2605_v37, %v2487_v3 }
 0x395   :  { %v6307_v13 = vpop.f32.mrb[171].mxu1 }
 0x397   :  { %v2462_v18 = vpop.f32.mrb[116].mxu0 }
 0x398   :  { %v2488_v19 = vadd.f32 %v2462_v18, %v2350_v8  ;;  %v6274_v0 = vpop.f32.mrb[117].mxu0 }
 0x399   :  { %v2465_v59 = vpop.f32.mrb[118].mxu0 }
 0x39a   :  { %v2489_v14 = vadd.f32 %v2465_v59, %v2351_v24  ;;  %v6275_v41 = vpop.f32.mrb[119].mxu0  ;;  %v2626_v47 = vpop.f32.mrb[172].mxu1  ;;  %v2636_v63 = vadd.f32 %v2610_v22, %v2488_v19 }
 0x39b   :  { %v6310_v7 = vpop.f32.mrb[173].mxu1 }
 0x39c   :  { %v2629_v58 = vpop.f32.mrb[174].mxu1  ;;  %v2637_v55 = vadd.f32 %v2613_v28, %v2489_v14 }
 0x39d   :  { %v6311_v57 = vpop.f32.mrb[175].mxu1 }
 0x39f   :  { %v2470_v36 = vpop.f32.mrb[120].mxu0 }
 0x3a0   :  { %v2490_v27 = vadd.f32 %v2470_v36, %v2352_v9  ;;  %v6278_v48 = vpop.f32.mrb[121].mxu0 }
 0x3a1   :  { %v2473_v38 = vpop.f32.mrb[122].mxu0 }
 0x3a2   :  { %v2491_v61 = vadd.f32 %v2473_v38, %v2353_v32  ;;  %v6279_v49 = vpop.f32.mrb[123].mxu0  ;;  %v2885_v29 = vpop.f32.mrb[176].mxu1  ;;  %v2638_v60 = vadd.f32 %v2618_v5, %v2490_v27 }
 0x3a3   :  { %v6350_v44 = vpop.f32.mrb[177].mxu1 }
 0x3a4   :  { %v2888_v8 = vpop.f32.mrb[178].mxu1  ;;  %v2639_v31 = vadd.f32 %v2621_v42, %v2491_v61 }
 0x3a5   :  { %v6351_v12 = vpop.f32.mrb[179].mxu1 }
 0x3a7   :  { %v2478_v24 = vpop.f32.mrb[124].mxu0 }
 0x3a8   :  { %v2492_v26 = vadd.f32 %v2478_v24, %v2354_v33  ;;  %v6282_v30 = vpop.f32.mrb[125].mxu0 }
 0x3a9   :  { %v2481_v51 = vpop.f32.mrb[126].mxu0 }
 0x3aa   :  { %v6283_v23 = vpop.f32.mrb[127].mxu0  ;;  %v2893_v11 = vpop.f32.mrb[180].mxu1  ;;  %v2640_v17 = vadd.f32 %v2626_v47, %v2492_v26 }
 0x3ab   :  { %v6354_v56 = vpop.f32.mrb[181].mxu1 }
 0x3ac   :  { %v2896_v16 = vpop.f32.mrb[182].mxu1 }
 0x3ad   :  { %v6355_v9 = vpop.f32.mrb[183].mxu1 }
 0x3af   :  { %v2732_v39 = vpop.f32.mrb[128].mxu0 }
 0x3b0   :  { %v2770_v37 = vadd.f32 %v2732_v39, %v2632_v20  ;;  %v6322_v32 = vpop.f32.mrb[129].mxu0 }
 0x3b1   :  { %v2735_v10 = vpop.f32.mrb[130].mxu0 }
 0x3b2   :  { %v2771_v34 = vadd.f32 %v2735_v10, %v2633_v54  ;;  %v6323_v53 = vpop.f32.mrb[131].mxu0  ;;  %v2901_v6 = vpop.f32.mrb[184].mxu1  ;;  %v2923_v46 = vadd.f32 %v2885_v29, %v2770_v37 }
 0x3b3   :  { %v6358_v40 = vpop.f32.mrb[185].mxu1 }
 0x3b4   :  { %v2904_v21 = vpop.f32.mrb[186].mxu1  ;;  %v2924_v22 = vadd.f32 %v2888_v8, %v2771_v34 }
 0x3b5   :  { %v6359_v33 = vpop.f32.mrb[187].mxu1 }
 0x3b7   :  { %v2740_v4 = vpop.f32.mrb[132].mxu0 }
 0x3b8   :  { %v2772_v28 = vadd.f32 %v2740_v4, %v2634_v35  ;;  %v6326_v43 = vpop.f32.mrb[133].mxu0 }
 0x3b9   :  { %v2743_v45 = vpop.f32.mrb[134].mxu0 }
 0x3ba   :  { %v2773_v2 = vadd.f32 %v2743_v45, %v2635_v62  ;;  %v6327_v25 = vpop.f32.mrb[135].mxu0  ;;  %v2909_v15 = vpop.f32.mrb[188].mxu1  ;;  %v2925_v3 = vadd.f32 %v2893_v11, %v2772_v28 }
 0x3bb   :  { %v6362_v52 = vpop.f32.mrb[189].mxu1 }
 0x3bc   :  { %v2912_v20 = vpop.f32.mrb[190].mxu1  ;;  %v2926_v5 = vadd.f32 %v2896_v16, %v2773_v2 }
 0x3bd   :  { %v6363_v1 = vpop.f32.mrb[191].mxu1 }
 0x3bf   :  { %v2748_v54 = vpop.f32.mrb[136].mxu0 }
 0x3c0   :  { %v2774_v42 = vadd.f32 %v2748_v54, %v2636_v63  ;;  %v6330_v13 = vpop.f32.mrb[137].mxu0 }
 0x3c1   :  { %v2751_v18 = vpop.f32.mrb[138].mxu0 }
 0x3c2   :  { %v2775_v19 = vadd.f32 %v2751_v18, %v2637_v55  ;;  %v6331_v0 = vpop.f32.mrb[139].mxu0  ;;  %v2917_v59 = vpop.f32.mrb[192].mxu1  ;;  %v2927_v14 = vadd.f32 %v2901_v6, %v2774_v42 }
 0x3c3   :  { %v6366_v41 = vpop.f32.mrb[193].mxu1 }
 0x3c4   :  { %v2920_v35 = vpop.f32.mrb[194].mxu1  ;;  %v2928_v47 = vadd.f32 %v2904_v21, %v2775_v19 }
 0x3c5   :  { %v6367_v7 = vpop.f32.mrb[195].mxu1 }
 0x3c7   :  { %v2756_v62 = vpop.f32.mrb[140].mxu0 }
 0x3c8   :  { %v2776_v58 = vadd.f32 %v2756_v62, %v2638_v60  ;;  %v6334_v57 = vpop.f32.mrb[141].mxu0 }
 0x3c9   :  { %v2759_v36 = vpop.f32.mrb[142].mxu0 }
 0x3ca   :  { %v2777_v27 = vadd.f32 %v2759_v36, %v2639_v31  ;;  %v6335_v48 = vpop.f32.mrb[143].mxu0  ;;  %v3180_v38 = vpop.f32.mrb[196].mxu1  ;;  %v2929_v61 = vadd.f32 %v2909_v15, %v2776_v58 }
 0x3cb   :  { %v6406_v49 = vpop.f32.mrb[197].mxu1 }
 0x3cc   :  { %v3183_v63 = vpop.f32.mrb[198].mxu1  ;;  %v2930_v29 = vadd.f32 %v2912_v20, %v2777_v27 }
 0x3cd   :  { %v6407_v44 = vpop.f32.mrb[199].mxu1 }
 0x3cf   :  { %v2764_v55 = vpop.f32.mrb[144].mxu0 }
 0x3d0   :  { %v2778_v8 = vadd.f32 %v2764_v55, %v2640_v17  ;;  %v6338_v12 = vpop.f32.mrb[145].mxu0  ;;  %v8812_v55 = vld [vmem:[#allocation8] ss:$0 sm:$0xff] }
 0x3d1   :  { %v2767_v24 = vpop.f32.mrb[146].mxu0 }
 0x3d2   :  { %v6339_v26 = vpop.f32.mrb[147].mxu0  ;;  %v3188_v30 = vpop.f32.mrb[200].mxu1  ;;  %v2931_v51 = vadd.f32 %v2917_v59, %v2778_v8 }
 0x3d3   :  { %v6410_v23 = vpop.f32.mrb[201].mxu1 }
 0x3d4   :  { %v3191_v11 = vpop.f32.mrb[202].mxu1 }
 0x3d5   :  { %v6411_v60 = vpop.f32.mrb[203].mxu1 }
 0x3d7   :  { %v3026_v56 = vpop.f32.mrb[148].mxu0 }
 0x3d8   :  { %v3064_v16 = vadd.f32 %v3026_v56, %v2923_v46  ;;  %v6378_v31 = vpop.f32.mrb[149].mxu0  ;;  %v8819_v56 = vld [vmem:[#allocation11] ss:$0 sm:$0xff] }
 0x3d9   :  { %v3029_v9 = vpop.f32.mrb[150].mxu0 }
 0x3da   :  { %v3065_v39 = vadd.f32 %v3029_v9, %v2924_v22  ;;  %v6379_v37 = vpop.f32.mrb[151].mxu0  ;;  %v3196_v32 = vpop.f32.mrb[204].mxu1  ;;  %v3218_v10 = vadd.f32 %v3180_v38, %v3064_v16 }
 0x3db   :  { %v6414_v34 = vpop.f32.mrb[205].mxu1 }
 0x3dc   :  { %v3199_v53 = vpop.f32.mrb[206].mxu1  ;;  %v3219_v6 = vadd.f32 %v3183_v63, %v3065_v39 }
 0x3dd   :  { %v6415_v17 = vpop.f32.mrb[207].mxu1 }
 0x3df   :  { %v3034_v40 = vpop.f32.mrb[152].mxu0 }
 0x3e0   :  { %v3066_v21 = vadd.f32 %v3034_v40, %v2925_v3  ;;  %v6382_v33 = vpop.f32.mrb[153].mxu0 }
 0x3e1   :  { %v3037_v4 = vpop.f32.mrb[154].mxu0 }
 0x3e2   :  { %v3067_v28 = vadd.f32 %v3037_v4, %v2926_v5  ;;  %v6383_v43 = vpop.f32.mrb[155].mxu0  ;;  %v3204_v45 = vpop.f32.mrb[208].mxu1  ;;  %v3220_v2 = vadd.f32 %v3188_v30, %v3066_v21  ;;  %v8815_v30 = vld [vmem:[#allocation10] ss:$0 sm:$0xff] }
 0x3e3   :  { %v6418_v25 = vpop.f32.mrb[209].mxu1 }
 0x3e4   :  { %v3207_v46 = vpop.f32.mrb[210].mxu1  ;;  %v3221_v15 = vadd.f32 %v3191_v11, %v3067_v28 }
 0x3e5   :  { %v6419_v52 = vpop.f32.mrb[211].mxu1 }
 0x3e7   :  { %v3042_v22 = vpop.f32.mrb[156].mxu0 }
 0x3e8   :  { %v3068_v20 = vadd.f32 %v3042_v22, %v2927_v14  ;;  %v6386_v1 = vpop.f32.mrb[157].mxu0 }
 0x3e9   :  { %v3045_v54 = vpop.f32.mrb[158].mxu0 }
 0x3ea   :  { %v3069_v42 = vadd.f32 %v3045_v54, %v2928_v47  ;;  %v6387_v13 = vpop.f32.mrb[159].mxu0  ;;  %v3212_v18 = vpop.f32.mrb[212].mxu1  ;;  %v3222_v19 = vadd.f32 %v3196_v32, %v3068_v20 }
 0x3eb   :  { %v6422_v0 = vpop.f32.mrb[213].mxu1 }
 0x3ec   :  { %v3215_v3 = vpop.f32.mrb[214].mxu1  ;;  %v3223_v59 = vadd.f32 %v3199_v53, %v3069_v42 }
 0x3ed   :  { %v6423_v41 = vpop.f32.mrb[215].mxu1 }
 0x3ef   :  { %v3050_v5 = vpop.f32.mrb[160].mxu0 }
 0x3f0   :  { %v3070_v35 = vadd.f32 %v3050_v5, %v2929_v61  ;;  %v6390_v7 = vpop.f32.mrb[161].mxu0 }
 0x3f1   :  { %v3053_v62 = vpop.f32.mrb[162].mxu0 }
 0x3f2   :  { %v3071_v58 = vadd.f32 %v3053_v62, %v2930_v29  ;;  %v6391_v57 = vpop.f32.mrb[163].mxu0  ;;  %v3224_v36 = vadd.f32 %v3204_v45, %v3070_v35 }
 0x3f4   :  { %v8808_v27 = vadd.f32 %v3207_v46, %v3071_v58 }
 0x3f7   :  { %v3058_v14 = vpop.f32.mrb[164].mxu0 }
 0x3f8   :  { %v3072_v48 = vadd.f32 %v3058_v14, %v2931_v51  ;;  %v6394_v38 = vpop.f32.mrb[165].mxu0 }
 0x3f9   :  { %v3061_v47 = vpop.f32.mrb[166].mxu0 }
 0x3fa   :  { %v6395_v49 = vpop.f32.mrb[167].mxu0  ;;  %v8810_v63 = vadd.f32 %v3212_v18, %v3072_v48 }
 0x3ff   :  { %v3320_v44 = vpop.f32.mrb[168].mxu0 }
 0x400   :  { %v3358_v8 = vadd.f32 %v3320_v44, %v3218_v10  ;;  %v6434_v12 = vpop.f32.mrb[169].mxu0 }
 0x401   :  { %v3323_v61 = vpop.f32.mrb[170].mxu0 }
 0x402   :  { %v3374_v24 = vadd.f32 %v8812_v55, %v3358_v8  ;;  %v3359_v29 = vadd.f32 %v3323_v61, %v3219_v6  ;;  %v6435_v26 = vpop.f32.mrb[171].mxu0 }
 0x404   :  { %v3383_v23 = vmax.f32 %v3374_v24, 0.0  ;;  %v3375_v51 = vadd.f32 %v8812_v55, %v3359_v29 }
 0x406   :  { %v3399_v11 = vmul.f32 %v8815_v30, %v3383_v23  ;;  %v3384_v60 = vmax.f32 %v3375_v51, 0.0 }
 0x407   :  { %v3328_v16 = vpop.f32.mrb[172].mxu0 }
 0x408   :  { %v3400_v31 = vmul.f32 %v8815_v30, %v3384_v60  ;;  %v3360_v9 = vadd.f32 %v3328_v16, %v3220_v2  ;;  %v6438_v39 = vpop.f32.mrb[173].mxu0  ;;  %v3415_v32 = vadd.f32 %v8819_v56, %v3399_v11  ;;  %v6971_v16 = vld [vmem:[%s9143_s12] sm:$0xff]  }
 0x409   :  { %v3331_v37 = vpop.f32.mrb[174].mxu0  ;;  %v6977_v39 = vld [vmem:[#allocation13 + $0x1c] sm:$0xff]  }
 0x40a   :  { %v3416_v10 = vadd.f32 %v8819_v56, %v3400_v31  ;;  %v3376_v34 = vadd.f32 %v8812_v55, %v3360_v9  ;;  %v3361_v53 = vadd.f32 %v3331_v37, %v3221_v15  ;;  %v6439_v6 = vpop.f32.mrb[175].mxu0  ;;  %v6975_v31 = vld [vmem:[#allocation14 + $0x8] sm:$0xff]   ;;  %v6976_v9 = vld [vmem:[#allocation14 + $0x10] ss:$0 sps:$4 sm:$0x33]   ;;  %6496 = vmatprep.subr.bf16.mxu0 %v6977_v39 }
 0x40b   :  { %6497 = vmatpush3.bf16.msra.mxu0 %v6977_v39  ;;  %v6978_v37 = vld [vmem:[#allocation13 + $0x24] sm:$0xff]  }
 0x40c   :  { %v3385_v17 = vmax.f32 %v3376_v34, 0.0  ;;  %v3377_v40 = vadd.f32 %v8812_v55, %v3361_v53  ;;  %v3424_v21 = vpack.c.bf16 %v3416_v10, %v3415_v32  ;;  %6498 = vmatprep.subr.bf16.mxu0 %v6978_v37  ;;  %v6979_v32 = vld [vmem:[#allocation13 + $0x2c] sm:$0xff]   ;;  %v6980_v10 = vld [vmem:[#allocation13 + $0x34] ss:$0 sps:$4 sm:$0x11]   ;;  %v8882_v34 = vld [vmem:[#allocation13] sm:$0xff]  }
 0x40d   :  { %v3666_v53 = vsel %vm1596_vm2, %v6980_v10, 0 }
 0x40e   :  { %v3401_v33 = vmul.f32 %v8815_v30, %v3385_v17  ;;  %v3386_v4 = vmax.f32 %v3377_v40, 0.0  ;;  %6453 = vmatpush3.bf16.msra.mxu1 %v3424_v21 }
 0x40f   :  { %v3336_v28 = vpop.f32.mrb[176].mxu0  ;;  %6454 = vmatprep.subr.bf16.mxu1 %v9157_v50  ;;  %6499 = vmatpush3.bf16.msra.mxu0 %v6978_v37 }
 0x410   :  { %v3402_v43 = vmul.f32 %v8815_v30, %v3386_v4  ;;  %v3362_v45 = vadd.f32 %v3336_v28, %v3222_v19  ;;  %v6442_v2 = vpop.f32.mrb[177].mxu0  ;;  %v3417_v46 = vadd.f32 %v8819_v56, %v3401_v33  ;;  %6500 = vmatprep.subr.bf16.mxu0 %v6979_v32 }
 0x411   :  { %v3339_v25 = vpop.f32.mrb[178].mxu0 }
 0x412   :  { %v3418_v15 = vadd.f32 %v8819_v56, %v3402_v43  ;;  %v3378_v52 = vadd.f32 %v8812_v55, %v3362_v45  ;;  %v3363_v22 = vadd.f32 %v3339_v25, %v3223_v59  ;;  %v6443_v20 = vpop.f32.mrb[179].mxu0 }
 0x413   :  { %6501 = vmatpush3.bf16.msra.mxu0 %v6979_v32 }
 0x414   :  { %v3387_v1 = vmax.f32 %v3378_v52, 0.0  ;;  %v3379_v54 = vadd.f32 %v8812_v55, %v3363_v22  ;;  %v3425_v42 = vpack.c.bf16 %v3418_v15, %v3417_v46  ;;  %6744 = vmatprep.subr.msk.bf16.mxu0 %vm1596_vm2, %v6980_v10 }
 0x416   :  { %v3403_v13 = vmul.f32 %v8815_v30, %v3387_v1  ;;  %v3388_v18 = vmax.f32 %v3379_v54, 0.0  ;;  %6455 = vmatpush3.bf16.msra.mxu1 %v3425_v42 }
 0x417   :  { %v3344_v0 = vpop.f32.mrb[180].mxu0  ;;  %6456 = vmatprep.subr.bf16.mxu1 %v9157_v50  ;;  %6503 = vmatpush3.bf16.msra.mxu0 %v3666_v53 }
 0x418   :  { %v3404_v19 = vmul.f32 %v8815_v30, %v3388_v18  ;;  %v3364_v3 = vadd.f32 %v3344_v0, %v3224_v36  ;;  %v6446_v41 = vpop.f32.mrb[181].mxu0  ;;  %v3419_v35 = vadd.f32 %v8819_v56, %v3403_v13  ;;  %6508 = vmatprep.subr.bf16.mxu0 %v8882_v34 }
 0x419   :  { %v3347_v5 = vpop.f32.mrb[182].mxu0 }
 0x41a   :  { %v3420_v59 = vadd.f32 %v8819_v56, %v3404_v19  ;;  %v3380_v7 = vadd.f32 %v8812_v55, %v3364_v3  ;;  %v3365_v62 = vadd.f32 %v3347_v5, %v8808_v27  ;;  %v6447_v58 = vpop.f32.mrb[183].mxu0 }
 0x41c   :  { %v3389_v57 = vmax.f32 %v3380_v7, 0.0  ;;  %v3381_v14 = vadd.f32 %v8812_v55, %v3365_v62  ;;  %v3426_v48 = vpack.c.bf16 %v3420_v59, %v3419_v35 }
 0x41e   :  { %v3405_v38 = vmul.f32 %v8815_v30, %v3389_v57  ;;  %v3390_v47 = vmax.f32 %v3381_v14, 0.0  ;;  %6457 = vmatpush3.bf16.msra.mxu1 %v3426_v48 }
 0x41f   :  { %v3352_v36 = vpop.f32.mrb[184].mxu0  ;;  %6458 = vmatprep.subr.bf16.mxu1 %v9157_v50 }
 0x420   :  { %v3406_v49 = vmul.f32 %v8815_v30, %v3390_v47  ;;  %v3366_v44 = vadd.f32 %v3352_v36, %v8810_v63  ;;  %v6450_v8 = vpop.f32.mrb[185].mxu0  ;;  %v3421_v27 = vadd.f32 %v8819_v56, %v3405_v38 }
 0x421   :  { %v3355_v12 = vpop.f32.mrb[186].mxu0 }
 0x422   :  { %v3422_v61 = vadd.f32 %v8819_v56, %v3406_v49  ;;  %v3382_v24 = vadd.f32 %v8812_v55, %v3366_v44  ;;  %v6451_v29 = vpop.f32.mrb[187].mxu0  ;;  %v6972_v55 = vld [vmem:[%s9143_s12 + $0x8] sm:$0xff]  }
 0x424   :  { %v3391_v26 = vmax.f32 %v3382_v24, 0.0  ;;  %v3427_v23 = vpack.c.bf16 %v3422_v61, %v3421_v27 }
 0x426   :  { %v3407_v51 = vmul.f32 %v8815_v30, %v3391_v26  ;;  %6459 = vmatpush3.bf16.msra.mxu1 %v3427_v23  ;;  %v6973_v30 = vld [vmem:[%s9143_s12 + $0x10] ss:$0 sps:$4 sm:$0x33]  }
 0x427   :  { %6460 = vmatprep.subr.bf16.mxu1 %v9157_v50 }
 0x428   :  { %v3423_v11 = vadd.f32 %v8819_v56, %v3407_v51  ;;  %v6974_v56 = vld [vmem:[#allocation14] sm:$0xff]  }
 0x42a   :  { %v3428_v60 = vpack.c.bf16 %v3423_v11, %v3423_v11 }
 0x42c   :  { %v3459_v63 = vsel %vm2649_vm11, %v3428_v60, 0 }
 0x42d   :  { %6461 = vmatpush3.bf16.msra.mxu1 %v3459_v63 }
 0x42e   :  { %6474 = vmatprep.subr.bf16.mxu1 %v9157_v50 }
 0x430   :  { %6463 = vmatmul.mubr.msk.bf16.vlgmr.msra.gmra.mrb[216].mxu1 %vm3447_vm0, %v6971_v16 }
 0x431   :  { %6475 = vmatpush3.bf16.msra.mxu1 %v3424_v21  ;;  %6466 = vmatprep.mubr.msk.bf16.mxu1 %vm7265_vm3, %v9157_v50 }
 0x432   :  { %6476 = vmatprep.subr.bf16.mxu1 %v9157_v50 }
 0x435   :  { %6477 = vmatpush3.bf16.msra.mxu1 %v3425_v42 }
 0x436   :  { %6478 = vmatprep.subr.bf16.mxu1 %v9157_v50 }
 0x438   :  { %6467 = vmatmul.mubr.msk.bf16.gmra.mrb[220].mxu1 %vm3447_vm0, %v6972_v55 }
 0x439   :  { %6479 = vmatpush3.bf16.msra.mxu1 %v3426_v48  ;;  %6470 = vmatprep.mubr.msk.bf16.mxu1 %vm7265_vm3, %v9157_v50 }
 0x43a   :  { %6480 = vmatprep.subr.bf16.mxu1 %v9157_v50 }
 0x43d   :  { %6481 = vmatpush3.bf16.msra.mxu1 %v3427_v23 }
 0x43e   :  { %6482 = vmatprep.subr.bf16.mxu1 %v9157_v50 }
 0x440   :  { %6471 = vmatmul.mubr.msk.bf16.gmra.mrb[224].mxu1 %vm3447_vm0, %v6973_v30 }
 0x441   :  { %6483 = vmatpush3.bf16.msra.mxu1 %v3459_v63  ;;  %6484 = vmatprep.mubr.msk.bf16.mxu1 %vm7265_vm3, %v9157_v50 }
 0x448   :  { %6485 = vmatmul.mubr.msk.bf16.vlgmr.msra.gmra.mrb[228].mxu1 %vm3447_vm0, %v6974_v56 }
 0x449   :  { %6488 = vmatprep.mubr.msk.bf16.mxu1 %vm7265_vm3, %v9157_v50 }
 0x450   :  { %6489 = vmatmul.mubr.msk.bf16.gmra.mrb[232].mxu1 %vm3447_vm0, %v6975_v31 }
 0x451   :  { %6492 = vmatprep.mubr.msk.bf16.mxu1 %vm7265_vm3, %v9157_v50 }
 0x458   :  { %6493 = vmatmul.mubr.msk.bf16.gmra.mrb[236].mxu1 %vm3447_vm0, %v6976_v9 }
 0x503   :  { %v3495_v50 = vpop.f32.mrb[216].mxu1 }
 0x504   :  { %v6464_v6 = vpop.f32.mrb[217].mxu1 }
 0x505   :  { %v3498_v17 = vpop.f32.mrb[218].mxu1 }
 0x506   :  { %v6465_v40 = vpop.f32.mrb[219].mxu1 }
 0x50b   :  { %v3503_v21 = vpop.f32.mrb[220].mxu1 }
 0x50c   :  { %v6468_v33 = vpop.f32.mrb[221].mxu1 }
 0x50d   :  { %v3506_v4 = vpop.f32.mrb[222].mxu1  ;;  %v6982_v33 = vld [vmem:[#allocation13 + $0x8] sm:$0xff]  }
 0x50e   :  { %v6469_v28 = vpop.f32.mrb[223].mxu1 }
 0x513   :  { %v3511_v43 = vpop.f32.mrb[224].mxu1 }
 0x514   :  { %v6472_v45 = vpop.f32.mrb[225].mxu1 }
 0x515   :  { %v3514_v2 = vpop.f32.mrb[226].mxu1 }
 0x516   :  { %v6473_v25 = vpop.f32.mrb[227].mxu1 }
 0x51b   :  { %v3578_v46 = vpop.f32.mrb[228].mxu1 }
 0x51c   :  { %v3600_v15 = vmax.f32 %v3495_v50, %v3578_v46  ;;  %v6486_v52 = vpop.f32.mrb[229].mxu1 }
 0x51d   :  { %v3581_v22 = vpop.f32.mrb[230].mxu1 }
 0x51e   :  { %v3601_v20 = vmax.f32 %v3498_v17, %v3581_v22  ;;  %v6487_v1 = vpop.f32.mrb[231].mxu1 }
 0x520   :  { %v8887_v54 = vpack.c.bf16 %v3601_v20, %v3600_v15 }
 0x522   :  { %v3624_v42 = vshrl.u32 %v8887_v54, 16  ;;  %v3626_v13 = vshll.u32 %v8887_v54, 16  ;;  %v3804_v44 = vrot.slane %v8887_v54, 1  ;;  %v3996_v8 = vrot.slane %v8887_v54, 2 }
 0x523   :  { %v3586_v18 = vpop.f32.mrb[232].mxu1  ;;  %v4188_v12 = vrot.slane %v8887_v54, 3  ;;  %v4386_v61 = vrot.slane %v8887_v54, 4  ;;  %v4586_v29 = vrot.slane %v8887_v54, 5 }
 0x524   :  { %v3602_v0 = vmax.f32 %v3503_v21, %v3586_v18  ;;  %v6490_v19 = vpop.f32.mrb[233].mxu1  ;;  %v3628_v3 = vrot.slane %v3626_v13, 1  ;;  %v4090_v5 = vrot.slane %v3624_v42, 2  ;;  %v4091_v35 = vrot.slane %v3626_v13, 3 }
 0x525   :  { %v3589_v41 = vpop.f32.mrb[234].mxu1  ;;  %v4282_v59 = vrot.slane %v3624_v42, 3  ;;  %v4283_v7 = vrot.slane %v3626_v13, 4  ;;  %v3898_v57 = vrot.slane %v3624_v42, 1  ;;  %v4482_v14 = vrot.slane %v3624_v42, 4  ;;  %v6983_v19 = vld [vmem:[#allocation13 + $0x10] sm:$0xff]  }
 0x526   :  { %v3603_v62 = vmax.f32 %v3506_v4, %v3589_v41  ;;  %v6491_v58 = vpop.f32.mrb[235].mxu1  ;;  %v3899_v48 = vrot.slane %v3626_v13, 2  ;;  %v4092_v38 = vor.u32 %v4091_v35, %v4090_v5  ;;  %v4483_v36 = vrot.slane %v3626_v13, 5 }
 0x527   :  { %v4284_v47 = vor.u32 %v4283_v7, %v4282_v59  ;;  %v3629_v27 = vor.u32 %v3628_v3, %v3624_v42 }
 0x528   :  { %v8891_v49 = vpack.c.bf16 %v3603_v62, %v3602_v0  ;;  %v4484_v24 = vor.u32 %v4483_v36, %v4482_v14  ;;  %v3900_v63 = vor.u32 %v3899_v48, %v3898_v57  ;;  %v6984_v57 = vld [vmem:[#allocation13 + $0x18] ss:$0 sps:$4 sm:$0x11]   ;;  %v6986_v36 = vld [vmem:[#allocation13 + $0x40] sm:$0xff]  }
 0x52a   :  { %v3631_v26 = vshll.u32 %v8891_v49, 16  ;;  %v3635_v23 = vshrl.u32 %v8891_v49, 16  ;;  %v3805_v51 = vrot.slane %v8891_v49, 1  ;;  %v3997_v11 = vrot.slane %v8891_v49, 2 }
 0x52b   :  { %v3594_v60 = vpop.f32.mrb[236].mxu1  ;;  %v4189_v16 = vrot.slane %v8891_v49, 3  ;;  %v4387_v55 = vrot.slane %v8891_v49, 4  ;;  %v4587_v30 = vrot.slane %v8891_v49, 5 }
 0x52c   :  { %v3604_v56 = vmax.f32 %v3511_v43, %v3594_v60  ;;  %v3633_v31 = vrot.slane %v3631_v26, 1  ;;  %v3806_v9 = vsel %vm1791_vm5, %v3804_v44, %v3805_v51  ;;  %v3901_v39 = vrot.slane %v3635_v23, 1  ;;  %v6494_v37 = vpop.f32.mrb[237].mxu1  ;;  %v6987_v44 = vld [vmem:[#allocation13 + $0x48] sm:$0xff]   ;;  %v6994_v60 = vld [vmem:[#allocation13 + $0x78] sm:$0xff]  }
 0x52d   :  { %v3902_v32 = vrot.slane %v3631_v26, 2  ;;  %v8911_v10 = vsel %vm2077_vm7, %v3996_v8, %v3997_v11  ;;  %v4093_v53 = vrot.slane %v3635_v23, 2  ;;  %v4094_v50 = vrot.slane %v3631_v26, 3  ;;  %v3597_v6 = vpop.f32.mrb[238].mxu1 }
 0x52e   :  { %v3607_v17 = vpack.c.bf16 %v3604_v56, %v3604_v56  ;;  %v3634_v40 = vsel %vm1519_vm6, %v3629_v27, %v3633_v31  ;;  %v3637_v21 = vor.u32 %v3635_v23, %v3633_v31  ;;  %v8917_v4 = vsel %vm707_vm1, %v4188_v12, %v4189_v16  ;;  %v6495_v28 = vpop.f32.mrb[239].mxu1  ;;  %v6988_v8 = vld [vmem:[#allocation13 + $0x50] ss:$0 sps:$4 sm:$0x11]   ;;  %v6989_v27 = vld [vmem:[#allocation13 + $0x54] sm:$0xff]   ;;  %v7005_v6 = vld [vmem:[#allocation13 + $0xc4] sm:$0xff]  }
 0x52f   :  { %6504 = vmatprep.mubr.msk.bf16.mxu0 %vm1580_vm4, %v3634_v40  ;;  %v8920_v43 = vor.u32 %v3902_v32, %v3901_v39  ;;  %v8922_v45 = vor.u32 %v4094_v50, %v4093_v53  ;;  %v4285_v2 = vrot.slane %v3635_v23, 3  ;;  %v4286_v25 = vrot.slane %v3631_v26, 4  ;;  %v6997_v56 = vld [vmem:[#allocation13 + $0x8c] sm:$0xff]   ;;  %v6998_v31 = vld [vmem:[#allocation13 + $0x94] sm:$0xff]  }
 0x530   :  { %v4290_v46 = vshll.u32 %v3607_v17, 16  ;;  %v4389_v15 = vrot.slane %v3607_v17, 4  ;;  %v4489_v52 = vshrl.u32 %v3607_v17, 16  ;;  %v4589_v22 = vrot.slane %v3607_v17, 5  ;;  %6505 = vmatmul.mubr.msk.bf16.vlgmr.msra.gmra.mrb[188].mxu0 %vm1580_vm4, %v3637_v21  ;;  %v7001_v32 = vld [vmem:[#allocation13 + $0xa8] sm:$0xff]   ;;  %v7007_v40 = vld [vmem:[#allocation13 + $0xd4] sm:$0xff]  }
 0x531   :  { %6509 = vmatpush3.bf16.msra.mxu0 %v8882_v34  ;;  %6516 = vmatprep.mubr.msk.bf16.mxu0 %vm1580_vm4, %v8887_v54  ;;  %v3904_v20 = vsel %vm1929_vm8, %v3900_v63, %v8920_v43  ;;  %v8932_v1 = vsel %vm2215_vm9, %v4092_v38, %v8922_v45  ;;  %v4287_v42 = vor.u32 %v4286_v25, %v4285_v2  ;;  %v4485_v13 = vrot.slane %v3635_v23, 4  ;;  %v6995_v63 = vld [vmem:[#allocation13 + $0x80] sm:$0xff]   ;;  %v7006_v17 = vld [vmem:[#allocation13 + $0xcc] sm:$0xff]   ;;  %v7008_v21 = vld [vmem:[#allocation13 + $0xdc] ss:$0 sps:$4 sm:$0x11]  }
 0x532   :  { %v4491_v18 = vrot.slane %v4489_v52, 4  ;;  %v4492_v0 = vrot.slane %v4290_v46, 5  ;;  %6510 = vmatprep.subr.bf16.mxu0 %v6982_v33  ;;  %v4292_v3 = vrot.slane %v4290_v46, 4  ;;  %v8935_v41 = vsel %vm2649_vm11, %v4386_v61, %v4387_v55  ;;  %v6990_v61 = vld [vmem:[#allocation13 + $0x5c] sm:$0xff]   ;;  %v7014_v2 = vld [vmem:[#allocation13 + $0x104] sm:$0xff]   ;;  %v7015_v25 = vld [vmem:[#allocation13 + $0x10c] sm:$0xff]  }
 0x533   :  { %v8938_v34 = vsel %vm2501_vm10, %v4284_v47, %v4287_v42  ;;  %v8941_v54 = vsel %vm2649_vm11, %v4387_v55, %v4389_v15  ;;  %v4486_v5 = vrot.slane %v3631_v26, 5  ;;  %v8944_v35 = vsel %vm2941_vm14, %v4586_v29, %v4587_v30  ;;  %v6985_v47 = vld [vmem:[#allocation13 + $0x38] sm:$0xff]   ;;  %v6991_v29 = vld [vmem:[#allocation13 + $0x64] sm:$0xff]   ;;  %v6992_v26 = vld [vmem:[#allocation13 + $0x6c] ss:$0 sps:$4 sm:$0x11]  }
 0x534   :  { %v8947_v59 = vsel %vm2501_vm10, %v4287_v42, %v4292_v3  ;;  %v4493_v7 = vor.u32 %v4492_v0, %v4491_v18  ;;  %v8950_v62 = vsel %vm2941_vm14, %v4587_v30, %v4589_v22  ;;  %v3743_v38 = vsel %vm1596_vm2, %v6984_v57, 0  ;;  %v6996_v55 = vld [vmem:[#allocation13 + $0x88] ss:$0 sps:$4 sm:$0x11]   ;;  %v7017_v52 = vld [vmem:[#allocation13 + $0x118] sm:$0xff]   ;;  %v7018_v22 = vld [vmem:[#allocation13 + $0x120] sm:$0xff]  }
 0x535   :  { %6511 = vmatpush3.bf16.msra.mxu0 %v6982_v33  ;;  %v4487_v58 = vor.u32 %v4486_v5, %v4485_v13  ;;  %v3835_v12 = vsel %vm1596_vm2, %v6988_v8, 0  ;;  %v3933_v23 = vsel %vm1596_vm2, %v6992_v26, 0  ;;  %v4027_v30 = vsel %vm1596_vm2, %v6996_v55, 0  ;;  %v7000_v39 = vld [vmem:[#allocation13 + $0xa4] ss:$0 sps:$4 sm:$0x11]  }
 0x536   :  { %6512 = vmatprep.subr.bf16.mxu0 %v6983_v19  ;;  %v4125_v37 = vsel %vm1596_vm2, %v7000_v39, 0  ;;  %v7004_v53 = vld [vmem:[#allocation13 + $0xc0] ss:$0 sps:$4 sm:$0x11]   ;;  %v4322_v33 = vsel %vm1596_vm2, %v7008_v21, 0  ;;  %v7022_v13 = vld [vmem:[%s9145_s14 + $0x24] sm:$0xff]  }
 0x537   :  { %v8953_v14 = vsel %vm2787_vm12, %v4484_v24, %v4487_v58  ;;  %v8956_v48 = vsel %vm2787_vm12, %v4487_v58, %v4493_v7  ;;  %v7021_v24 = vld [vmem:[%s9145_s14 + $0x1c] sm:$0xff]   ;;  %v4219_v50 = vsel %vm1596_vm2, %v7004_v53, 0  ;;  %v7012_v28 = vld [vmem:[#allocation13 + $0xf8] ss:$0 sps:$4 sm:$0x11]  }
 0x538   :  { %6628 = vmatprep.subr.bf16.mxu1 %v7021_v24  ;;  %v7016_v46 = vld [vmem:[#allocation13 + $0x114] ss:$0 sps:$4 sm:$0x11]   ;;  %v7024_v0 = vld [vmem:[%s9145_s14 + $0x34] ss:$0 sps:$4 sm:$0x11]  }
 0x539   :  { %6513 = vmatpush3.bf16.msra.mxu0 %v6983_v19  ;;  %6629 = vmatpush3.bf16.msra.mxu1 %v7021_v24  ;;  %v4523_v15 = vsel %vm1596_vm2, %v7016_v46, 0  ;;  %v7023_v18 = vld [vmem:[%s9145_s14 + $0x2c] sm:$0xff]   ;;  %v4749_v19 = vsel %vm1596_vm2, %v7024_v0, 0  ;;  %v7025_v3 = vld [vmem:[%s9145_s14] sm:$0xff]  }
 0x53a   :  { %6745 = vmatprep.subr.msk.bf16.mxu0 %vm1596_vm2, %v6984_v57  ;;  %6630 = vmatprep.subr.bf16.mxu1 %v7022_v13 }
 0x53d   :  { %6515 = vmatpush3.bf16.msra.mxu0 %v3743_v38  ;;  %6631 = vmatpush3.bf16.msra.mxu1 %v7022_v13  ;;  %v5650_v13 = vld [vmem:[%s9146_s15] ss:$0 sm:$0xff] }
 0x53e   :  { %6520 = vmatprep.subr.bf16.mxu0 %v6985_v47  ;;  %6632 = vmatprep.subr.bf16.mxu1 %v7023_v18 }
 0x540   :  { %6517 = vmatmul.mubr.msk.bf16.vlgmr.msra.gmra.mrb[188].mxu0 %vm1580_vm4, %v8891_v49  ;;  %v7010_v49 = vld [vmem:[#allocation13 + $0xe8] sm:$0xff]  }
 0x541   :  { %6521 = vmatpush3.bf16.msra.mxu0 %v6985_v47  ;;  %6528 = vmatprep.mubr.msk.bf16.mxu0 %vm1580_vm4, %v3806_v9  ;;  %v6999_v9 = vld [vmem:[#allocation13 + $0x9c] sm:$0xff]  }
 0x542   :  { %6522 = vmatprep.subr.bf16.mxu0 %v6986_v36  ;;  %6633 = vmatpush3.bf16.msra.mxu1 %v7023_v18 }
 0x543   :  { %6755 = vmatprep.subr.msk.bf16.mxu1 %vm1596_vm2, %v7024_v0 }
 0x545   :  { %6523 = vmatpush3.bf16.msra.mxu0 %v6986_v36 }
 0x546   :  { %6524 = vmatprep.subr.bf16.mxu0 %v6987_v44  ;;  %6635 = vmatpush3.bf16.msra.mxu1 %v4749_v19 }
 0x547   :  { %6640 = vmatprep.subr.bf16.mxu1 %v7025_v3 }
 0x549   :  { %6525 = vmatpush3.bf16.msra.mxu0 %v6987_v44 }
 0x54a   :  { %6746 = vmatprep.subr.msk.bf16.mxu0 %vm1596_vm2, %v6988_v8 }
 0x54d   :  { %6527 = vmatpush3.bf16.msra.mxu0 %v3835_v12 }
 0x54e   :  { %6532 = vmatprep.subr.bf16.mxu0 %v6989_v27 }
 0x550   :  { %6529 = vmatmul.mubr.msk.bf16.vlgmr.msra.gmra.mrb[188].mxu0 %vm1580_vm4, %v3805_v51  ;;  %v6993_v51 = vld [vmem:[#allocation13 + $0x70] sm:$0xff]  }
 0x551   :  { %6533 = vmatpush3.bf16.msra.mxu0 %v6989_v27  ;;  %6540 = vmatprep.mubr.msk.bf16.mxu0 %vm1580_vm4, %v3904_v20  ;;  %v7019_v20 = vld [vmem:[#allocation13 + $0x128] sm:$0xff]  }
 0x552   :  { %6534 = vmatprep.subr.bf16.mxu0 %v6990_v61 }
 0x555   :  { %6535 = vmatpush3.bf16.msra.mxu0 %v6990_v61 }
 0x556   :  { %6536 = vmatprep.subr.bf16.mxu0 %v6991_v29 }
 0x559   :  { %6537 = vmatpush3.bf16.msra.mxu0 %v6991_v29 }
 0x55a   :  { %6747 = vmatprep.subr.msk.bf16.mxu0 %vm1596_vm2, %v6992_v26 }
 0x55d   :  { %6539 = vmatpush3.bf16.msra.mxu0 %v3933_v23 }
 0x55e   :  { %6544 = vmatprep.subr.bf16.mxu0 %v6993_v51 }
 0x560   :  { %6541 = vmatmul.mubr.msk.bf16.vlgmr.msra.gmra.mrb[188].mxu0 %vm1580_vm4, %v8920_v43  ;;  %v4419_v43 = vsel %vm1596_vm2, %v7012_v28, 0 }
 0x561   :  { %6545 = vmatpush3.bf16.msra.mxu0 %v6993_v51  ;;  %6552 = vmatprep.mubr.msk.bf16.mxu0 %vm1580_vm4, %v8911_v10  ;;  %v7002_v10 = vld [vmem:[#allocation13 + $0xb0] sm:$0xff]  }
 0x562   :  { %6546 = vmatprep.subr.bf16.mxu0 %v6994_v60 }
 0x565   :  { %6547 = vmatpush3.bf16.msra.mxu0 %v6994_v60 }
 0x566   :  { %6548 = vmatprep.subr.bf16.mxu0 %v6995_v63 }
 0x569   :  { %6549 = vmatpush3.bf16.msra.mxu0 %v6995_v63 }
 0x56a   :  { %6748 = vmatprep.subr.msk.bf16.mxu0 %vm1596_vm2, %v6996_v55 }
 0x56d   :  { %6551 = vmatpush3.bf16.msra.mxu0 %v4027_v30 }
 0x56e   :  { %6556 = vmatprep.subr.bf16.mxu0 %v6997_v56 }
 0x570   :  { %6553 = vmatmul.mubr.msk.bf16.vlgmr.msra.gmra.mrb[188].mxu0 %vm1580_vm4, %v3997_v11  ;;  %v7003_v11 = vld [vmem:[#allocation13 + $0xb8] sm:$0xff]  }
 0x571   :  { %6557 = vmatpush3.bf16.msra.mxu0 %v6997_v56  ;;  %6564 = vmatprep.mubr.msk.bf16.mxu0 %vm1580_vm4, %v8932_v1  ;;  %v7020_v1 = vld [vmem:[#allocation13 + $0x130] ss:$0 sps:$4 sm:$0x11]  }
 0x572   :  { %6558 = vmatprep.subr.bf16.mxu0 %v6998_v31  ;;  %v4619_v42 = vsel %vm1596_vm2, %v7020_v1, 0 }
 0x575   :  { %6559 = vmatpush3.bf16.msra.mxu0 %v6998_v31 }
 0x576   :  { %6560 = vmatprep.subr.bf16.mxu0 %v6999_v9 }
 0x579   :  { %6561 = vmatpush3.bf16.msra.mxu0 %v6999_v9 }
 0x57a   :  { %6749 = vmatprep.subr.msk.bf16.mxu0 %vm1596_vm2, %v7000_v39 }
 0x57d   :  { %6563 = vmatpush3.bf16.msra.mxu0 %v4125_v37 }
 0x57e   :  { %6568 = vmatprep.subr.bf16.mxu0 %v7001_v32 }
 0x580   :  { %6565 = vmatmul.mubr.msk.bf16.vlgmr.msra.gmra.mrb[188].mxu0 %vm1580_vm4, %v8922_v45  ;;  %v7013_v45 = vld [vmem:[#allocation13 + $0xfc] sm:$0xff]  }
 0x581   :  { %6569 = vmatpush3.bf16.msra.mxu0 %v7001_v32  ;;  %6576 = vmatprep.mubr.msk.bf16.mxu0 %vm1580_vm4, %v8917_v4  ;;  %v7009_v4 = vld [vmem:[#allocation13 + $0xe0] sm:$0xff]  }
 0x582   :  { %6570 = vmatprep.subr.bf16.mxu0 %v7002_v10 }
 0x585   :  { %6571 = vmatpush3.bf16.msra.mxu0 %v7002_v10 }
 0x586   :  { %6572 = vmatprep.subr.bf16.mxu0 %v7003_v11 }
 0x589   :  { %6573 = vmatpush3.bf16.msra.mxu0 %v7003_v11  ;;  %v7026_v11 = vld [vmem:[%s9145_s14 + $0x8] sm:$0xff]  }
 0x58a   :  { %6750 = vmatprep.subr.msk.bf16.mxu0 %vm1596_vm2, %v7004_v53 }
 0x58d   :  { %6575 = vmatpush3.bf16.msra.mxu0 %v4219_v50  ;;  %v7027_v50 = vld [vmem:[%s9145_s14 + $0x10] sm:$0xff]  }
 0x58e   :  { %6580 = vmatprep.subr.bf16.mxu0 %v7005_v6 }
 0x590   :  { %6577 = vmatmul.mubr.msk.bf16.vlgmr.msra.gmra.mrb[188].mxu0 %vm1580_vm4, %v4189_v16  ;;  %v7011_v16 = vld [vmem:[#allocation13 + $0xf0] sm:$0xff]  }
 0x591   :  { %6581 = vmatpush3.bf16.msra.mxu0 %v7005_v6  ;;  %6588 = vmatprep.mubr.msk.bf16.mxu0 %vm1580_vm4, %v8938_v34  ;;  %v7028_v6 = vld [vmem:[%s9145_s14 + $0x18] ss:$0 sps:$4 sm:$0x11]  }
 0x592   :  { %6582 = vmatprep.subr.bf16.mxu0 %v7006_v17 }
 0x595   :  { %6583 = vmatpush3.bf16.msra.mxu0 %v7006_v17  ;;  %v4824_v17 = vsel %vm1596_vm2, %v7028_v6, 0 }
 0x596   :  { %6584 = vmatprep.subr.bf16.mxu0 %v7007_v40 }
 0x599   :  { %6585 = vmatpush3.bf16.msra.mxu0 %v7007_v40  ;;  %v7029_v40 = vld [vmem:[%s9145_s14 + $0x38] sm:$0xff]  }
 0x59a   :  { %6751 = vmatprep.subr.msk.bf16.mxu0 %vm1596_vm2, %v7008_v21  ;;  %v7030_v21 = vld [vmem:[%s9145_s14 + $0x40] sm:$0xff]  }
 0x59d   :  { %6587 = vmatpush3.bf16.msra.mxu0 %v4322_v33  ;;  %v7031_v33 = vld [vmem:[%s9145_s14 + $0x48] sm:$0xff]  }
 0x59e   :  { %6592 = vmatprep.subr.bf16.mxu0 %v7009_v4 }
 0x5a0   :  { %6589 = vmatmul.mubr.msk.bf16.vlgmr.msra.gmra.mrb[188].mxu0 %vm1580_vm4, %v8947_v59 }
 0x5a1   :  { %6593 = vmatpush3.bf16.msra.mxu0 %v7009_v4  ;;  %6600 = vmatprep.mubr.msk.bf16.mxu0 %vm1580_vm4, %v8935_v41  ;;  %v5591_v41 = vld [vmem:[%s9142_s11] ss:$0 sm:$0xff]  ;;  %v7032_v4 = vld [vmem:[%s9145_s14 + $0x50] ss:$0 sps:$4 sm:$0x11]  }
 0x5a2   :  { %6594 = vmatprep.subr.bf16.mxu0 %v7010_v49 }
 0x5a5   :  { %6595 = vmatpush3.bf16.msra.mxu0 %v7010_v49  ;;  %v4914_v49 = vsel %vm1596_vm2, %v7032_v4, 0 }
 0x5a6   :  { %6596 = vmatprep.subr.bf16.mxu0 %v7011_v16 }
 0x5a9   :  { %6597 = vmatpush3.bf16.msra.mxu0 %v7011_v16  ;;  %v7033_v16 = vld [vmem:[%s9145_s14 + $0x54] sm:$0xff]  }
 0x5aa   :  { %6752 = vmatprep.subr.msk.bf16.mxu0 %vm1596_vm2, %v7012_v28  ;;  %v7034_v28 = vld [vmem:[%s9145_s14 + $0x5c] sm:$0xff]  }
 0x5ad   :  { %6599 = vmatpush3.bf16.msra.mxu0 %v4419_v43  ;;  %v7035_v43 = vld [vmem:[%s9145_s14 + $0x64] sm:$0xff]  }
 0x5ae   :  { %6604 = vmatprep.subr.bf16.mxu0 %v7013_v45 }
 0x5b0   :  { %6601 = vmatmul.mubr.msk.bf16.vlgmr.msra.gmra.mrb[188].mxu0 %vm1580_vm4, %v8941_v54 }
 0x5b1   :  { %6605 = vmatpush3.bf16.msra.mxu0 %v7013_v45  ;;  %6612 = vmatprep.mubr.msk.bf16.mxu0 %vm1580_vm4, %v8953_v14  ;;  %v7036_v45 = vld [vmem:[%s9145_s14 + $0x6c] ss:$0 sps:$4 sm:$0x11]  }
 0x5b2   :  { %6606 = vmatprep.subr.bf16.mxu0 %v7014_v2 }
 0x5b5   :  { %6607 = vmatpush3.bf16.msra.mxu0 %v7014_v2  ;;  %v5008_v2 = vsel %vm1596_vm2, %v7036_v45, 0 }
 0x5b6   :  { %6608 = vmatprep.subr.bf16.mxu0 %v7015_v25 }
 0x5b9   :  { %6609 = vmatpush3.bf16.msra.mxu0 %v7015_v25  ;;  %v7037_v25 = vld [vmem:[%s9145_s14 + $0x70] sm:$0xff]  }
 0x5ba   :  { %6753 = vmatprep.subr.msk.bf16.mxu0 %vm1596_vm2, %v7016_v46  ;;  %v7038_v46 = vld [vmem:[%s9145_s14 + $0x78] sm:$0xff]  }
 0x5bd   :  { %6611 = vmatpush3.bf16.msra.mxu0 %v4523_v15  ;;  %v7039_v15 = vld [vmem:[%s9145_s14 + $0x80] sm:$0xff]  }
 0x5be   :  { %6616 = vmatprep.subr.bf16.mxu0 %v7017_v52 }
 0x5c0   :  { %6613 = vmatmul.mubr.msk.bf16.vlgmr.msra.gmra.mrb[188].mxu0 %vm1580_vm4, %v8956_v48 }
 0x5c1   :  { %6617 = vmatpush3.bf16.msra.mxu0 %v7017_v52  ;;  %6624 = vmatprep.mubr.msk.bf16.mxu0 %vm1580_vm4, %v8944_v35  ;;  %v7040_v52 = vld [vmem:[%s9145_s14 + $0x88] ss:$0 sps:$4 sm:$0x11]   ;;  %s7217_s14 = scalar_lea.vmem %s5169_s18, 32 }
 0x5c2   :  { %6618 = vmatprep.subr.bf16.mxu0 %v7018_v22  ;;  %p7218_p8 = scmp.ne.s32.totalorder %s5169_s18, %s7217_s14  ;;  %p7223_p10 = scmp.lt.s32.totalorder %s7217_s14, %s7217_s14 }
 0x5c4   :  { %p7224_p11 = por %p7223_p10, %p7222_p9 }
 0x5c5   :  { %6619 = vmatpush3.bf16.msra.mxu0 %v7018_v22  ;;  %v5098_v22 = vsel %vm1596_vm2, %v7040_v52, 0 }
 0x5c6   :  { %6620 = vmatprep.subr.bf16.mxu0 %v7019_v20  ;;  %p7225_p12 = pnand %p7224_p11, %p7218_p8 }
 0x5c9   :  { %6621 = vmatpush3.bf16.msra.mxu0 %v7019_v20 }
 0x5ca   :  { %6754 = vmatprep.subr.msk.bf16.mxu0 %vm1596_vm2, %v7020_v1 }
 0x5cd   :  { %6623 = vmatpush3.bf16.msra.mxu0 %v4619_v42 }
 0x5d0   :  { %6625 = vmatmul.mubr.msk.bf16.vlgmr.msra.gmra.mrb[188].mxu0 %vm1580_vm4, %v8950_v62 }
 0x6a3   :  { %v6626_v34 = vpop.f32.mrb[188].mxu0 }
 0x6a4   :  { %v4683_v54 = vadd.f32 %v6626_v34, %v5591_v41  ;;  %v4655_v5 = vpop.f32.mrb[189].mxu0 }
 0x6a5   :  { %v4681_v35 = vadd.f32 %v5591_v41, %v4655_v5  ;;  %v6627_v59 = vpop.f32.mrb[190].mxu0 }
 0x6a6   :  { %v4684_v7 = vadd.f32 %v6627_v59, %v5591_v41  ;;  %v4658_v62 = vpop.f32.mrb[191].mxu0  ;;  %v4687_v57 = vmax.f32 %v4683_v54, 0.0 }
 0x6a7   :  { %v4682_v58 = vadd.f32 %v5591_v41, %v4658_v62  ;;  %v4685_v48 = vmax.f32 %v4681_v35, 0.0 }
 0x6a8   :  { %v4688_v14 = vmax.f32 %v4684_v7, 0.0 }
 0x6a9   :  { %v4686_v38 = vmax.f32 %v4682_v58, 0.0 }
 0x6aa   :  { %v9037_v47 = vpack.c.bf16 %v4688_v14, %v4687_v57 }
 0x6ab   :  { %v4689_v36 = vpack.c.bf16 %v4686_v38, %v4685_v48 }
 0x6ac   :  { %v4714_v44 = vshll.u32 %v9037_v47, 16  ;;  %v4718_v8 = vshrl.u32 %v9037_v47, 16  ;;  %v4884_v12 = vrot.slane %v9037_v47, 1  ;;  %v5068_v27 = vrot.slane %v9037_v47, 2 }
 0x6ad   :  { %v4707_v61 = vshrl.u32 %v4689_v36, 16  ;;  %v4709_v24 = vshll.u32 %v4689_v36, 16  ;;  %v4883_v29 = vrot.slane %v4689_v36, 1  ;;  %v5067_v26 = vrot.slane %v4689_v36, 2 }
 0x6ae   :  { %v4716_v23 = vrot.slane %v4714_v44, 1  ;;  %v4976_v51 = vrot.slane %v4718_v8, 1  ;;  %v4977_v60 = vrot.slane %v4714_v44, 2 }
 0x6af   :  { %v4711_v63 = vrot.slane %v4709_v24, 1  ;;  %v4885_v55 = vsel %vm1791_vm5, %v4883_v29, %v4884_v12  ;;  %v4973_v30 = vrot.slane %v4707_v61, 1  ;;  %v4974_v56 = vrot.slane %v4709_v24, 2 }
 0x6b0   :  { %v4978_v31 = vor.u32 %v4977_v60, %v4976_v51  ;;  %v5069_v9 = vsel %vm2077_vm7, %v5067_v26, %v5068_v27  ;;  %v4720_v10 = vor.u32 %v4718_v8, %v4716_v23 }
 0x6b1   :  { %v4712_v39 = vor.u32 %v4711_v63, %v4707_v61  ;;  %v4975_v37 = vor.u32 %v4974_v56, %v4973_v30 }
 0x6b3   :  { %v4717_v32 = vsel %vm1519_vm6, %v4712_v39, %v4716_v23  ;;  %v4979_v53 = vsel %vm1929_vm8, %v4975_v37, %v4978_v31 }
 0x6b4   :  { %6636 = vmatprep.mubr.msk.bf16.mxu1 %vm1580_vm4, %v4717_v32 }
 0x6b5   :  { %6637 = vmatmul.mubr.msk.bf16.vlgmr.msra.gmra.mrb[240].mxu1 %vm1580_vm4, %v4720_v10 }
 0x6b6   :  { %6641 = vmatpush3.bf16.msra.mxu1 %v7025_v3  ;;  %6648 = vmatprep.mubr.msk.bf16.mxu1 %vm1580_vm4, %v4689_v36 }
 0x6b7   :  { %6642 = vmatprep.subr.bf16.mxu1 %v7026_v11 }
 0x6ba   :  { %6643 = vmatpush3.bf16.msra.mxu1 %v7026_v11 }
 0x6bb   :  { %6644 = vmatprep.subr.bf16.mxu1 %v7027_v50 }
 0x6be   :  { %6645 = vmatpush3.bf16.msra.mxu1 %v7027_v50 }
 0x6bf   :  { %6756 = vmatprep.subr.msk.bf16.mxu1 %vm1596_vm2, %v7028_v6 }
 0x6c2   :  { %6647 = vmatpush3.bf16.msra.mxu1 %v4824_v17 }
 0x6c3   :  { %6652 = vmatprep.subr.bf16.mxu1 %v7029_v40 }
 0x6c5   :  { %6649 = vmatmul.mubr.msk.bf16.vlgmr.msra.gmra.mrb[240].mxu1 %vm1580_vm4, %v9037_v47 }
 0x6c6   :  { %6653 = vmatpush3.bf16.msra.mxu1 %v7029_v40  ;;  %6660 = vmatprep.mubr.msk.bf16.mxu1 %vm1580_vm4, %v4885_v55 }
 0x6c7   :  { %6654 = vmatprep.subr.bf16.mxu1 %v7030_v21 }
 0x6ca   :  { %6655 = vmatpush3.bf16.msra.mxu1 %v7030_v21 }
 0x6cb   :  { %6656 = vmatprep.subr.bf16.mxu1 %v7031_v33 }
 0x6ce   :  { %6657 = vmatpush3.bf16.msra.mxu1 %v7031_v33 }
 0x6cf   :  { %6757 = vmatprep.subr.msk.bf16.mxu1 %vm1596_vm2, %v7032_v4 }
 0x6d2   :  { %6659 = vmatpush3.bf16.msra.mxu1 %v4914_v49 }
 0x6d3   :  { %6664 = vmatprep.subr.bf16.mxu1 %v7033_v16 }
 0x6d5   :  { %6661 = vmatmul.mubr.msk.bf16.vlgmr.msra.gmra.mrb[240].mxu1 %vm1580_vm4, %v4884_v12 }
 0x6d6   :  { %6665 = vmatpush3.bf16.msra.mxu1 %v7033_v16  ;;  %6672 = vmatprep.mubr.msk.bf16.mxu1 %vm1580_vm4, %v4979_v53 }
 0x6d7   :  { %6666 = vmatprep.subr.bf16.mxu1 %v7034_v28 }
 0x6da   :  { %6667 = vmatpush3.bf16.msra.mxu1 %v7034_v28 }
 0x6db   :  { %6668 = vmatprep.subr.bf16.mxu1 %v7035_v43 }
 0x6de   :  { %6669 = vmatpush3.bf16.msra.mxu1 %v7035_v43 }
 0x6df   :  { %6758 = vmatprep.subr.msk.bf16.mxu1 %vm1596_vm2, %v7036_v45 }
 0x6e2   :  { %6671 = vmatpush3.bf16.msra.mxu1 %v5008_v2 }
 0x6e3   :  { %6676 = vmatprep.subr.bf16.mxu1 %v7037_v25 }
 0x6e5   :  { %6673 = vmatmul.mubr.msk.bf16.vlgmr.msra.gmra.mrb[240].mxu1 %vm1580_vm4, %v4978_v31 }
 0x6e6   :  { %6677 = vmatpush3.bf16.msra.mxu1 %v7037_v25  ;;  %6684 = vmatprep.mubr.msk.bf16.mxu1 %vm1580_vm4, %v5069_v9 }
 0x6e7   :  { %6678 = vmatprep.subr.bf16.mxu1 %v7038_v46 }
 0x6ea   :  { %6679 = vmatpush3.bf16.msra.mxu1 %v7038_v46 }
 0x6eb   :  { %6680 = vmatprep.subr.bf16.mxu1 %v7039_v15 }
 0x6ee   :  { %6681 = vmatpush3.bf16.msra.mxu1 %v7039_v15 }
 0x6ef   :  { %6759 = vmatprep.subr.msk.bf16.mxu1 %vm1596_vm2, %v7040_v52 }
 0x6f2   :  { %6683 = vmatpush3.bf16.msra.mxu1 %v5098_v22 }
 0x6f5   :  { %6685 = vmatmul.mubr.msk.bf16.vlgmr.msra.gmra.mrb[240].mxu1 %vm1580_vm4, %v5068_v27 }
 0x7c8   :  { %v6686_v20 = vpop.f32.mrb[240].mxu1 }
 0x7c9   :  { %v5150_v1 = vrot.slane %v6686_v20, 4  ;;  %v5134_v42 = vpop.f32.mrb[241].mxu1 }
 0x7ca   :  { %v6687_v18 = vpop.f32.mrb[242].mxu1 }
 0x7cb   :  { %v5152_v0 = vsel %vm1596_vm2, %v5134_v42, %v5150_v1  ;;  %v5137_v19 = vpop.f32.mrb[243].mxu1 }
 0x7cc   :  { %v5160_v3 = vadd.f32 %v5650_v13, %v5152_v0 }
 0x7ce   :  { %5161 = vst [vmem:[#allocation16] sm:$0x3] %v5160_v3 }
 0x7cf   :  { %7228 = shalt.err (!%p7225_p12)
}
 0x7d0   :  { %s7229_s15 = scalar_lea.hbm %s9147_s16, 32 }
 0x7d1   :  { %p7230_p13 = scmp.ne.s32.totalorder %s9147_s16, %s7229_s15  ;;  %p7233_p0 = scmp.lt.u32.totalorder %s7229_s15, %s9147_s16 }
 0x7d3   :  { %p7235_p1 = pnand %p7233_p0, %p7230_p13 }
 0x7d5   :  { %7238 = shalt.err (!%p7235_p1)
}
 0x7d6   :  { %5171 = dma.vmem_to_hbm [thread:$0]  %s5169_s18, 32, %s9147_s16, [#allocation4]  }
 0x7d7   :  { %7249 = dma.done.wait [#allocation4], 32  }
 0x7d8   :  { %7250 = vsyncadd [#allocation4], 4294967264 }
 0x7d9   :  { %5175 = vsyncpa [#allocation3], 1 }
 0x7da   :  { %5176 = vsyncpa [#allocation6], 1 }
 0x7db   :  { %5177 = vsyncpa [#allocation9], 1 }
 0x7dc   :  { %5178 = vsyncpa [#allocation12], 1 }
 0x7dd   :  { %5179 = vsyncpa [#allocation15], 1 }
 0x7de   :  { %5180 = vsyncpa [#allocation4], 1 }

</bundles_post_ra>
